<compile_context>
chip_gen: v6e
topology: v6e:2x2x1
jax: 0.10.0
libtpu: 0.0.40
codegen_flags: <defaults>
</compile_context>

<pallas_src>
import functools

import jax
import jax.numpy as jnp
from jax.experimental import pallas as pl
from jax.experimental.pallas import tpu as pltpu

EPS = 1e-5
LANE = 128
VMEM_LIMIT = 32 * 1024 * 1024   # safe on v5e/v6e (128 MiB) and v7x (64 MiB physical)


def _round_up(x, m):
    return (x + m - 1) // m * m


# ---------------------------------------------------------------------------
# Pallas kernels
# ---------------------------------------------------------------------------
def _conv_stats_kernel(p_ref, w_ref, mask_ref, y_ref, sum_ref, ssq_ref,
                       *, offsets, r_out, images_per_step):
    """Pass 1: 3x3 conv as 9 row-shifted matmuls over flattened padded image rows.

    Writes the raw conv result (bf16, row-tiled) and accumulates global per-channel
    sum / sum-of-squares (f32 accumulator outputs) for training-mode BatchNorm.
    """
    @pl.when(pl.program_id(0) == 0)
    def _init():
        sum_ref[...] = jnp.zeros_like(sum_ref)
        ssq_ref[...] = jnp.zeros_like(ssq_ref)

    cp = y_ref.shape[-1]
    mask = mask_ref[...]                                     # (r_out, 1): 1 for real pixels,
    s_acc = jnp.zeros((1, cp), jnp.float32)                  # 0 for W-padding columns
    q_acc = jnp.zeros((1, cp), jnp.float32)
    for i in range(images_per_step):                         # static unroll over images
        acc = jnp.zeros((r_out, cp), jnp.float32)
        for t, off in enumerate(offsets):                    # static unroll over 9 taps
            lhs = p_ref[i, off:off + r_out, :].astype(jnp.bfloat16)
            acc = acc + jnp.dot(lhs, w_ref[t], preferred_element_type=jnp.float32)
        y_ref[i * r_out:(i + 1) * r_out, :] = acc.astype(y_ref.dtype)
        masked = acc * mask
        s_acc = s_acc + jnp.sum(masked, axis=0, keepdims=True)
        q_acc = q_acc + jnp.sum(acc * masked, axis=0, keepdims=True)
        # TODO(synk): strip-mine the reduction over 8-row sub-strips once this pass
        # stops being HBM-bound at real ResNet shapes.
    sum_ref[...] += s_acc
    ssq_ref[...] += q_acc


def _bn_act_kernel(y_ref, scale_ref, shift_ref, o_ref):
    """Pass 2 (no shortcut): elementwise BN scale/shift + ReLU on the streamed conv result."""
    y = y_ref[...].astype(jnp.float32)
    o_ref[...] = jnp.maximum(y * scale_ref[...] + shift_ref[...], 0.0).astype(o_ref.dtype)


def _bn_act_add_kernel(y_ref, scale_ref, shift_ref, sc_ref, o_ref):
    """Pass 2 (with identity shortcut): BN scale/shift + shortcut add + ReLU."""
    y = y_ref[...].astype(jnp.float32)
    o = y * scale_ref[...] + shift_ref[...] + sc_ref[...].astype(jnp.float32)
    o_ref[...] = jnp.maximum(o, 0.0).astype(o_ref.dtype)


# ---------------------------------------------------------------------------
# pallas_call wrappers (grid / BlockSpec plumbing)
# ---------------------------------------------------------------------------
def _conv_stats(p, w_taps, mask, *, offsets, r_out, cp, images_per_step):
    n_img, r_blk, c = p.shape
    grid = n_img // images_per_step
    kernel = functools.partial(_conv_stats_kernel, offsets=offsets,
                               r_out=r_out, images_per_step=images_per_step)
    return pl.pallas_call(
        kernel,
        out_shape=(jax.ShapeDtypeStruct((n_img * r_out, cp), jnp.bfloat16),   # raw conv
                   jax.ShapeDtypeStruct((1, cp), jnp.float32),                # sum
                   jax.ShapeDtypeStruct((1, cp), jnp.float32)),               # sum of squares
        grid=(grid,),
        in_specs=[pl.BlockSpec((images_per_step, r_blk, c), lambda n: (n, 0, 0)),
                  pl.BlockSpec((9, c, cp), lambda n: (0, 0, 0)),       # weights stay resident
                  pl.BlockSpec((r_out, 1), lambda n: (0, 0))],         # column mask, resident
        out_specs=(pl.BlockSpec((images_per_step * r_out, cp), lambda n: (n, 0)),
                   pl.BlockSpec((1, cp), lambda n: (0, 0)),            # VMEM accumulators
                   pl.BlockSpec((1, cp), lambda n: (0, 0))),
        compiler_params=pltpu.CompilerParams(
            dimension_semantics=("arbitrary",),                        # stats reduction
            vmem_limit_bytes=VMEM_LIMIT),
    )(p, w_taps, mask)


def _bn_act(y, scale, shift, shortcut, out_dtype, tile_rows):
    rows, cp = y.shape
    grid = rows // tile_rows
    in_specs = [pl.BlockSpec((tile_rows, cp), lambda t: (t, 0)),
                pl.BlockSpec((1, cp), lambda t: (0, 0)),
                pl.BlockSpec((1, cp), lambda t: (0, 0))]
    args = [y, scale, shift]
    if shortcut is not None:
        in_specs.append(pl.BlockSpec((tile_rows, cp), lambda t: (t, 0)))
        args.append(shortcut)
        kernel = _bn_act_add_kernel
    else:
        kernel = _bn_act_kernel
    return pl.pallas_call(
        kernel,
        out_shape=jax.ShapeDtypeStruct((rows, cp), out_dtype),
        grid=(grid,),
        in_specs=in_specs,
        out_specs=pl.BlockSpec((tile_rows, cp), lambda t: (t, 0)),     # lane-dense (cp=128k)
        compiler_params=pltpu.CompilerParams(
            dimension_semantics=("parallel",),                         # v7x: split across TCs
            vmem_limit_bytes=VMEM_LIMIT),
    )(*args)


# ---------------------------------------------------------------------------
# Plain-JAX glue: padded-row flattening, weight packing, BN coefficients
# ---------------------------------------------------------------------------
def _flatten_rows(x_nhwc, r_blk, g_top):
    """(N,H,W,C) -> (N, r_blk, C): zero-pad H,W by 1, flatten rows, add guard rows."""
    n, h, w, c = x_nhwc.shape
    xp = jnp.pad(x_nhwc, ((0, 0), (1, 1), (1, 1), (0, 0)))
    flat = xp.reshape(n, (h + 2) * (w + 2), c)
    g_bot = r_blk - (h + 2) * (w + 2) - g_top
    return jnp.pad(flat, ((0, 0), (g_top, g_bot), (0, 0)))


def _pack_weight(w_oihw, cp):
    """(Cout, Cin, 3, 3) -> bf16 (9, Cin, cp); tap t = kh*3 + kw matches the row offsets."""
    cout, cin, kh, kw = w_oihw.shape
    wt = jnp.transpose(w_oihw, (2, 3, 1, 0)).reshape(kh * kw, cin, cout)
    return jnp.pad(wt, ((0, 0), (0, 0), (0, cp - cout))).astype(jnp.bfloat16)


def _pad_vec(v, cp):
    return jnp.pad(v.astype(jnp.float32), (0, cp - v.shape[0])).reshape(1, cp)


def _bn_coeffs(ssum, ssq, gamma, beta, n_rows, cp):
    mean = ssum / n_rows
    var = jnp.maximum(ssq / n_rows - mean * mean, 0.0)     # clamp: avoid NaN from cancellation
    scale = _pad_vec(gamma, cp) * jax.lax.rsqrt(var + EPS)
    shift = _pad_vec(beta, cp) - mean * scale
    return scale, shift


def _pick_group(n_images, r_out, target_rows):
    best = 1
    for d in range(1, n_images + 1):
        if n_images % d == 0 and d * r_out <= target_rows and (d * r_out) % 8 == 0:
            best = d
    return best


def basic_block_forward(x_nchw, w1, g1, b1, w2, g2, b2, *, images_per_step=None):
    """Pallas implementation of BasicBlock.forward (stride=1, identity shortcut)."""
    N, Cin, H, W = x_nchw.shape
    Cout = int(w1.shape[0])
    assert Cin == Cout and int(w2.shape[0]) == Cout and int(w2.shape[1]) == Cout, \
        "identity shortcut requires in_planes == planes and stride == 1"

    CP = _round_up(Cout, LANE)                 # lane-dense padded channel dim
    G_TOP = 1                                  # guard rows so every tap slice is in-bounds
    R_OUT = H * (W + 2)                        # computed rows/image (real rows, W-pad cols kept)
    R_BLK = _round_up((H + 2) * (W + 2) + G_TOP + 1, 8)
    offsets = tuple(G_TOP + kh * (W + 2) + kw - 1 for kh in range(3) for kw in range(3))
    assert min(offsets) >= 0 and max(offsets) + R_OUT <= R_BLK

    if images_per_step is None:
        images_per_step = _pick_group(N, R_OUT, 2048)
    if N % images_per_step != 0 or (images_per_step * R_OUT) % 8 != 0:
        images_per_step = N                    # fall back to one big block (always legal)
    tile_rows = images_per_step * R_OUT
    n_rows = N * H * W                         # real pixels per channel (BN denominator)

    x_nhwc = jnp.transpose(x_nchw, (0, 2, 3, 1)).astype(jnp.float32)
    col = jnp.arange(R_OUT) % (W + 2)
    mask = ((col >= 1) & (col <= W)).astype(jnp.float32).reshape(R_OUT, 1)

    # --- conv1 + bn1 + relu ---
    p1 = _flatten_rows(x_nhwc, R_BLK, G_TOP)                          # (N, R_BLK, C) f32
    y1_raw, s1, q1 = _conv_stats(p1, _pack_weight(w1, CP), mask,
                                 offsets=offsets, r_out=R_OUT, cp=CP,
                                 images_per_step=images_per_step)
    sc1, sh1 = _bn_coeffs(s1, q1, g1, b1, n_rows, CP)
    y1_act = _bn_act(y1_raw, sc1, sh1, None, jnp.bfloat16, tile_rows)  # (N*R_OUT, CP) bf16

    # --- conv2 + bn2 + shortcut add + relu ---
    y1_img = y1_act.reshape(N, H, W + 2, CP)[:, :, 1:W + 1, :Cout].astype(jnp.float32)
    p2 = _flatten_rows(y1_img, R_BLK, G_TOP)
    y2_raw, s2, q2 = _conv_stats(p2, _pack_weight(w2, CP), mask,
                                 offsets=offsets, r_out=R_OUT, cp=CP,
                                 images_per_step=images_per_step)
    sc2, sh2 = _bn_coeffs(s2, q2, g2, b2, n_rows, CP)
    shortcut = jnp.pad(x_nhwc, ((0, 0), (0, 0), (1, 1), (0, CP - Cin)))
    shortcut = shortcut.reshape(N * R_OUT, CP).astype(jnp.bfloat16)    # bf16 identity path
    out = _bn_act(y2_raw, sc2, sh2, shortcut, jnp.float32, tile_rows)  # (N*R_OUT, CP) f32

    out_img = out.reshape(N, H, W + 2, CP)[:, :, 1:W + 1, :Cout]
    return jnp.transpose(out_img, (0, 3, 1, 2))


# ---------------------------------------------------------------------------
# Pure-JAX reference (mirrors the PyTorch module, training-mode BatchNorm).
# matmul_dtype=bfloat16 reproduces the kernel's dtype policy (bf16 MXU operands,
# bf16-streamed raw conv result, bf16 shortcut, f32 accumulation / BN math) through an
# independent conv path, so the tolerance validates the kernel rather than the
# deliberate bf16 trade-offs.
# ---------------------------------------------------------------------------
def _reference(x_nchw, w1, g1, b1, w2, g2, b2, *, matmul_dtype=jnp.float32):
    def conv(x, w):
        y = jax.lax.conv_general_dilated(
            x.astype(matmul_dtype), w.astype(matmul_dtype),
            window_strides=(1, 1), padding=((1, 1), (1, 1)),
            dimension_numbers=("NCHW", "OIHW", "NCHW"),
            preferred_element_type=jnp.float32)
        return y.astype(matmul_dtype).astype(jnp.float32)   # mirror bf16 raw-conv streaming

    def bn(t, g, b):
        mean = jnp.mean(t, axis=(0, 2, 3), keepdims=True)
        var = jnp.mean(jnp.square(t - mean), axis=(0, 2, 3), keepdims=True)
        return ((t - mean) * jax.lax.rsqrt(var + EPS)
                * g.reshape(1, -1, 1, 1) + b.reshape(1, -1, 1, 1))

    y = jax.nn.relu(bn(conv(x_nchw, w1), g1, b1))
    y = bn(conv(y, w2), g2, b2)
    shortcut = x_nchw.astype(matmul_dtype).astype(jnp.float32)
    return jax.nn.relu(y + shortcut)


if __name__ == "__main__":
    # BasicBlock(in_planes=4, planes=4, stride=1) at batch=2, spatial=16x16.
    N, C, H, W = 2, 4, 16, 16
    key = jax.random.PRNGKey(0)
    k_x, k_w1, k_w2 = jax.random.split(key, 3)

    x = jax.random.normal(k_x, (N, C, H, W), dtype=jnp.float32)
    # conv weights: deterministic synthetic init (OIHW, kernel 3x3, no bias).
    w1 = 0.1 * jax.random.normal(k_w1, (C, C, 3, 3), dtype=jnp.float32)
    w2 = 0.1 * jax.random.normal(k_w2, (C, C, 3, 3), dtype=jnp.float32)
    # BatchNorm affine params: PyTorch defaults (gamma=1, beta=0).
    g1 = jnp.ones((C,), jnp.float32)
    b1 = jnp.zeros((C,), jnp.float32)
    g2 = jnp.ones((C,), jnp.float32)
    b2 = jnp.zeros((C,), jnp.float32)

    # images_per_step=1 -> 2 grid steps in the conv+stats pass: exercises cross-step
    # BN-stat accumulation and the double-buffered pipeline.
    fwd = jax.jit(functools.partial(basic_block_forward, images_per_step=1))
    out = jax.block_until_ready(fwd(x, w1, g1, b1, w2, g2, b2))

    # Matched-precision reference (bf16 conv operands / streamed results, f32 BN), so the
    # tolerance validates the kernel itself rather than the deliberate bf16 trade-off.
    ref = jax.block_until_ready(
        _reference(x, w1, g1, b1, w2, g2, b2, matmul_dtype=jnp.bfloat16))

    assert out.shape == (N, C, H, W), out.shape
    assert out.dtype == jnp.float32, out.dtype
    assert jnp.allclose(out, ref, atol=1e-2, rtol=1e-2), \
        float(jnp.max(jnp.abs(out - ref)))
    print("KERNEL_OK")
</pallas_src>

<mosaic_0001>
module attributes {stable_mosaic.version = 11 : i64} {
  func.func @_conv_stats_kernel(%arg0: i32, %arg1: memref<1x328x4xf32, #tpu.memory_space<vmem>>, %arg2: memref<9x4x128xbf16, #tpu.memory_space<vmem>>, %arg3: memref<288x1xf32, #tpu.memory_space<vmem>>, %arg4: memref<288x128xbf16, #tpu.memory_space<vmem>>, %arg5: memref<1x128xf32, #tpu.memory_space<vmem>>, %arg6: memref<1x128xf32, #tpu.memory_space<vmem>>) attributes {dimension_semantics = [#tpu.dimension_semantics<arbitrary>], iteration_bounds = array<i64: 2>, scalar_prefetch = 0 : i64, scratch_operands = 0 : i64, tpu.core_type = #tpu.core_type<tc>, window_params = [{transform_indices = @transform_0, window_bounds = array<i64: 1, 328, 4>}, {pipeline_mode = #tpu.pipeline_mode<synchronous>, transform_indices = @transform_1, window_bounds = array<i64: 9, 4, 128>}, {pipeline_mode = #tpu.pipeline_mode<synchronous>, transform_indices = @transform_2, window_bounds = array<i64: 288, 1>}, {transform_indices = @transform_3, window_bounds = array<i64: 288, 128>}, {pipeline_mode = #tpu.pipeline_mode<synchronous>, transform_indices = @transform_4, window_bounds = array<i64: 1, 128>}, {pipeline_mode = #tpu.pipeline_mode<synchronous>, transform_indices = @transform_5, window_bounds = array<i64: 1, 128>}]} {
    %c0_i32 = arith.constant 0 : i32
    %0 = arith.cmpi eq, %arg0, %c0_i32 : i32
    %1 = arith.extui %0 : i1 to i32
    %c0_i32_0 = arith.constant 0 : i32
    %2 = arith.cmpi ne, %1, %c0_i32_0 : i32
    scf.if %2 {
      %cst_65 = arith.constant 0.000000e+00 : f32
      %87 = vector.broadcast %cst_65 : f32 to vector<1x128xf32>
      %c0_66 = arith.constant 0 : index
      %c0_67 = arith.constant 0 : index
      %88 = vector.load %arg5[%c0_66, %c0_67] : memref<1x128xf32, #tpu.memory_space<vmem>>, vector<1x128xf32>
      tpu.vector_store %arg5[%c0_66, %c0_67], %87 {strides = array<i32>} : memref<1x128xf32, #tpu.memory_space<vmem>>, vector<1x128xf32>,
      %cst_68 = arith.constant 0.000000e+00 : f32
      %89 = vector.broadcast %cst_68 : f32 to vector<1x128xf32>
      %c0_69 = arith.constant 0 : index
      %c0_70 = arith.constant 0 : index
      %90 = vector.load %arg6[%c0_69, %c0_70] : memref<1x128xf32, #tpu.memory_space<vmem>>, vector<1x128xf32>
      tpu.vector_store %arg6[%c0_69, %c0_70], %89 {strides = array<i32>} : memref<1x128xf32, #tpu.memory_space<vmem>>, vector<1x128xf32>,
    } else {
    }
    %c0 = arith.constant 0 : index
    %c0_1 = arith.constant 0 : index
    %3 = vector.load %arg3[%c0, %c0_1] : memref<288x1xf32, #tpu.memory_space<vmem>>, vector<288x1xf32>
    %cst = arith.constant 0.000000e+00 : f32
    %4 = vector.broadcast %cst : f32 to vector<1x128xf32>
    %cst_2 = arith.constant 0.000000e+00 : f32
    %5 = vector.broadcast %cst_2 : f32 to vector<1x128xf32>
    %cst_3 = arith.constant 0.000000e+00 : f32
    %6 = vector.broadcast %cst_3 : f32 to vector<288x128xf32>
    %c0_4 = arith.constant 0 : index
    %c0_5 = arith.constant 0 : index
    %c0_6 = arith.constant 0 : index
    %7 = vector.load %arg1[%c0_4, %c0_5, %c0_6] : memref<1x328x4xf32, #tpu.memory_space<vmem>>, vector<1x288x4xf32>
    %8 = vector.shape_cast %7 : vector<1x288x4xf32> to vector<288x4xf32>
    %9 = arith.truncf %8 : vector<288x4xf32> to vector<288x4xbf16>
    %c0_7 = arith.constant 0 : index
    %c0_8 = arith.constant 0 : index
    %c0_9 = arith.constant 0 : index
    %10 = vector.load %arg2[%c0_7, %c0_8, %c0_9] : memref<9x4x128xbf16, #tpu.memory_space<vmem>>, vector<1x4x128xbf16>
    %11 = vector.shape_cast %10 : vector<1x4x128xbf16> to vector<4x128xbf16>
    %cst_10 = arith.constant dense<0.000000e+00> : vector<288x128xf32>
    %12 = tpu.matmul %9, %11, %cst_10 {dimension_numbers = #tpu.dot_dimension_numbers<[1], [0], [0], [1], [0, 0, 1, 1], [], []>} : vector<288x4xbf16>, vector<4x128xbf16>, vector<288x128xf32> -> vector<288x128xf32>
    %13 = arith.addf %6, %12 : vector<288x128xf32>
    %c0_11 = arith.constant 0 : index
    %c1 = arith.constant 1 : index
    %c0_12 = arith.constant 0 : index
    %14 = vector.load %arg1[%c0_11, %c1, %c0_12] : memref<1x328x4xf32, #tpu.memory_space<vmem>>, vector<1x288x4xf32>
    %15 = vector.shape_cast %14 : vector<1x288x4xf32> to vector<288x4xf32>
    %16 = arith.truncf %15 : vector<288x4xf32> to vector<288x4xbf16>
    %c1_13 = arith.constant 1 : index
    %c0_14 = arith.constant 0 : index
    %c0_15 = arith.constant 0 : index
    %17 = vector.load %arg2[%c1_13, %c0_14, %c0_15] : memref<9x4x128xbf16, #tpu.memory_space<vmem>>, vector<1x4x128xbf16>
    %18 = vector.shape_cast %17 : vector<1x4x128xbf16> to vector<4x128xbf16>
    %cst_16 = arith.constant dense<0.000000e+00> : vector<288x128xf32>
    %19 = tpu.matmul %16, %18, %cst_16 {dimension_numbers = #tpu.dot_dimension_numbers<[1], [0], [0], [1], [0, 0, 1, 1], [], []>} : vector<288x4xbf16>, vector<4x128xbf16>, vector<288x128xf32> -> vector<288x128xf32>
    %20 = arith.addf %13, %19 : vector<288x128xf32>
    %c0_17 = arith.constant 0 : index
    %c2 = arith.constant 2 : index
    %c0_18 = arith.constant 0 : index
    %21 = vector.load %arg1[%c0_17, %c2, %c0_18] : memref<1x328x4xf32, #tpu.memory_space<vmem>>, vector<1x288x4xf32>
    %22 = vector.shape_cast %21 : vector<1x288x4xf32> to vector<288x4xf32>
    %23 = arith.truncf %22 : vector<288x4xf32> to vector<288x4xbf16>
    %c2_19 = arith.constant 2 : index
    %c0_20 = arith.constant 0 : index
    %c0_21 = arith.constant 0 : index
    %24 = vector.load %arg2[%c2_19, %c0_20, %c0_21] : memref<9x4x128xbf16, #tpu.memory_space<vmem>>, vector<1x4x128xbf16>
    %25 = vector.shape_cast %24 : vector<1x4x128xbf16> to vector<4x128xbf16>
    %cst_22 = arith.constant dense<0.000000e+00> : vector<288x128xf32>
    %26 = tpu.matmul %23, %25, %cst_22 {dimension_numbers = #tpu.dot_dimension_numbers<[1], [0], [0], [1], [0, 0, 1, 1], [], []>} : vector<288x4xbf16>, vector<4x128xbf16>, vector<288x128xf32> -> vector<288x128xf32>
    %27 = arith.addf %20, %26 : vector<288x128xf32>
    %c0_23 = arith.constant 0 : index
    %c18 = arith.constant 18 : index
    %c0_24 = arith.constant 0 : index
    %28 = vector.load %arg1[%c0_23, %c18, %c0_24] : memref<1x328x4xf32, #tpu.memory_space<vmem>>, vector<1x288x4xf32>
    %29 = vector.shape_cast %28 : vector<1x288x4xf32> to vector<288x4xf32>
    %30 = arith.truncf %29 : vector<288x4xf32> to vector<288x4xbf16>
    %c3 = arith.constant 3 : index
    %c0_25 = arith.constant 0 : index
    %c0_26 = arith.constant 0 : index
    %31 = vector.load %arg2[%c3, %c0_25, %c0_26] : memref<9x4x128xbf16, #tpu.memory_space<vmem>>, vector<1x4x128xbf16>
    %32 = vector.shape_cast %31 : vector<1x4x128xbf16> to vector<4x128xbf16>
    %cst_27 = arith.constant dense<0.000000e+00> : vector<288x128xf32>
    %33 = tpu.matmul %30, %32, %cst_27 {dimension_numbers = #tpu.dot_dimension_numbers<[1], [0], [0], [1], [0, 0, 1, 1], [], []>} : vector<288x4xbf16>, vector<4x128xbf16>, vector<288x128xf32> -> vector<288x128xf32>
    %34 = arith.addf %27, %33 : vector<288x128xf32>
    %c0_28 = arith.constant 0 : index
    %c19 = arith.constant 19 : index
    %c0_29 = arith.constant 0 : index
    %35 = vector.load %arg1[%c0_28, %c19, %c0_29] : memref<1x328x4xf32, #tpu.memory_space<vmem>>, vector<1x288x4xf32>
    %36 = vector.shape_cast %35 : vector<1x288x4xf32> to vector<288x4xf32>
    %37 = arith.truncf %36 : vector<288x4xf32> to vector<288x4xbf16>
    %c4 = arith.constant 4 : index
    %c0_30 = arith.constant 0 : index
    %c0_31 = arith.constant 0 : index
    %38 = vector.load %arg2[%c4, %c0_30, %c0_31] : memref<9x4x128xbf16, #tpu.memory_space<vmem>>, vector<1x4x128xbf16>
    %39 = vector.shape_cast %38 : vector<1x4x128xbf16> to vector<4x128xbf16>
    %cst_32 = arith.constant dense<0.000000e+00> : vector<288x128xf32>
    %40 = tpu.matmul %37, %39, %cst_32 {dimension_numbers = #tpu.dot_dimension_numbers<[1], [0], [0], [1], [0, 0, 1, 1], [], []>} : vector<288x4xbf16>, vector<4x128xbf16>, vector<288x128xf32> -> vector<288x128xf32>
    %41 = arith.addf %34, %40 : vector<288x128xf32>
    %c0_33 = arith.constant 0 : index
    %c20 = arith.constant 20 : index
    %c0_34 = arith.constant 0 : index
    %42 = vector.load %arg1[%c0_33, %c20, %c0_34] : memref<1x328x4xf32, #tpu.memory_space<vmem>>, vector<1x288x4xf32>
    %43 = vector.shape_cast %42 : vector<1x288x4xf32> to vector<288x4xf32>
    %44 = arith.truncf %43 : vector<288x4xf32> to vector<288x4xbf16>
    %c5 = arith.constant 5 : index
    %c0_35 = arith.constant 0 : index
    %c0_36 = arith.constant 0 : index
    %45 = vector.load %arg2[%c5, %c0_35, %c0_36] : memref<9x4x128xbf16, #tpu.memory_space<vmem>>, vector<1x4x128xbf16>
    %46 = vector.shape_cast %45 : vector<1x4x128xbf16> to vector<4x128xbf16>
    %cst_37 = arith.constant dense<0.000000e+00> : vector<288x128xf32>
    %47 = tpu.matmul %44, %46, %cst_37 {dimension_numbers = #tpu.dot_dimension_numbers<[1], [0], [0], [1], [0, 0, 1, 1], [], []>} : vector<288x4xbf16>, vector<4x128xbf16>, vector<288x128xf32> -> vector<288x128xf32>
    %48 = arith.addf %41, %47 : vector<288x128xf32>
    %c0_38 = arith.constant 0 : index
    %c36 = arith.constant 36 : index
    %c0_39 = arith.constant 0 : index
    %49 = vector.load %arg1[%c0_38, %c36, %c0_39] : memref<1x328x4xf32, #tpu.memory_space<vmem>>, vector<1x288x4xf32>
    %50 = vector.shape_cast %49 : vector<1x288x4xf32> to vector<288x4xf32>
    %51 = arith.truncf %50 : vector<288x4xf32> to vector<288x4xbf16>
    %c6 = arith.constant 6 : index
    %c0_40 = arith.constant 0 : index
    %c0_41 = arith.constant 0 : index
    %52 = vector.load %arg2[%c6, %c0_40, %c0_41] : memref<9x4x128xbf16, #tpu.memory_space<vmem>>, vector<1x4x128xbf16>
    %53 = vector.shape_cast %52 : vector<1x4x128xbf16> to vector<4x128xbf16>
    %cst_42 = arith.constant dense<0.000000e+00> : vector<288x128xf32>
    %54 = tpu.matmul %51, %53, %cst_42 {dimension_numbers = #tpu.dot_dimension_numbers<[1], [0], [0], [1], [0, 0, 1, 1], [], []>} : vector<288x4xbf16>, vector<4x128xbf16>, vector<288x128xf32> -> vector<288x128xf32>
    %55 = arith.addf %48, %54 : vector<288x128xf32>
    %c0_43 = arith.constant 0 : index
    %c37 = arith.constant 37 : index
    %c0_44 = arith.constant 0 : index
    %56 = vector.load %arg1[%c0_43, %c37, %c0_44] : memref<1x328x4xf32, #tpu.memory_space<vmem>>, vector<1x288x4xf32>
    %57 = vector.shape_cast %56 : vector<1x288x4xf32> to vector<288x4xf32>
    %58 = arith.truncf %57 : vector<288x4xf32> to vector<288x4xbf16>
    %c7 = arith.constant 7 : index
    %c0_45 = arith.constant 0 : index
    %c0_46 = arith.constant 0 : index
    %59 = vector.load %arg2[%c7, %c0_45, %c0_46] : memref<9x4x128xbf16, #tpu.memory_space<vmem>>, vector<1x4x128xbf16>
    %60 = vector.shape_cast %59 : vector<1x4x128xbf16> to vector<4x128xbf16>
    %cst_47 = arith.constant dense<0.000000e+00> : vector<288x128xf32>
    %61 = tpu.matmul %58, %60, %cst_47 {dimension_numbers = #tpu.dot_dimension_numbers<[1], [0], [0], [1], [0, 0, 1, 1], [], []>} : vector<288x4xbf16>, vector<4x128xbf16>, vector<288x128xf32> -> vector<288x128xf32>
    %62 = arith.addf %55, %61 : vector<288x128xf32>
    %c0_48 = arith.constant 0 : index
    %c38 = arith.constant 38 : index
    %c0_49 = arith.constant 0 : index
    %63 = vector.load %arg1[%c0_48, %c38, %c0_49] : memref<1x328x4xf32, #tpu.memory_space<vmem>>, vector<1x288x4xf32>
    %64 = vector.shape_cast %63 : vector<1x288x4xf32> to vector<288x4xf32>
    %65 = arith.truncf %64 : vector<288x4xf32> to vector<288x4xbf16>
    %c8 = arith.constant 8 : index
    %c0_50 = arith.constant 0 : index
    %c0_51 = arith.constant 0 : index
    %66 = vector.load %arg2[%c8, %c0_50, %c0_51] : memref<9x4x128xbf16, #tpu.memory_space<vmem>>, vector<1x4x128xbf16>
    %67 = vector.shape_cast %66 : vector<1x4x128xbf16> to vector<4x128xbf16>
    %cst_52 = arith.constant dense<0.000000e+00> : vector<288x128xf32>
    %68 = tpu.matmul %65, %67, %cst_52 {dimension_numbers = #tpu.dot_dimension_numbers<[1], [0], [0], [1], [0, 0, 1, 1], [], []>} : vector<288x4xbf16>, vector<4x128xbf16>, vector<288x128xf32> -> vector<288x128xf32>
    %69 = arith.addf %62, %68 : vector<288x128xf32>
    %70 = arith.truncf %69 : vector<288x128xf32> to vector<288x128xbf16>
    %c0_53 = arith.constant 0 : index
    %c0_54 = arith.constant 0 : index
    %71 = vector.load %arg4[%c0_53, %c0_54] : memref<288x128xbf16, #tpu.memory_space<vmem>>, vector<288x128xbf16>
    tpu.vector_store %arg4[%c0_53, %c0_54], %70 {strides = array<i32>} : memref<288x128xbf16, #tpu.memory_space<vmem>>, vector<288x128xbf16>,
    %72 = vector.broadcast %3 : vector<288x1xf32> to vector<288x128xf32>
    %73 = arith.mulf %69, %72 : vector<288x128xf32>
    %cst_55 = arith.constant dense<0.000000e+00> : vector<128xf32>
    %74 = vector.multi_reduction <add>, %73, %cst_55 [0] : vector<288x128xf32> to vector<128xf32>
    %75 = vector.shape_cast %74 : vector<128xf32> to vector<1x128xf32>
    %76 = arith.addf %4, %75 : vector<1x128xf32>
    %77 = arith.mulf %69, %73 : vector<288x128xf32>
    %cst_56 = arith.constant dense<0.000000e+00> : vector<128xf32>
    %78 = vector.multi_reduction <add>, %77, %cst_56 [0] : vector<288x128xf32> to vector<128xf32>
    %79 = vector.shape_cast %78 : vector<128xf32> to vector<1x128xf32>
    %80 = arith.addf %5, %79 : vector<1x128xf32>
    %c0_57 = arith.constant 0 : index
    %c0_58 = arith.constant 0 : index
    %81 = vector.load %arg5[%c0_57, %c0_58] : memref<1x128xf32, #tpu.memory_space<vmem>>, vector<1x128xf32>
    %82 = arith.addf %81, %76 : vector<1x128xf32>
    %c0_59 = arith.constant 0 : index
    %c0_60 = arith.constant 0 : index
    %83 = vector.load %arg5[%c0_59, %c0_60] : memref<1x128xf32, #tpu.memory_space<vmem>>, vector<1x128xf32>
    tpu.vector_store %arg5[%c0_59, %c0_60], %82 {strides = array<i32>} : memref<1x128xf32, #tpu.memory_space<vmem>>, vector<1x128xf32>,
    %c0_61 = arith.constant 0 : index
    %c0_62 = arith.constant 0 : index
    %84 = vector.load %arg6[%c0_61, %c0_62] : memref<1x128xf32, #tpu.memory_space<vmem>>, vector<1x128xf32>
    %85 = arith.addf %84, %80 : vector<1x128xf32>
    %c0_63 = arith.constant 0 : index
    %c0_64 = arith.constant 0 : index
    %86 = vector.load %arg6[%c0_63, %c0_64] : memref<1x128xf32, #tpu.memory_space<vmem>>, vector<1x128xf32>
    tpu.vector_store %arg6[%c0_63, %c0_64], %85 {strides = array<i32>} : memref<1x128xf32, #tpu.memory_space<vmem>>, vector<1x128xf32>,
    return
  }
  func.func @transform_0(%arg0: i32) -> (i32, i32, i32) {
    %c0_i32 = arith.constant 0 : i32
    %c0_i32_0 = arith.constant 0 : i32
    %c0_i32_1 = arith.constant 0 : i32
    return %arg0, %c0_i32, %c0_i32_0 : i32, i32, i32
  }
  func.func @transform_1(%arg0: i32) -> (i32, i32, i32) {
    %c0_i32 = arith.constant 0 : i32
    %c0_i32_0 = arith.constant 0 : i32
    %c0_i32_1 = arith.constant 0 : i32
    %c0_i32_2 = arith.constant 0 : i32
    return %c0_i32, %c0_i32_0, %c0_i32_1 : i32, i32, i32
  }
  func.func @transform_2(%arg0: i32) -> (i32, i32) {
    %c0_i32 = arith.constant 0 : i32
    %c0_i32_0 = arith.constant 0 : i32
    %c0_i32_1 = arith.constant 0 : i32
    return %c0_i32, %c0_i32_0 : i32, i32
  }
  func.func @transform_3(%arg0: i32) -> (i32, i32) {
    %c0_i32 = arith.constant 0 : i32
    %c0_i32_0 = arith.constant 0 : i32
    return %arg0, %c0_i32 : i32, i32
  }
  func.func @transform_4(%arg0: i32) -> (i32, i32) {
    %c0_i32 = arith.constant 0 : i32
    %c0_i32_0 = arith.constant 0 : i32
    %c0_i32_1 = arith.constant 0 : i32
    return %c0_i32, %c0_i32_0 : i32, i32
  }
  func.func @transform_5(%arg0: i32) -> (i32, i32) {
    %c0_i32 = arith.constant 0 : i32
    %c0_i32_0 = arith.constant 0 : i32
    %c0_i32_1 = arith.constant 0 : i32
    return %c0_i32, %c0_i32_0 : i32, i32
  }
}

module attributes {stable_mosaic.version = 11 : i64} {
  func.func @_bn_act_kernel(%arg0: i32, %arg1: memref<288x128xbf16, #tpu.memory_space<vmem>>, %arg2: memref<1x128xf32, #tpu.memory_space<vmem>>, %arg3: memref<1x128xf32, #tpu.memory_space<vmem>>, %arg4: memref<288x128xbf16, #tpu.memory_space<vmem>>) attributes {dimension_semantics = [#tpu.dimension_semantics<parallel>], iteration_bounds = array<i64: 2>, scalar_prefetch = 0 : i64, scratch_operands = 0 : i64, tpu.core_type = #tpu.core_type<tc>, window_params = [{transform_indices = @transform_0, window_bounds = array<i64: 288, 128>}, {pipeline_mode = #tpu.pipeline_mode<synchronous>, transform_indices = @transform_1, window_bounds = array<i64: 1, 128>}, {pipeline_mode = #tpu.pipeline_mode<synchronous>, transform_indices = @transform_2, window_bounds = array<i64: 1, 128>}, {transform_indices = @transform_3, window_bounds = array<i64: 288, 128>}]} {
    %c0 = arith.constant 0 : index
    %c0_0 = arith.constant 0 : index
    %0 = vector.load %arg1[%c0, %c0_0] : memref<288x128xbf16, #tpu.memory_space<vmem>>, vector<288x128xbf16>
    %1 = arith.extf %0 : vector<288x128xbf16> to vector<288x128xf32>
    %c0_1 = arith.constant 0 : index
    %c0_2 = arith.constant 0 : index
    %2 = vector.load %arg2[%c0_1, %c0_2] : memref<1x128xf32, #tpu.memory_space<vmem>>, vector<1x128xf32>
    %3 = vector.broadcast %2 : vector<1x128xf32> to vector<288x128xf32>
    %4 = arith.mulf %1, %3 : vector<288x128xf32>
    %c0_3 = arith.constant 0 : index
    %c0_4 = arith.constant 0 : index
    %5 = vector.load %arg3[%c0_3, %c0_4] : memref<1x128xf32, #tpu.memory_space<vmem>>, vector<1x128xf32>
    %6 = vector.broadcast %5 : vector<1x128xf32> to vector<288x128xf32>
    %7 = arith.addf %4, %6 : vector<288x128xf32>
    %cst = arith.constant 0.000000e+00 : f32
    %8 = vector.broadcast %cst : f32 to vector<288x128xf32>
    %9 = arith.maximumf %7, %8 : vector<288x128xf32>
    %10 = arith.truncf %9 : vector<288x128xf32> to vector<288x128xbf16>
    %c0_5 = arith.constant 0 : index
    %c0_6 = arith.constant 0 : index
    %11 = vector.load %arg4[%c0_5, %c0_6] : memref<288x128xbf16, #tpu.memory_space<vmem>>, vector<288x128xbf16>
    tpu.vector_store %arg4[%c0_5, %c0_6], %10 {strides = array<i32>} : memref<288x128xbf16, #tpu.memory_space<vmem>>, vector<288x128xbf16>,
    return
  }
  func.func @transform_0(%arg0: i32) -> (i32, i32) {
    %c0_i32 = arith.constant 0 : i32
    %c0_i32_0 = arith.constant 0 : i32
    return %arg0, %c0_i32 : i32, i32
  }
  func.func @transform_1(%arg0: i32) -> (i32, i32) {
    %c0_i32 = arith.constant 0 : i32
    %c0_i32_0 = arith.constant 0 : i32
    %c0_i32_1 = arith.constant 0 : i32
    return %c0_i32, %c0_i32_0 : i32, i32
  }
  func.func @transform_2(%arg0: i32) -> (i32, i32) {
    %c0_i32 = arith.constant 0 : i32
    %c0_i32_0 = arith.constant 0 : i32
    %c0_i32_1 = arith.constant 0 : i32
    return %c0_i32, %c0_i32_0 : i32, i32
  }
  func.func @transform_3(%arg0: i32) -> (i32, i32) {
    %c0_i32 = arith.constant 0 : i32
    %c0_i32_0 = arith.constant 0 : i32
    return %arg0, %c0_i32 : i32, i32
  }
}

module attributes {stable_mosaic.version = 11 : i64} {
  func.func @_bn_act_add_kernel(%arg0: i32, %arg1: memref<288x128xbf16, #tpu.memory_space<vmem>>, %arg2: memref<1x128xf32, #tpu.memory_space<vmem>>, %arg3: memref<1x128xf32, #tpu.memory_space<vmem>>, %arg4: memref<288x128xbf16, #tpu.memory_space<vmem>>, %arg5: memref<288x128xf32, #tpu.memory_space<vmem>>) attributes {dimension_semantics = [#tpu.dimension_semantics<parallel>], iteration_bounds = array<i64: 2>, scalar_prefetch = 0 : i64, scratch_operands = 0 : i64, tpu.core_type = #tpu.core_type<tc>, window_params = [{transform_indices = @transform_0, window_bounds = array<i64: 288, 128>}, {pipeline_mode = #tpu.pipeline_mode<synchronous>, transform_indices = @transform_1, window_bounds = array<i64: 1, 128>}, {pipeline_mode = #tpu.pipeline_mode<synchronous>, transform_indices = @transform_2, window_bounds = array<i64: 1, 128>}, {transform_indices = @transform_3, window_bounds = array<i64: 288, 128>}, {transform_indices = @transform_4, window_bounds = array<i64: 288, 128>}]} {
    %c0 = arith.constant 0 : index
    %c0_0 = arith.constant 0 : index
    %0 = vector.load %arg1[%c0, %c0_0] : memref<288x128xbf16, #tpu.memory_space<vmem>>, vector<288x128xbf16>
    %1 = arith.extf %0 : vector<288x128xbf16> to vector<288x128xf32>
    %c0_1 = arith.constant 0 : index
    %c0_2 = arith.constant 0 : index
    %2 = vector.load %arg2[%c0_1, %c0_2] : memref<1x128xf32, #tpu.memory_space<vmem>>, vector<1x128xf32>
    %3 = vector.broadcast %2 : vector<1x128xf32> to vector<288x128xf32>
    %4 = arith.mulf %1, %3 : vector<288x128xf32>
    %c0_3 = arith.constant 0 : index
    %c0_4 = arith.constant 0 : index
    %5 = vector.load %arg3[%c0_3, %c0_4] : memref<1x128xf32, #tpu.memory_space<vmem>>, vector<1x128xf32>
    %6 = vector.broadcast %5 : vector<1x128xf32> to vector<288x128xf32>
    %7 = arith.addf %4, %6 : vector<288x128xf32>
    %c0_5 = arith.constant 0 : index
    %c0_6 = arith.constant 0 : index
    %8 = vector.load %arg4[%c0_5, %c0_6] : memref<288x128xbf16, #tpu.memory_space<vmem>>, vector<288x128xbf16>
    %9 = arith.extf %8 : vector<288x128xbf16> to vector<288x128xf32>
    %10 = arith.addf %7, %9 : vector<288x128xf32>
    %cst = arith.constant 0.000000e+00 : f32
    %11 = vector.broadcast %cst : f32 to vector<288x128xf32>
    %12 = arith.maximumf %10, %11 : vector<288x128xf32>
    %c0_7 = arith.constant 0 : index
    %c0_8 = arith.constant 0 : index
    %13 = vector.load %arg5[%c0_7, %c0_8] : memref<288x128xf32, #tpu.memory_space<vmem>>, vector<288x128xf32>
    tpu.vector_store %arg5[%c0_7, %c0_8], %12 {strides = array<i32>} : memref<288x128xf32, #tpu.memory_space<vmem>>, vector<288x128xf32>,
    return
  }
  func.func @transform_0(%arg0: i32) -> (i32, i32) {
    %c0_i32 = arith.constant 0 : i32
    %c0_i32_0 = arith.constant 0 : i32
    return %arg0, %c0_i32 : i32, i32
  }
  func.func @transform_1(%arg0: i32) -> (i32, i32) {
    %c0_i32 = arith.constant 0 : i32
    %c0_i32_0 = arith.constant 0 : i32
    %c0_i32_1 = arith.constant 0 : i32
    return %c0_i32, %c0_i32_0 : i32, i32
  }
  func.func @transform_2(%arg0: i32) -> (i32, i32) {
    %c0_i32 = arith.constant 0 : i32
    %c0_i32_0 = arith.constant 0 : i32
    %c0_i32_1 = arith.constant 0 : i32
    return %c0_i32, %c0_i32_0 : i32, i32
  }
  func.func @transform_3(%arg0: i32) -> (i32, i32) {
    %c0_i32 = arith.constant 0 : i32
    %c0_i32_0 = arith.constant 0 : i32
    return %arg0, %c0_i32 : i32, i32
  }
  func.func @transform_4(%arg0: i32) -> (i32, i32) {
    %c0_i32 = arith.constant 0 : i32
    %c0_i32_0 = arith.constant 0 : i32
    return %arg0, %c0_i32 : i32, i32
  }
}

</mosaic_0001>

<bundles_post_ra>
// kernel: basic_block_forward.5
= control target key start
LH: loop header
LB: loop body
LE: loop exit
PB: predicated region body
PF: predicated region fallthrough
CT: control target
= control target key end

     0   :  { %s919_s12 = smov 0   ;;  %s1065_s0 = inlined_call_operand.vmem [shape: bf16[576,128], index: 0, kind: input, shape index: {}]   ;;  %s1066_s1 = inlined_call_operand.vmem [shape: f32[1,128], index: 1, kind: input, shape index: {}]   ;;  %s1067_s2 = inlined_call_operand.vmem [shape: f32[1,128], index: 2, kind: input, shape index: {}]   ;;  %s1068_s3 = inlined_call_operand.vmem [shape: bf16[576,128], index: 3, kind: output, shape index: {}]  }
   0x1 LB: > { %s604_s13 = sadd.s32 4294967295, %s897_s12   ;;  %p608_p0 = scmp.ge.s32.totalorder %s897_s12, 1  ;;  %s897_s12 = sphi %s919_s12, %s13_s12  }
   0x2   : > { %p138_p1 = scmp.lt.s32.totalorder %s897_s12, 3 }
   0x4   : > { %p139_p2 = pnand %p608_p0, %p138_p1 }
   0x5   : > { %s162_s14 = smul.u32 (!%p139_p2), 36, %s604_s13 }
   0x6   : > { %142 = sbr.rel (%p139_p2) target bundleno = 62 (0x3e), region = 32 }
   0x7   : > { %p163_p3 = scmp.lt.s32.totalorder (!%p139_p2), %s162_s14, 71 }
   0xb   : > { %s1070_s14 = smov (!%p163_p3, %s162_s14), 71  ;;  %v940_v0 = vld [vmem:[%s1066_s1] ss:$0 sm:$0xff] }
   0xc   : > { %s609_s15 = sshll.u32 %s1070_s14, 2  ;;  %v949_v9 = vld [vmem:[%s1067_s2] ss:$0 sm:$0xff] }
   0xd   : > { %s935_s18 = scalar_lea.vmem %s1065_s0, %s609_s15  ;;  %s974_s25 = scalar_lea.vmem %s1068_s3, %s609_s15 }
   0xe   : > { %v688_v1 = vld [vmem:[%s935_s18] sm:$0xff]   ;;  %v849_v2 = vld [vmem:[%s935_s18 + $0x8] sm:$0xff]   ;;  %v850_v3 = vld [vmem:[%s935_s18 + $0x10] sm:$0xff]  }
   0xf   : > { %v689_v4 = vunpack.c.l.bf16 %v688_v1  ;;  %v690_v5 = vunpack.c.h.bf16 %v688_v1  ;;  %v693_v6 = vunpack.c.l.bf16 %v849_v2  ;;  %v694_v7 = vunpack.c.h.bf16 %v849_v2  ;;  %v851_v8 = vld [vmem:[%s935_s18 + $0x18] sm:$0xff]   ;;  %v852_v30 = vld [vmem:[%s935_s18 + $0x20] sm:$0xff]   ;;  %v853_v35 = vld [vmem:[%s935_s18 + $0x28] sm:$0xff]  }
  0x10   : > { %v697_v10 = vunpack.c.l.bf16 %v850_v3  ;;  %v698_v11 = vunpack.c.h.bf16 %v850_v3  ;;  %v701_v12 = vunpack.c.l.bf16 %v851_v8  ;;  %v702_v13 = vunpack.c.h.bf16 %v851_v8  ;;  %v854_v40 = vld [vmem:[%s935_s18 + $0x30] sm:$0xff]   ;;  %v855_v45 = vld [vmem:[%s935_s18 + $0x38] sm:$0xff]   ;;  %v856_v3 = vld [vmem:[%s935_s18 + $0x40] sm:$0xff]  }
  0x11   : > { %v253_v14 = vmul.f32 %v689_v4, %v940_v0  ;;  %v254_v15 = vmul.f32 %v690_v5, %v940_v0  ;;  %v255_v16 = vmul.f32 %v693_v6, %v940_v0  ;;  %v256_v17 = vmul.f32 %v694_v7, %v940_v0 }
  0x12   : > { %v257_v18 = vmul.f32 %v697_v10, %v940_v0  ;;  %v258_v19 = vmul.f32 %v698_v11, %v940_v0  ;;  %v259_v20 = vmul.f32 %v701_v12, %v940_v0  ;;  %v260_v21 = vmul.f32 %v702_v13, %v940_v0  ;;  %v857_v13 = vld [vmem:[%s935_s18 + $0x48] sm:$0xff]  }
  0x13   : > { %v296_v22 = vadd.f32 %v949_v9, %v253_v14  ;;  %v297_v23 = vadd.f32 %v949_v9, %v254_v15  ;;  %v298_v24 = vadd.f32 %v949_v9, %v255_v16  ;;  %v299_v25 = vadd.f32 %v949_v9, %v256_v17 }
  0x14   : > { %v300_v26 = vadd.f32 %v949_v9, %v257_v18  ;;  %v301_v27 = vadd.f32 %v949_v9, %v258_v19  ;;  %v302_v28 = vadd.f32 %v949_v9, %v259_v20  ;;  %v303_v29 = vadd.f32 %v949_v9, %v260_v21  ;;  %v858_v18 = vld [vmem:[%s935_s18 + $0x50] sm:$0xff]  }
  0x15   : > { %v332_v31 = vmax.f32 %v296_v22, 0.0  ;;  %v333_v32 = vmax.f32 %v297_v23, 0.0  ;;  %v334_v33 = vmax.f32 %v298_v24, 0.0  ;;  %v335_v34 = vmax.f32 %v299_v25, 0.0  ;;  %v859_v23 = vld [vmem:[%s935_s18 + $0x58] sm:$0xff]  }
  0x16   : > { %v336_v36 = vmax.f32 %v300_v26, 0.0  ;;  %v337_v37 = vmax.f32 %v301_v27, 0.0  ;;  %v338_v38 = vmax.f32 %v302_v28, 0.0  ;;  %v339_v39 = vmax.f32 %v303_v29, 0.0 }
  0x17   : > { %v762_v41 = vpack.c.bf16 %v333_v32, %v332_v31  ;;  %v767_v42 = vpack.c.bf16 %v335_v34, %v334_v33  ;;  %v705_v43 = vunpack.c.l.bf16 %v852_v30  ;;  %v706_v44 = vunpack.c.h.bf16 %v852_v30 }
  0x18   : > { %v772_v46 = vpack.c.bf16 %v337_v37, %v336_v36  ;;  %v777_v47 = vpack.c.bf16 %v339_v39, %v338_v38  ;;  %v709_v48 = vunpack.c.l.bf16 %v853_v35  ;;  %v710_v49 = vunpack.c.h.bf16 %v853_v35 }
  0x19   : > { %763 = vst [vmem:[%s974_s25] sm:$0xff] %v762_v41   ;;  %866 = vst [vmem:[%s974_s25 + $0x8] sm:$0xff] %v767_v42   ;;  %v261_v50 = vmul.f32 %v705_v43, %v940_v0  ;;  %v262_v51 = vmul.f32 %v706_v44, %v940_v0  ;;  %v713_v52 = vunpack.c.l.bf16 %v854_v40  ;;  %v714_v53 = vunpack.c.h.bf16 %v854_v40  ;;  %v860_v40 = vld [vmem:[%s935_s18 + $0x60] sm:$0xff]  }
  0x1a   : > { %867 = vst [vmem:[%s974_s25 + $0x10] sm:$0xff] %v772_v46   ;;  %868 = vst [vmem:[%s974_s25 + $0x18] sm:$0xff] %v777_v47   ;;  %v263_v54 = vmul.f32 %v709_v48, %v940_v0  ;;  %v264_v55 = vmul.f32 %v710_v49, %v940_v0  ;;  %v717_v56 = vunpack.c.l.bf16 %v855_v45  ;;  %v718_v57 = vunpack.c.h.bf16 %v855_v45 }
  0x1b   : > { %v304_v58 = vadd.f32 %v949_v9, %v261_v50  ;;  %v305_v59 = vadd.f32 %v949_v9, %v262_v51  ;;  %v265_v60 = vmul.f32 %v713_v52, %v940_v0  ;;  %v266_v61 = vmul.f32 %v714_v53, %v940_v0  ;;  %v861_v53 = vld [vmem:[%s935_s18 + $0x68] sm:$0xff]  }
  0x1c   : > { %v306_v62 = vadd.f32 %v949_v9, %v263_v54  ;;  %v307_v63 = vadd.f32 %v949_v9, %v264_v55  ;;  %v267_v1 = vmul.f32 %v717_v56, %v940_v0  ;;  %v268_v2 = vmul.f32 %v718_v57, %v940_v0 }
  0x1d   : > { %v340_v4 = vmax.f32 %v304_v58, 0.0  ;;  %v341_v5 = vmax.f32 %v305_v59, 0.0  ;;  %v308_v6 = vadd.f32 %v949_v9, %v265_v60  ;;  %v309_v7 = vadd.f32 %v949_v9, %v266_v61  ;;  %v862_v58 = vld [vmem:[%s935_s18 + $0x70] sm:$0xff]  }
  0x1e   : > { %v342_v8 = vmax.f32 %v306_v62, 0.0  ;;  %v343_v10 = vmax.f32 %v307_v63, 0.0  ;;  %v310_v11 = vadd.f32 %v949_v9, %v267_v1  ;;  %v311_v12 = vadd.f32 %v949_v9, %v268_v2  ;;  %v863_v63 = vld [vmem:[%s935_s18 + $0x78] sm:$0xff]  }
  0x1f   : > { %v782_v14 = vpack.c.bf16 %v341_v5, %v340_v4  ;;  %v344_v15 = vmax.f32 %v308_v6, 0.0  ;;  %v345_v16 = vmax.f32 %v309_v7, 0.0  ;;  %v721_v17 = vunpack.c.l.bf16 %v856_v3 }
  0x20   : > { %v787_v19 = vpack.c.bf16 %v343_v10, %v342_v8  ;;  %v346_v20 = vmax.f32 %v310_v11, 0.0  ;;  %v347_v21 = vmax.f32 %v311_v12, 0.0  ;;  %v722_v22 = vunpack.c.h.bf16 %v856_v3 }
  0x21   : > { %869 = vst [vmem:[%s974_s25 + $0x20] sm:$0xff] %v782_v14   ;;  %v792_v24 = vpack.c.bf16 %v345_v16, %v344_v15  ;;  %v269_v25 = vmul.f32 %v721_v17, %v940_v0  ;;  %v725_v26 = vunpack.c.l.bf16 %v857_v13  ;;  %v726_v27 = vunpack.c.h.bf16 %v857_v13  ;;  %v864_v14 = vld [vmem:[%s935_s18 + $0x80] sm:$0xff]  }
  0x22   : > { %870 = vst [vmem:[%s974_s25 + $0x28] sm:$0xff] %v787_v19   ;;  %v797_v28 = vpack.c.bf16 %v347_v21, %v346_v20  ;;  %v270_v29 = vmul.f32 %v722_v22, %v940_v0  ;;  %v729_v30 = vunpack.c.l.bf16 %v858_v18  ;;  %v730_v31 = vunpack.c.h.bf16 %v858_v18 }
  0x23   : > { %871 = vst [vmem:[%s974_s25 + $0x30] sm:$0xff] %v792_v24   ;;  %v312_v32 = vadd.f32 %v949_v9, %v269_v25  ;;  %v271_v33 = vmul.f32 %v725_v26, %v940_v0  ;;  %v272_v34 = vmul.f32 %v726_v27, %v940_v0  ;;  %v733_v35 = vunpack.c.l.bf16 %v859_v23 }
  0x24   : > { %872 = vst [vmem:[%s974_s25 + $0x38] sm:$0xff] %v797_v28   ;;  %v313_v36 = vadd.f32 %v949_v9, %v270_v29  ;;  %v273_v37 = vmul.f32 %v729_v30, %v940_v0  ;;  %v274_v38 = vmul.f32 %v730_v31, %v940_v0  ;;  %v734_v39 = vunpack.c.h.bf16 %v859_v23  ;;  %v865_v31 = vld [vmem:[%s935_s18 + $0x88] sm:$0xff]  }
  0x25   : > { %v348_v41 = vmax.f32 %v312_v32, 0.0  ;;  %v314_v42 = vadd.f32 %v949_v9, %v271_v33  ;;  %v315_v43 = vadd.f32 %v949_v9, %v272_v34  ;;  %v275_v44 = vmul.f32 %v733_v35, %v940_v0 }
  0x26   : > { %v349_v45 = vmax.f32 %v313_v36, 0.0  ;;  %v316_v46 = vadd.f32 %v949_v9, %v273_v37  ;;  %v317_v47 = vadd.f32 %v949_v9, %v274_v38  ;;  %v276_v48 = vmul.f32 %v734_v39, %v940_v0 }
  0x27   : > { %v350_v49 = vmax.f32 %v314_v42, 0.0  ;;  %v351_v50 = vmax.f32 %v315_v43, 0.0  ;;  %v318_v51 = vadd.f32 %v949_v9, %v275_v44  ;;  %v737_v52 = vunpack.c.l.bf16 %v860_v40 }
  0x28   : > { %v802_v54 = vpack.c.bf16 %v349_v45, %v348_v41  ;;  %v352_v55 = vmax.f32 %v316_v46, 0.0  ;;  %v353_v56 = vmax.f32 %v317_v47, 0.0  ;;  %v319_v57 = vadd.f32 %v949_v9, %v276_v48 }
  0x29   : > { %v807_v59 = vpack.c.bf16 %v351_v50, %v350_v49  ;;  %v354_v60 = vmax.f32 %v318_v51, 0.0  ;;  %v738_v61 = vunpack.c.h.bf16 %v860_v40  ;;  %v277_v62 = vmul.f32 %v737_v52, %v940_v0 }
  0x2a   : > { %873 = vst [vmem:[%s974_s25 + $0x40] sm:$0xff] %v802_v54   ;;  %v812_v1 = vpack.c.bf16 %v353_v56, %v352_v55  ;;  %v355_v2 = vmax.f32 %v319_v57, 0.0  ;;  %v741_v3 = vunpack.c.l.bf16 %v861_v53  ;;  %v742_v4 = vunpack.c.h.bf16 %v861_v53 }
  0x2b   : > { %874 = vst [vmem:[%s974_s25 + $0x48] sm:$0xff] %v807_v59   ;;  %v278_v5 = vmul.f32 %v738_v61, %v940_v0  ;;  %v320_v6 = vadd.f32 %v949_v9, %v277_v62  ;;  %v745_v7 = vunpack.c.l.bf16 %v862_v58  ;;  %v746_v8 = vunpack.c.h.bf16 %v862_v58 }
  0x2c   : > { %875 = vst [vmem:[%s974_s25 + $0x50] sm:$0xff] %v812_v1   ;;  %v817_v10 = vpack.c.bf16 %v355_v2, %v354_v60  ;;  %v279_v11 = vmul.f32 %v741_v3, %v940_v0  ;;  %v280_v12 = vmul.f32 %v742_v4, %v940_v0  ;;  %v749_v13 = vunpack.c.l.bf16 %v863_v63 }
  0x2d   : > { %v321_v15 = vadd.f32 %v949_v9, %v278_v5  ;;  %v356_v16 = vmax.f32 %v320_v6, 0.0  ;;  %v281_v17 = vmul.f32 %v745_v7, %v940_v0  ;;  %v282_v18 = vmul.f32 %v746_v8, %v940_v0 }
  0x2e   : > { %876 = vst [vmem:[%s974_s25 + $0x58] sm:$0xff] %v817_v10   ;;  %v322_v19 = vadd.f32 %v949_v9, %v279_v11  ;;  %v323_v20 = vadd.f32 %v949_v9, %v280_v12  ;;  %v750_v21 = vunpack.c.h.bf16 %v863_v63  ;;  %v283_v22 = vmul.f32 %v749_v13, %v940_v0 }
  0x2f   : > { %v357_v23 = vmax.f32 %v321_v15, 0.0  ;;  %v324_v24 = vadd.f32 %v949_v9, %v281_v17  ;;  %v325_v25 = vadd.f32 %v949_v9, %v282_v18  ;;  %v753_v26 = vunpack.c.l.bf16 %v864_v14 }
  0x30   : > { %v358_v27 = vmax.f32 %v322_v19, 0.0  ;;  %v359_v28 = vmax.f32 %v323_v20, 0.0  ;;  %v284_v29 = vmul.f32 %v750_v21, %v940_v0  ;;  %v326_v30 = vadd.f32 %v949_v9, %v283_v22 }
  0x31   : > { %v822_v32 = vpack.c.bf16 %v357_v23, %v356_v16  ;;  %v360_v33 = vmax.f32 %v324_v24, 0.0  ;;  %v361_v34 = vmax.f32 %v325_v25, 0.0  ;;  %v754_v35 = vunpack.c.h.bf16 %v864_v14 }
  0x32   : > { %v827_v36 = vpack.c.bf16 %v359_v28, %v358_v27  ;;  %v327_v37 = vadd.f32 %v949_v9, %v284_v29  ;;  %v362_v38 = vmax.f32 %v326_v30, 0.0  ;;  %v285_v39 = vmul.f32 %v753_v26, %v940_v0 }
  0x33   : > { %877 = vst [vmem:[%s974_s25 + $0x60] sm:$0xff] %v822_v32   ;;  %v832_v40 = vpack.c.bf16 %v361_v34, %v360_v33  ;;  %v286_v41 = vmul.f32 %v754_v35, %v940_v0  ;;  %v757_v42 = vunpack.c.l.bf16 %v865_v31  ;;  %v758_v43 = vunpack.c.h.bf16 %v865_v31 }
  0x34   : > { %878 = vst [vmem:[%s974_s25 + $0x68] sm:$0xff] %v827_v36   ;;  %v363_v44 = vmax.f32 %v327_v37, 0.0  ;;  %v328_v45 = vadd.f32 %v949_v9, %v285_v39 }
  0x35   : > { %879 = vst [vmem:[%s974_s25 + $0x70] sm:$0xff] %v832_v40   ;;  %v329_v46 = vadd.f32 %v949_v9, %v286_v41  ;;  %v287_v47 = vmul.f32 %v757_v42, %v940_v0  ;;  %v288_v48 = vmul.f32 %v758_v43, %v940_v0 }
  0x36   : > { %v837_v49 = vpack.c.bf16 %v363_v44, %v362_v38  ;;  %v364_v50 = vmax.f32 %v328_v45, 0.0 }
  0x37   : > { %v365_v51 = vmax.f32 %v329_v46, 0.0  ;;  %v330_v52 = vadd.f32 %v949_v9, %v287_v47  ;;  %v331_v53 = vadd.f32 %v949_v9, %v288_v48 }
  0x38   : > { %880 = vst [vmem:[%s974_s25 + $0x78] sm:$0xff] %v837_v49  }
  0x39   : > { %v842_v54 = vpack.c.bf16 %v365_v51, %v364_v50  ;;  %v366_v55 = vmax.f32 %v330_v52, 0.0  ;;  %v367_v56 = vmax.f32 %v331_v53, 0.0 }
  0x3b   : > { %881 = vst [vmem:[%s974_s25 + $0x80] sm:$0xff] %v842_v54   ;;  %v847_v57 = vpack.c.bf16 %v367_v56, %v366_v55 }
  0x3d   : > { %882 = vst [vmem:[%s974_s25 + $0x88] sm:$0xff] %v847_v57  }
  0x3e PF: > { %s13_s12 = sadd.s32 1, %s897_s12  }
  0x3f   : > { %p10_p4 = scmp.ge.s32.totalorder %s13_s12, 4  }
  0x41   :  { %12 = sbr.rel (!%p10_p4) target bundleno = 1 (0x1), region = 62 }

// kernel: basic_block_forward.7
= control target key start
LH: loop header
LB: loop body
LE: loop exit
PB: predicated region body
PF: predicated region fallthrough
CT: control target
= control target key end

     0   :  { %s860_s15 = smov 0   ;;  %s1044_s0 = inlined_call_operand.vmem [shape: bf16[576,128], index: 0, kind: input, shape index: {}]   ;;  %s1045_s1 = inlined_call_operand.vmem [shape: f32[1,128], index: 1, kind: input, shape index: {}]   ;;  %s1046_s2 = inlined_call_operand.vmem [shape: f32[1,128], index: 2, kind: input, shape index: {}]   ;;  %s1047_s3 = inlined_call_operand.vmem [shape: bf16[576,128], index: 3, kind: input, shape index: {}]   ;;  %s1048_s4 = inlined_call_operand.vmem [shape: f32[576,128], index: 4, kind: output, shape index: {}]  }
   0x1 LB: > { %s629_s16 = sadd.s32 4294967295, %s833_s15   ;;  %p633_p0 = scmp.ge.s32.totalorder %s833_s15, 1  ;;  %s833_s15 = sphi %s860_s15, %s14_s15  }
   0x2   : > { %p174_p1 = scmp.lt.s32.totalorder %s833_s15, 3 }
   0x4   : > { %p175_p2 = pnand %p633_p0, %p174_p1 }
   0x5   : > { %s205_s17 = smul.u32 (!%p175_p2), 36, %s629_s16 }
   0x6   : > { %178 = sbr.rel (%p175_p2) target bundleno = 74 (0x4a), region = 36 }
   0x7   : > { %p206_p3 = scmp.lt.s32.totalorder (!%p175_p2), %s205_s17, 71 }
   0xb   : > { %s1050_s17 = smov (!%p206_p3, %s205_s17), 71  ;;  %v884_v0 = vld [vmem:[%s1045_s1] ss:$0 sm:$0xff] }
   0xc   : > { %s634_s18 = sshll.u32 %s1050_s17, 2  ;;  %v895_v11 = vld [vmem:[%s1046_s2] ss:$0 sm:$0xff]  ;;  %s636_s29 = sshll.u32 %s1050_s17, 3 }
   0xd   : > { %s874_s21 = scalar_lea.vmem %s1044_s0, %s634_s18  ;;  %s879_s24 = scalar_lea.vmem %s1047_s3, %s634_s18 }
   0xe   : > { %v642_v1 = vld [vmem:[%s874_s21] sm:$0xff]   ;;  %v785_v3 = vld [vmem:[%s874_s21 + $0x8] sm:$0xff]   ;;  %v786_v9 = vld [vmem:[%s874_s21 + $0x10] sm:$0xff]   ;;  %s915_s6 = scalar_lea.vmem %s1048_s4, %s636_s29 }
   0xf   : > { %v714_v2 = vld [vmem:[%s879_s24] sm:$0xff]   ;;  %v643_v4 = vunpack.c.l.bf16 %v642_v1  ;;  %v644_v6 = vunpack.c.h.bf16 %v642_v1  ;;  %v802_v8 = vld [vmem:[%s879_s24 + $0x8] sm:$0xff]   ;;  %v803_v10 = vld [vmem:[%s879_s24 + $0x10] sm:$0xff]   ;;  %v647_v12 = vunpack.c.l.bf16 %v785_v3  ;;  %v648_v14 = vunpack.c.h.bf16 %v785_v3 }
  0x10   : > { %v715_v5 = vunpack.c.l.bf16 %v714_v2  ;;  %v716_v7 = vunpack.c.h.bf16 %v714_v2  ;;  %v719_v13 = vunpack.c.l.bf16 %v802_v8  ;;  %v720_v15 = vunpack.c.h.bf16 %v802_v8  ;;  %v787_v16 = vld [vmem:[%s874_s21 + $0x18] sm:$0xff]   ;;  %v788_v42 = vld [vmem:[%s874_s21 + $0x20] sm:$0xff]   ;;  %v789_v52 = vld [vmem:[%s874_s21 + $0x28] sm:$0xff]  }
  0x11   : > { %v302_v17 = vmul.f32 %v643_v4, %v884_v0  ;;  %v303_v18 = vmul.f32 %v644_v6, %v884_v0  ;;  %v651_v19 = vunpack.c.l.bf16 %v786_v9  ;;  %v723_v20 = vunpack.c.l.bf16 %v803_v10  ;;  %v804_v21 = vld [vmem:[%s879_s24 + $0x18] sm:$0xff]   ;;  %v805_v47 = vld [vmem:[%s879_s24 + $0x20] sm:$0xff]   ;;  %v806_v57 = vld [vmem:[%s879_s24 + $0x28] sm:$0xff]  }
  0x12   : > { %v304_v22 = vmul.f32 %v647_v12, %v884_v0  ;;  %v305_v23 = vmul.f32 %v648_v14, %v884_v0  ;;  %v652_v24 = vunpack.c.h.bf16 %v786_v9  ;;  %v724_v25 = vunpack.c.h.bf16 %v803_v10  ;;  %v790_v62 = vld [vmem:[%s874_s21 + $0x30] sm:$0xff]   ;;  %v791_v14 = vld [vmem:[%s874_s21 + $0x38] sm:$0xff]  }
  0x13   : > { %v345_v26 = vadd.f32 %v895_v11, %v302_v17  ;;  %v346_v27 = vadd.f32 %v895_v11, %v303_v18  ;;  %v306_v28 = vmul.f32 %v651_v19, %v884_v0  ;;  %v655_v29 = vunpack.c.l.bf16 %v787_v16  ;;  %v807_v4 = vld [vmem:[%s879_s24 + $0x30] sm:$0xff]  }
  0x14   : > { %v347_v30 = vadd.f32 %v895_v11, %v304_v22  ;;  %v348_v31 = vadd.f32 %v895_v11, %v305_v23  ;;  %v307_v32 = vmul.f32 %v652_v24, %v884_v0  ;;  %v727_v33 = vunpack.c.l.bf16 %v804_v21  ;;  %v808_v23 = vld [vmem:[%s879_s24 + $0x38] sm:$0xff]  }
  0x15   : > { %v453_v34 = vadd.f32 %v715_v5, %v345_v26  ;;  %v454_v35 = vadd.f32 %v716_v7, %v346_v27  ;;  %v349_v36 = vadd.f32 %v895_v11, %v306_v28  ;;  %v308_v37 = vmul.f32 %v655_v29, %v884_v0 }
  0x16   : > { %v455_v38 = vadd.f32 %v719_v13, %v347_v30  ;;  %v456_v39 = vadd.f32 %v720_v15, %v348_v31  ;;  %v350_v40 = vadd.f32 %v895_v11, %v307_v32  ;;  %v656_v41 = vunpack.c.h.bf16 %v787_v16  ;;  %v792_v32 = vld [vmem:[%s874_s21 + $0x40] sm:$0xff]  }
  0x17   : > { %v489_v43 = vmax.f32 %v453_v34, 0.0  ;;  %v490_v44 = vmax.f32 %v454_v35, 0.0  ;;  %v457_v45 = vadd.f32 %v723_v20, %v349_v36  ;;  %v351_v46 = vadd.f32 %v895_v11, %v308_v37  ;;  %v809_v37 = vld [vmem:[%s879_s24 + $0x40] sm:$0xff]  }
  0x18   : > { %v491_v48 = vmax.f32 %v455_v38, 0.0  ;;  %v492_v49 = vmax.f32 %v456_v39, 0.0  ;;  %v458_v50 = vadd.f32 %v724_v25, %v350_v40  ;;  %v309_v51 = vmul.f32 %v656_v41, %v884_v0 }
  0x19   : > { %525 = vst [vmem:[%s915_s6] sm:$0xff] %v489_v43  ;;  %526 = vst [vmem:[%s915_s6 + $0x8] sm:$0xff] %v490_v44  ;;  %v493_v53 = vmax.f32 %v457_v45, 0.0  ;;  %v459_v54 = vadd.f32 %v727_v33, %v351_v46  ;;  %v728_v55 = vunpack.c.h.bf16 %v804_v21  ;;  %v659_v56 = vunpack.c.l.bf16 %v788_v42  ;;  %v793_v46 = vld [vmem:[%s874_s21 + $0x48] sm:$0xff]  }
  0x1a   : > { %527 = vst [vmem:[%s915_s6 + $0x10] sm:$0xff] %v491_v48  ;;  %528 = vst [vmem:[%s915_s6 + $0x18] sm:$0xff] %v492_v49  ;;  %v494_v58 = vmax.f32 %v458_v50, 0.0  ;;  %v352_v59 = vadd.f32 %v895_v11, %v309_v51  ;;  %v731_v60 = vunpack.c.l.bf16 %v805_v47  ;;  %v660_v61 = vunpack.c.h.bf16 %v788_v42 }
  0x1b   : > { %529 = vst [vmem:[%s915_s6 + $0x20] sm:$0xff] %v493_v53  ;;  %v495_v63 = vmax.f32 %v459_v54, 0.0  ;;  %v310_v1 = vmul.f32 %v659_v56, %v884_v0  ;;  %v732_v2 = vunpack.c.h.bf16 %v805_v47  ;;  %v663_v3 = vunpack.c.l.bf16 %v789_v52  ;;  %v810_v47 = vld [vmem:[%s879_s24 + $0x48] sm:$0xff]   ;;  %v794_v56 = vld [vmem:[%s874_s21 + $0x50] sm:$0xff]  }
  0x1c   : > { %530 = vst [vmem:[%s915_s6 + $0x28] sm:$0xff] %v494_v58  ;;  %v460_v5 = vadd.f32 %v728_v55, %v352_v59  ;;  %v311_v6 = vmul.f32 %v660_v61, %v884_v0  ;;  %v735_v7 = vunpack.c.l.bf16 %v806_v57  ;;  %v664_v8 = vunpack.c.h.bf16 %v789_v52  ;;  %v811_v61 = vld [vmem:[%s879_s24 + $0x50] sm:$0xff]  }
  0x1d   : > { %531 = vst [vmem:[%s915_s6 + $0x30] sm:$0xff] %v495_v63  ;;  %v353_v9 = vadd.f32 %v895_v11, %v310_v1  ;;  %v312_v10 = vmul.f32 %v663_v3, %v884_v0  ;;  %v736_v12 = vunpack.c.h.bf16 %v806_v57  ;;  %v667_v13 = vunpack.c.l.bf16 %v790_v62 }
  0x1e   : > { %v496_v15 = vmax.f32 %v460_v5, 0.0  ;;  %v354_v16 = vadd.f32 %v895_v11, %v311_v6  ;;  %v313_v17 = vmul.f32 %v664_v8, %v884_v0  ;;  %v739_v18 = vunpack.c.l.bf16 %v807_v4 }
  0x1f   : > { %v461_v19 = vadd.f32 %v731_v60, %v353_v9  ;;  %v355_v20 = vadd.f32 %v895_v11, %v312_v10  ;;  %v314_v21 = vmul.f32 %v667_v13, %v884_v0  ;;  %v668_v22 = vunpack.c.h.bf16 %v790_v62 }
  0x20   : > { %532 = vst [vmem:[%s915_s6 + $0x38] sm:$0xff] %v496_v15  ;;  %v462_v24 = vadd.f32 %v732_v2, %v354_v16  ;;  %v356_v25 = vadd.f32 %v895_v11, %v313_v17  ;;  %v740_v26 = vunpack.c.h.bf16 %v807_v4  ;;  %v671_v27 = vunpack.c.l.bf16 %v791_v14  ;;  %v812_v17 = vld [vmem:[%s879_s24 + $0x58] sm:$0xff]  }
  0x21   : > { %v497_v28 = vmax.f32 %v461_v19, 0.0  ;;  %v463_v29 = vadd.f32 %v735_v7, %v355_v20  ;;  %v357_v30 = vadd.f32 %v895_v11, %v314_v21  ;;  %v315_v31 = vmul.f32 %v668_v22, %v884_v0 }
  0x22   : > { %v498_v33 = vmax.f32 %v462_v24, 0.0  ;;  %v464_v34 = vadd.f32 %v736_v12, %v356_v25  ;;  %v316_v35 = vmul.f32 %v671_v27, %v884_v0  ;;  %v743_v36 = vunpack.c.l.bf16 %v808_v23  ;;  %v795_v12 = vld [vmem:[%s874_s21 + $0x58] sm:$0xff]  }
  0x23   : > { %533 = vst [vmem:[%s915_s6 + $0x40] sm:$0xff] %v497_v28  ;;  %v499_v38 = vmax.f32 %v463_v29, 0.0  ;;  %v465_v39 = vadd.f32 %v739_v18, %v357_v30  ;;  %v358_v40 = vadd.f32 %v895_v11, %v315_v31  ;;  %v672_v41 = vunpack.c.h.bf16 %v791_v14  ;;  %v813_v31 = vld [vmem:[%s879_s24 + $0x60] sm:$0xff]  }
  0x24   : > { %534 = vst [vmem:[%s915_s6 + $0x48] sm:$0xff] %v498_v33  ;;  %v500_v42 = vmax.f32 %v464_v34, 0.0  ;;  %v359_v43 = vadd.f32 %v895_v11, %v316_v35  ;;  %v744_v44 = vunpack.c.h.bf16 %v808_v23  ;;  %v675_v45 = vunpack.c.l.bf16 %v792_v32 }
  0x25   : > { %535 = vst [vmem:[%s915_s6 + $0x50] sm:$0xff] %v499_v38  ;;  %v501_v48 = vmax.f32 %v465_v39, 0.0  ;;  %v466_v49 = vadd.f32 %v740_v26, %v358_v40  ;;  %v317_v50 = vmul.f32 %v672_v41, %v884_v0  ;;  %v747_v51 = vunpack.c.l.bf16 %v809_v37  ;;  %v796_v26 = vld [vmem:[%s874_s21 + $0x60] sm:$0xff]   ;;  %v797_v40 = vld [vmem:[%s874_s21 + $0x68] sm:$0xff]  }
  0x26   : > { %536 = vst [vmem:[%s915_s6 + $0x58] sm:$0xff] %v500_v42  ;;  %v467_v52 = vadd.f32 %v743_v36, %v359_v43  ;;  %v318_v53 = vmul.f32 %v675_v45, %v884_v0  ;;  %v676_v54 = vunpack.c.h.bf16 %v792_v32  ;;  %v748_v55 = vunpack.c.h.bf16 %v809_v37  ;;  %v814_v41 = vld [vmem:[%s879_s24 + $0x68] sm:$0xff]  }
  0x27   : > { %537 = vst [vmem:[%s915_s6 + $0x60] sm:$0xff] %v501_v48  ;;  %v502_v57 = vmax.f32 %v466_v49, 0.0  ;;  %v360_v58 = vadd.f32 %v895_v11, %v317_v50  ;;  %v679_v59 = vunpack.c.l.bf16 %v793_v46  ;;  %v751_v60 = vunpack.c.l.bf16 %v810_v47  ;;  %v798_v50 = vld [vmem:[%s874_s21 + $0x70] sm:$0xff]  }
  0x28   : > { %v503_v62 = vmax.f32 %v467_v52, 0.0  ;;  %v361_v63 = vadd.f32 %v895_v11, %v318_v53  ;;  %v319_v1 = vmul.f32 %v676_v54, %v884_v0  ;;  %v680_v2 = vunpack.c.h.bf16 %v793_v46 }
  0x29   : > { %538 = vst [vmem:[%s915_s6 + $0x68] sm:$0xff] %v502_v57  ;;  %v468_v3 = vadd.f32 %v744_v44, %v360_v58  ;;  %v320_v4 = vmul.f32 %v679_v59, %v884_v0  ;;  %v752_v5 = vunpack.c.h.bf16 %v810_v47  ;;  %v683_v6 = vunpack.c.l.bf16 %v794_v56  ;;  %v815_v59 = vld [vmem:[%s879_s24 + $0x70] sm:$0xff]  }
  0x2a   : > { %539 = vst [vmem:[%s915_s6 + $0x70] sm:$0xff] %v503_v62  ;;  %v469_v7 = vadd.f32 %v747_v51, %v361_v63  ;;  %v362_v8 = vadd.f32 %v895_v11, %v319_v1  ;;  %v321_v9 = vmul.f32 %v680_v2, %v884_v0  ;;  %v755_v10 = vunpack.c.l.bf16 %v811_v61 }
  0x2b   : > { %v504_v13 = vmax.f32 %v468_v3, 0.0  ;;  %v363_v14 = vadd.f32 %v895_v11, %v320_v4  ;;  %v322_v15 = vmul.f32 %v683_v6, %v884_v0  ;;  %v684_v16 = vunpack.c.h.bf16 %v794_v56 }
  0x2c   : > { %v505_v18 = vmax.f32 %v469_v7, 0.0  ;;  %v470_v19 = vadd.f32 %v748_v55, %v362_v8  ;;  %v364_v20 = vadd.f32 %v895_v11, %v321_v9  ;;  %v756_v21 = vunpack.c.h.bf16 %v811_v61 }
  0x2d   : > { %540 = vst [vmem:[%s915_s6 + $0x78] sm:$0xff] %v504_v13  ;;  %v471_v22 = vadd.f32 %v751_v60, %v363_v14  ;;  %v365_v23 = vadd.f32 %v895_v11, %v322_v15  ;;  %v323_v24 = vmul.f32 %v684_v16, %v884_v0  ;;  %v687_v25 = vunpack.c.l.bf16 %v795_v12 }
  0x2e   : > { %541 = vst [vmem:[%s915_s6 + $0x80] sm:$0xff] %v505_v18  ;;  %v506_v27 = vmax.f32 %v470_v19, 0.0  ;;  %v472_v28 = vadd.f32 %v752_v5, %v364_v20  ;;  %v759_v29 = vunpack.c.l.bf16 %v812_v17  ;;  %v688_v30 = vunpack.c.h.bf16 %v795_v12  ;;  %v799_v5 = vld [vmem:[%s874_s21 + $0x78] sm:$0xff]   ;;  %v800_v20 = vld [vmem:[%s874_s21 + $0x80] sm:$0xff]  }
  0x2f   : > { %v507_v32 = vmax.f32 %v471_v22, 0.0  ;;  %v473_v33 = vadd.f32 %v755_v10, %v365_v23  ;;  %v366_v34 = vadd.f32 %v895_v11, %v323_v24  ;;  %v324_v35 = vmul.f32 %v687_v25, %v884_v0  ;;  %v816_v10 = vld [vmem:[%s879_s24 + $0x78] sm:$0xff]  }
  0x30   : > { %542 = vst [vmem:[%s915_s6 + $0x88] sm:$0xff] %v506_v27  ;;  %v508_v36 = vmax.f32 %v472_v28, 0.0  ;;  %v325_v37 = vmul.f32 %v688_v30, %v884_v0  ;;  %v760_v38 = vunpack.c.h.bf16 %v812_v17  ;;  %v691_v39 = vunpack.c.l.bf16 %v796_v26 }
  0x31   : > { %543 = vst [vmem:[%s915_s6 + $0x90] sm:$0xff] %v507_v32  ;;  %v509_v42 = vmax.f32 %v473_v33, 0.0  ;;  %v474_v43 = vadd.f32 %v756_v21, %v366_v34  ;;  %v367_v44 = vadd.f32 %v895_v11, %v324_v35  ;;  %v763_v45 = vunpack.c.l.bf16 %v813_v31  ;;  %v801_v34 = vld [vmem:[%s874_s21 + $0x88] sm:$0xff]  }
  0x32   : > { %544 = vst [vmem:[%s915_s6 + $0x98] sm:$0xff] %v508_v36  ;;  %v368_v46 = vadd.f32 %v895_v11, %v325_v37  ;;  %v326_v47 = vmul.f32 %v691_v39, %v884_v0  ;;  %v692_v48 = vunpack.c.h.bf16 %v796_v26  ;;  %v764_v49 = vunpack.c.h.bf16 %v813_v31 }
  0x33   : > { %545 = vst [vmem:[%s915_s6 + $0xa0] sm:$0xff] %v509_v42  ;;  %v510_v51 = vmax.f32 %v474_v43, 0.0  ;;  %v475_v52 = vadd.f32 %v759_v29, %v367_v44  ;;  %v695_v53 = vunpack.c.l.bf16 %v797_v40  ;;  %v767_v54 = vunpack.c.l.bf16 %v814_v41  ;;  %v817_v29 = vld [vmem:[%s879_s24 + $0x80] sm:$0xff]   ;;  %v818_v42 = vld [vmem:[%s879_s24 + $0x88] sm:$0xff]  }
  0x34   : > { %v476_v55 = vadd.f32 %v760_v38, %v368_v46  ;;  %v369_v56 = vadd.f32 %v895_v11, %v326_v47  ;;  %v327_v57 = vmul.f32 %v692_v48, %v884_v0  ;;  %v696_v58 = vunpack.c.h.bf16 %v797_v40 }
  0x35   : > { %546 = vst [vmem:[%s915_s6 + $0xa8] sm:$0xff] %v510_v51  ;;  %v511_v60 = vmax.f32 %v475_v52, 0.0  ;;  %v328_v61 = vmul.f32 %v695_v53, %v884_v0  ;;  %v768_v62 = vunpack.c.h.bf16 %v814_v41  ;;  %v699_v63 = vunpack.c.l.bf16 %v798_v50 }
  0x36   : > { %v512_v1 = vmax.f32 %v476_v55, 0.0  ;;  %v477_v2 = vadd.f32 %v763_v45, %v369_v56  ;;  %v370_v3 = vadd.f32 %v895_v11, %v327_v57  ;;  %v329_v4 = vmul.f32 %v696_v58, %v884_v0 }
  0x37   : > { %547 = vst [vmem:[%s915_s6 + $0xb0] sm:$0xff] %v511_v60  ;;  %v371_v6 = vadd.f32 %v895_v11, %v328_v61  ;;  %v330_v7 = vmul.f32 %v699_v63, %v884_v0  ;;  %v771_v8 = vunpack.c.l.bf16 %v815_v59  ;;  %v700_v9 = vunpack.c.h.bf16 %v798_v50 }
  0x38   : > { %548 = vst [vmem:[%s915_s6 + $0xb8] sm:$0xff] %v512_v1  ;;  %v513_v12 = vmax.f32 %v477_v2, 0.0  ;;  %v478_v13 = vadd.f32 %v764_v49, %v370_v3  ;;  %v372_v14 = vadd.f32 %v895_v11, %v329_v4  ;;  %v772_v15 = vunpack.c.h.bf16 %v815_v59 }
  0x39   : > { %v479_v16 = vadd.f32 %v767_v54, %v371_v6  ;;  %v373_v17 = vadd.f32 %v895_v11, %v330_v7  ;;  %v331_v18 = vmul.f32 %v700_v9, %v884_v0  ;;  %v703_v19 = vunpack.c.l.bf16 %v799_v5 }
  0x3a   : > { %549 = vst [vmem:[%s915_s6 + $0xc0] sm:$0xff] %v513_v12  ;;  %v514_v21 = vmax.f32 %v478_v13, 0.0  ;;  %v480_v22 = vadd.f32 %v768_v62, %v372_v14  ;;  %v775_v23 = vunpack.c.l.bf16 %v816_v10  ;;  %v704_v24 = vunpack.c.h.bf16 %v799_v5 }
  0x3b   : > { %v515_v25 = vmax.f32 %v479_v16, 0.0  ;;  %v481_v26 = vadd.f32 %v771_v8, %v373_v17  ;;  %v374_v27 = vadd.f32 %v895_v11, %v331_v18  ;;  %v332_v28 = vmul.f32 %v703_v19, %v884_v0 }
  0x3c   : > { %550 = vst [vmem:[%s915_s6 + $0xc8] sm:$0xff] %v514_v21  ;;  %v516_v30 = vmax.f32 %v480_v22, 0.0  ;;  %v333_v31 = vmul.f32 %v704_v24, %v884_v0  ;;  %v776_v32 = vunpack.c.h.bf16 %v816_v10  ;;  %v707_v33 = vunpack.c.l.bf16 %v800_v20 }
  0x3d   : > { %551 = vst [vmem:[%s915_s6 + $0xd0] sm:$0xff] %v515_v25  ;;  %v517_v35 = vmax.f32 %v481_v26, 0.0  ;;  %v482_v36 = vadd.f32 %v772_v15, %v374_v27  ;;  %v375_v37 = vadd.f32 %v895_v11, %v332_v28  ;;  %v779_v40 = vunpack.c.l.bf16 %v817_v29 }
  0x3e   : > { %552 = vst [vmem:[%s915_s6 + $0xd8] sm:$0xff] %v516_v30  ;;  %v376_v38 = vadd.f32 %v895_v11, %v333_v31  ;;  %v334_v39 = vmul.f32 %v707_v33, %v884_v0  ;;  %v708_v41 = vunpack.c.h.bf16 %v800_v20  ;;  %v780_v45 = vunpack.c.h.bf16 %v817_v29 }
  0x3f   : > { %553 = vst [vmem:[%s915_s6 + $0xe0] sm:$0xff] %v517_v35  ;;  %v518_v43 = vmax.f32 %v482_v36, 0.0  ;;  %v483_v44 = vadd.f32 %v775_v23, %v375_v37  ;;  %v711_v46 = vunpack.c.l.bf16 %v801_v34  ;;  %v712_v50 = vunpack.c.h.bf16 %v801_v34 }
  0x40   : > { %v484_v47 = vadd.f32 %v776_v32, %v376_v38  ;;  %v377_v48 = vadd.f32 %v895_v11, %v334_v39  ;;  %v335_v49 = vmul.f32 %v708_v41, %v884_v0  ;;  %v783_v53 = vunpack.c.l.bf16 %v818_v42 }
  0x41   : > { %554 = vst [vmem:[%s915_s6 + $0xe8] sm:$0xff] %v518_v43  ;;  %v519_v51 = vmax.f32 %v483_v44, 0.0  ;;  %v336_v52 = vmul.f32 %v711_v46, %v884_v0  ;;  %v784_v54 = vunpack.c.h.bf16 %v818_v42  ;;  %v337_v58 = vmul.f32 %v712_v50, %v884_v0 }
  0x42   : > { %v520_v55 = vmax.f32 %v484_v47, 0.0  ;;  %v485_v56 = vadd.f32 %v779_v40, %v377_v48  ;;  %v378_v57 = vadd.f32 %v895_v11, %v335_v49 }
  0x43   : > { %555 = vst [vmem:[%s915_s6 + $0xf0] sm:$0xff] %v519_v51  ;;  %v379_v59 = vadd.f32 %v895_v11, %v336_v52  ;;  %v380_v62 = vadd.f32 %v895_v11, %v337_v58 }
  0x44   : > { %556 = vst [vmem:[%s915_s6 + $0xf8] sm:$0xff] %v520_v55  ;;  %v521_v60 = vmax.f32 %v485_v56, 0.0  ;;  %v486_v61 = vadd.f32 %v780_v45, %v378_v57 }
  0x45   : > { %v487_v63 = vadd.f32 %v783_v53, %v379_v59  ;;  %v488_v2 = vadd.f32 %v784_v54, %v380_v62 }
  0x46   : > { %557 = vst [vmem:[%s915_s6 + $0x100] sm:$0xff] %v521_v60  ;;  %v522_v1 = vmax.f32 %v486_v61, 0.0 }
  0x47   : > { %v523_v3 = vmax.f32 %v487_v63, 0.0  ;;  %v524_v4 = vmax.f32 %v488_v2, 0.0 }
  0x48   : > { %558 = vst [vmem:[%s915_s6 + $0x108] sm:$0xff] %v522_v1 }
  0x49   : > { %559 = vst [vmem:[%s915_s6 + $0x110] sm:$0xff] %v523_v3  ;;  %560 = vst [vmem:[%s915_s6 + $0x118] sm:$0xff] %v524_v4 }
  0x4a PF: > { %s14_s15 = sadd.s32 1, %s833_s15  }
  0x4b   : > { %p11_p4 = scmp.ge.s32.totalorder %s14_s15, 4  }
  0x4d   :  { %13 = sbr.rel (!%p11_p4) target bundleno = 1 (0x1), region = 69 }

// kernel: basic_block_forward.4
= control target key start
LH: loop header
LB: loop body
LE: loop exit
PB: predicated region body
PF: predicated region fallthrough
CT: control target
= control target key end

     0   :  { %s4654_s18 = smov 0   ;;  %s5868_s0 = inlined_call_operand.vmem [shape: f32[2,328,4], index: 0, kind: input, shape index: {}]   ;;  %s5869_s1 = inlined_call_operand.vmem [shape: bf16[9,4,128], index: 1, kind: input, shape index: {}]   ;;  %s5870_s2 = inlined_call_operand.vmem [shape: f32[288,1], index: 2, kind: input, shape index: {}]   ;;  %s5871_s3 = inlined_call_operand.vmem [shape: bf16[576,128], index: 3, kind: output, shape index: {0}]   ;;  %s5872_s4 = inlined_call_operand.vmem [shape: f32[1,128], index: 4, kind: output, shape index: {1}]   ;;  %s5873_s5 = inlined_call_operand.vmem [shape: f32[1,128], index: 5, kind: output, shape index: {2}]  }
   0x1 LB: > { %s3717_s19 = sadd.s32 4294967295, %s4620_s18   ;;  %p3721_p0 = scmp.ge.s32.totalorder %s4620_s18, 1  ;;  %s4620_s18 = sphi %s4654_s18, %s16_s18  }
   0x2   : > { %p182_p1 = scmp.lt.s32.totalorder %s4620_s18, 3 }
   0x4   : > { %p183_p2 = pnand %p3721_p0, %p182_p1 }
   0x6   : > { %186 = sbr.rel (%p183_p2) target bundleno = 572 (0x23c), region = 32 }
   0xb   : > { %p210_p3 = scmp.lt.s32.totalorder %s3717_s19, 1  ;;  %s215_s20 = smul.u32 36, %s3717_s19 }
   0xc   : > { %p3724_p5 = scmp.ne.s32.totalorder %s3717_s19, 0 }
   0xd   : > { %s211_s21 = scalar_select %p210_p3, %s3717_s19, 1 }
   0xe   : > { %p216_p4 = scmp.lt.s32.totalorder %s215_s20, 71  ;;  %225 = sbr.rel (%p3724_p5) target bundleno = 21 (0x15), region = 36 }
   0xf   : > { %s4601_s22 = smul.u32 328, %s211_s21 }
  0x10   : > { %s5891_s20 = smov (!%p216_p4, %s215_s20), 71 }
  0x11   : > { %s4665_s25 = scalar_lea.vmem %s5868_s0, %s4601_s22  ;;  %s3723_s26 = sshll.u32 %s5891_s20, 2 }
  0x12   : > { %s4670_s29 = scalar_lea.vmem %s5871_s3, %s3723_s26 }
  0x13   : > { %v4622_v0 = vmov 0.0  }
  0x14   : > { %226 = vst [vmem:[%s5872_s4] sm:$0x1] %v4622_v0  ;;  %227 = vst [vmem:[%s5873_s5] sm:$0x1] %v4622_v0 }
  0x15 PF: > { %v3725_v1 = vld [vmem:[%s5869_s1 + $0x2] sm:$0x3]  ;;  %vm430_vm0 = vcmask 1041408   ;;  %v320_v3 = vld [vmem:[%s4665_s25 + $0x9] sm:$0xff]  ;;  %vm375_vm1 = vcmask 31744   ;;  %v321_v8 = vld [vmem:[%s4665_s25 + $0x11] sm:$0xff] }
  0x16   : > { %v319_v2 = vld [vmem:[%s4665_s25 + $0x1] sm:$0xff]  ;;  %4591 = vmatprep.subr.msk.bf16.mxu0 %vm430_vm0, %v3725_v1  ;;  %4592 = vmatprep.subr.msk.bf16.mxu1 %vm430_vm0, %v3725_v1  ;;  %v432_v4 = vsel %vm430_vm0, %v3725_v1, 0  ;;  %v340_v7 = vld [vmem:[%s4665_s25 + $0xa9] sm:$0xff]  ;;  %v322_v10 = vld [vmem:[%s4665_s25 + $0x19] sm:$0xff] }
  0x17   : > { %v355_v5 = vpack.c.bf16 %v320_v3, %v319_v2  ;;  %v339_v6 = vld [vmem:[%s4665_s25 + $0xa1] sm:$0xff]  ;;  %4248 = vmatpush3.bf16.msra.mxu0 %v432_v4  ;;  %4590 = vmatpush3.bf16.msra.mxu1 %v432_v4  ;;  %v341_v11 = vld [vmem:[%s4665_s25 + $0xb1] sm:$0xff]  ;;  %v342_v12 = vld [vmem:[%s4665_s25 + $0xb9] sm:$0xff]  ;;  %v356_v13 = vpack.c.bf16 %v322_v10, %v321_v8 }
  0x18   : > { %v365_v9 = vpack.c.bf16 %v340_v7, %v339_v6  ;;  %v366_v14 = vpack.c.bf16 %v342_v12, %v341_v11  ;;  %v3762_v15 = vld [vmem:[%s5869_s1 + $0x4] sm:$0x3]  ;;  %v318_v16 = vld [vmem:[%s5869_s1] sm:$0x3]  ;;  %v324_v19 = vld [vmem:[%s4665_s25 + $0x29] sm:$0xff] }
  0x19   : > { %4249 = vmatprep.mubr.msk.bf16.mxu0 %vm375_vm1, %v355_v5  ;;  %v323_v17 = vld [vmem:[%s4665_s25 + $0x21] sm:$0xff]  ;;  %4594 = vmatprep.subr.msk.bf16.mxu0 %vm430_vm0, %v3762_v15  ;;  %v956_v18 = vsel %vm430_vm0, %v3762_v15, 0  ;;  %v344_v21 = vld [vmem:[%s4665_s25 + $0xc9] sm:$0xff]  ;;  %v666_v24 = vsel %vm430_vm0, %v318_v16, 0  ;;  %v325_v25 = vld [vmem:[%s4665_s25 + $0x31] sm:$0xff] }
  0x1a   : > { %4269 = vmatprep.mubr.msk.bf16.mxu1 %vm375_vm1, %v365_v9  ;;  %v343_v20 = vld [vmem:[%s4665_s25 + $0xc1] sm:$0xff]  ;;  %4250 = vmatmul.mubr.msk.bf16.vlgmr.msra.gmra.mxu0 %vm375_vm1, %v356_v13  ;;  %v357_v22 = vpack.c.bf16 %v324_v19, %v323_v17  ;;  %v326_v26 = vld [vmem:[%s4665_s25 + $0x39] sm:$0xff]  ;;  %v345_v27 = vld [vmem:[%s4665_s25 + $0xd1] sm:$0xff] }
  0x1b   : > { %4270 = vmatmul.mubr.msk.bf16.vlgmr.msra.gmra.mxu1 %vm375_vm1, %v366_v14  ;;  %v367_v23 = vpack.c.bf16 %v344_v21, %v343_v20  ;;  %4324 = vmatpush3.bf16.msra.mxu0 %v956_v18  ;;  %v346_v28 = vld [vmem:[%s4665_s25 + $0xd9] sm:$0xff]  ;;  %v327_v29 = vld [vmem:[%s4665_s25 + $0x41] sm:$0xff]  ;;  %v328_v30 = vld [vmem:[%s4665_s25 + $0x49] sm:$0xff]  ;;  %v358_v33 = vpack.c.bf16 %v326_v26, %v325_v25 }
  0x1c   : > { %4593 = vmatprep.subr.msk.bf16.mxu1 %vm430_vm0, %v318_v16  ;;  %4253 = vmatprep.mubr.msk.bf16.mxu0 %vm375_vm1, %v357_v22  ;;  %v347_v31 = vld [vmem:[%s4665_s25 + $0xe1] sm:$0xff]  ;;  %v348_v32 = vld [vmem:[%s4665_s25 + $0xe9] sm:$0xff]  ;;  %v368_v34 = vpack.c.bf16 %v346_v28, %v345_v27  ;;  %v359_v35 = vpack.c.bf16 %v328_v30, %v327_v29  ;;  %v329_v37 = vld [vmem:[%s4665_s25 + $0x51] sm:$0xff] }
  0x1d   : > { %4273 = vmatprep.mubr.msk.bf16.mxu1 %vm375_vm1, %v367_v23  ;;  %4286 = vmatpush3.bf16.msra.mxu1 %v666_v24  ;;  %v369_v36 = vpack.c.bf16 %v348_v32, %v347_v31  ;;  %v330_v38 = vld [vmem:[%s4665_s25 + $0x59] sm:$0xff]  ;;  %v349_v39 = vld [vmem:[%s4665_s25 + $0xf1] sm:$0xff]  ;;  %v331_v41 = vld [vmem:[%s4665_s25 + $0x61] sm:$0xff] }
  0x1e   : > { %v350_v40 = vld [vmem:[%s4665_s25 + $0xf9] sm:$0xff]  ;;  %v3781_v42 = vld [vmem:[%s5869_s1 + $0x6] sm:$0x3]  ;;  %v332_v43 = vld [vmem:[%s4665_s25 + $0x69] sm:$0xff]  ;;  %v360_v46 = vpack.c.bf16 %v330_v38, %v329_v37 }
  0x1f   : > { %v351_v44 = vld [vmem:[%s4665_s25 + $0x101] sm:$0xff]  ;;  %v352_v45 = vld [vmem:[%s4665_s25 + $0x109] sm:$0xff]  ;;  %4595 = vmatprep.subr.msk.bf16.mxu1 %vm430_vm0, %v3781_v42  ;;  %v370_v47 = vpack.c.bf16 %v350_v40, %v349_v39  ;;  %v361_v49 = vpack.c.bf16 %v332_v43, %v331_v41  ;;  %v333_v51 = vld [vmem:[%s4665_s25 + $0x71] sm:$0xff]  ;;  %v1282_v11 = vsel %vm430_vm0, %v3781_v42, 0 }
  0x20   : > { %v3800_v48 = vld [vmem:[%s5869_s1 + $0x8] sm:$0x3]  ;;  %v371_v50 = vpack.c.bf16 %v352_v45, %v351_v44  ;;  %v334_v52 = vld [vmem:[%s4665_s25 + $0x79] sm:$0xff]  ;;  %v353_v53 = vld [vmem:[%s4665_s25 + $0x111] sm:$0xff] }
  0x21   : > { %4596 = vmatprep.subr.msk.bf16.mxu0 %vm430_vm0, %v3800_v48  ;;  %v354_v54 = vld [vmem:[%s4665_s25 + $0x119] sm:$0xff]  ;;  %v335_v55 = vld [vmem:[%s4665_s25 + $0x81] sm:$0xff]  ;;  %v336_v56 = vld [vmem:[%s4665_s25 + $0x89] sm:$0xff]  ;;  %v362_v59 = vpack.c.bf16 %v334_v52, %v333_v51  ;;  %v1608_v24 = vsel %vm430_vm0, %v3800_v48, 0 }
  0x22   : > { %4254 = vmatmul.mubr.msk.bf16.gmra.mxu0 %vm375_vm1, %v358_v33  ;;  %v264_v57 = vld [vmem:[%s4665_s25] sm:$0xff]  ;;  %v265_v58 = vld [vmem:[%s4665_s25 + $0x8] sm:$0xff]  ;;  %v372_v60 = vpack.c.bf16 %v354_v54, %v353_v53  ;;  %v363_v61 = vpack.c.bf16 %v336_v56, %v335_v55  ;;  %v337_v63 = vld [vmem:[%s4665_s25 + $0x91] sm:$0xff] }
  0x23   : > { %4274 = vmatmul.mubr.msk.bf16.gmra.mxu1 %vm375_vm1, %v368_v34  ;;  %4257 = vmatprep.mubr.msk.bf16.mxu0 %vm375_vm1, %v359_v35  ;;  %v300_v62 = vpack.c.bf16 %v265_v58, %v264_v57  ;;  %v338_v0 = vld [vmem:[%s4665_s25 + $0x99] sm:$0xff]  ;;  %v266_v1 = vld [vmem:[%s4665_s25 + $0x10] sm:$0xff]  ;;  %v269_v4 = vld [vmem:[%s4665_s25 + $0x28] sm:$0xff] }
  0x24   : > { %4277 = vmatprep.mubr.msk.bf16.mxu1 %vm375_vm1, %v369_v36  ;;  %v267_v2 = vld [vmem:[%s4665_s25 + $0x18] sm:$0xff]  ;;  %v268_v3 = vld [vmem:[%s4665_s25 + $0x20] sm:$0xff]  ;;  %v846_v6 = vld [vmem:[%s4665_s25 + $0xa] sm:$0xff]  ;;  %v364_v7 = vpack.c.bf16 %v338_v0, %v337_v63 }
  0x25   : > { %v845_v5 = vld [vmem:[%s4665_s25 + $0x2] sm:$0xff]  ;;  %v301_v8 = vpack.c.bf16 %v267_v2, %v266_v1  ;;  %v302_v9 = vpack.c.bf16 %v269_v4, %v268_v3  ;;  %v270_v12 = vld [vmem:[%s4665_s25 + $0x30] sm:$0xff]  ;;  %v4771_v13 = vld [vmem:[%s5869_s1 + $0xa] sm:$0x3] }
  0x26   : > { %v881_v10 = vpack.c.bf16 %v846_v6, %v845_v5  ;;  %v271_v14 = vld [vmem:[%s4665_s25 + $0x38] sm:$0xff]  ;;  %v272_v17 = vld [vmem:[%s4665_s25 + $0x40] sm:$0xff]  ;;  %v273_v18 = vld [vmem:[%s4665_s25 + $0x48] sm:$0xff] }
  0x27   : > { %v847_v15 = vld [vmem:[%s4665_s25 + $0x12] sm:$0xff]  ;;  %v848_v16 = vld [vmem:[%s4665_s25 + $0x1a] sm:$0xff]  ;;  %v849_v19 = vld [vmem:[%s4665_s25 + $0x22] sm:$0xff]  ;;  %v303_v21 = vpack.c.bf16 %v271_v14, %v270_v12  ;;  %v304_v23 = vpack.c.bf16 %v273_v18, %v272_v17 }
  0x28   : > { %v850_v20 = vld [vmem:[%s4665_s25 + $0x2a] sm:$0xff]  ;;  %v4784_v22 = vpack.c.bf16 %v848_v16, %v847_v15  ;;  %v275_v28 = vld [vmem:[%s4665_s25 + $0x58] sm:$0xff]  ;;  %v276_v31 = vld [vmem:[%s4665_s25 + $0x60] sm:$0xff] }
  0x29   : > { %v4787_v25 = vpack.c.bf16 %v850_v20, %v849_v19  ;;  %v4792_v26 = vld [vmem:[%s5869_s1 + $0xc] sm:$0x3]  ;;  %v274_v27 = vld [vmem:[%s4665_s25 + $0x50] sm:$0xff]  ;;  %v852_v30 = vld [vmem:[%s4665_s25 + $0x3a] sm:$0xff] }
  0x2a   : > { %4258 = vmatmul.mubr.msk.bf16.gmra.mxu0 %vm375_vm1, %v360_v46  ;;  %v851_v29 = vld [vmem:[%s4665_s25 + $0x32] sm:$0xff]  ;;  %v277_v32 = vld [vmem:[%s4665_s25 + $0x68] sm:$0xff]  ;;  %v305_v35 = vpack.c.bf16 %v275_v28, %v274_v27  ;;  %v856_v42 = vld [vmem:[%s4665_s25 + $0x5a] sm:$0xff] }
  0x2b   : > { %4278 = vmatmul.mubr.msk.bf16.gmra.mxu1 %vm375_vm1, %v370_v47  ;;  %4261 = vmatprep.mubr.msk.bf16.mxu0 %vm375_vm1, %v361_v49  ;;  %v853_v33 = vld [vmem:[%s4665_s25 + $0x42] sm:$0xff]  ;;  %v854_v34 = vld [vmem:[%s4665_s25 + $0x4a] sm:$0xff]  ;;  %v4810_v36 = vpack.c.bf16 %v852_v30, %v851_v29  ;;  %v306_v37 = vpack.c.bf16 %v277_v32, %v276_v31  ;;  %v279_v40 = vld [vmem:[%s4665_s25 + $0x78] sm:$0xff] }
  0x2c   : > { %4281 = vmatprep.mubr.msk.bf16.mxu1 %vm375_vm1, %v371_v50  ;;  %v4812_v38 = vpack.c.bf16 %v854_v34, %v853_v33  ;;  %v278_v39 = vld [vmem:[%s4665_s25 + $0x70] sm:$0xff]  ;;  %v280_v43 = vld [vmem:[%s4665_s25 + $0x80] sm:$0xff]  ;;  %v281_v44 = vld [vmem:[%s4665_s25 + $0x88] sm:$0xff] }
  0x2d   : > { %v855_v41 = vld [vmem:[%s4665_s25 + $0x52] sm:$0xff]  ;;  %v857_v45 = vld [vmem:[%s4665_s25 + $0x62] sm:$0xff]  ;;  %v858_v46 = vld [vmem:[%s4665_s25 + $0x6a] sm:$0xff]  ;;  %v307_v47 = vpack.c.bf16 %v279_v40, %v278_v39  ;;  %v308_v49 = vpack.c.bf16 %v281_v44, %v280_v43 }
  0x2e   : > { %v4828_v48 = vpack.c.bf16 %v856_v42, %v855_v41  ;;  %v4830_v50 = vpack.c.bf16 %v858_v46, %v857_v45  ;;  %v282_v51 = vld [vmem:[%s4665_s25 + $0x90] sm:$0xff]  ;;  %v283_v52 = vld [vmem:[%s4665_s25 + $0x98] sm:$0xff]  ;;  %v284_v55 = vld [vmem:[%s4665_s25 + $0xa0] sm:$0xff] }
  0x2f   : > { %v859_v53 = vld [vmem:[%s4665_s25 + $0x72] sm:$0xff]  ;;  %v860_v54 = vld [vmem:[%s4665_s25 + $0x7a] sm:$0xff]  ;;  %v285_v56 = vld [vmem:[%s4665_s25 + $0xa8] sm:$0xff] }
  0x30   : > { %v861_v57 = vld [vmem:[%s4665_s25 + $0x82] sm:$0xff]  ;;  %v862_v58 = vld [vmem:[%s4665_s25 + $0x8a] sm:$0xff]  ;;  %v287_v0 = vld [vmem:[%s4665_s25 + $0xb8] sm:$0xff] }
  0x31   : > { %v286_v63 = vld [vmem:[%s4665_s25 + $0xb0] sm:$0xff]  ;;  %v864_v2 = vld [vmem:[%s4665_s25 + $0x9a] sm:$0xff]  ;;  %v289_v4 = vld [vmem:[%s4665_s25 + $0xc8] sm:$0xff] }
  0x32   : > { %4262 = vmatmul.mubr.msk.bf16.gmra.mxu0 %vm375_vm1, %v362_v59  ;;  %v309_v59 = vpack.c.bf16 %v283_v52, %v282_v51  ;;  %v863_v1 = vld [vmem:[%s4665_s25 + $0x92] sm:$0xff]  ;;  %v288_v3 = vld [vmem:[%s4665_s25 + $0xc0] sm:$0xff]  ;;  %v866_v6 = vld [vmem:[%s4665_s25 + $0xaa] sm:$0xff] }
  0x33   : > { %4282 = vmatmul.mubr.msk.bf16.gmra.mxu1 %vm375_vm1, %v372_v60  ;;  %4265 = vmatprep.mubr.msk.bf16.mxu0 %vm375_vm1, %v363_v61  ;;  %v4846_v60 = vpack.c.bf16 %v860_v54, %v859_v53  ;;  %v310_v61 = vpack.c.bf16 %v285_v56, %v284_v55  ;;  %v865_v5 = vld [vmem:[%s4665_s25 + $0xa2] sm:$0xff]  ;;  %v291_v12 = vld [vmem:[%s4665_s25 + $0xd8] sm:$0xff]  ;;  %v870_v19 = vld [vmem:[%s4665_s25 + $0xca] sm:$0xff] }
  0x34   : > { %4287 = vmatprep.mubr.msk.bf16.mxu1 %vm375_vm1, %v300_v62  ;;  %v4848_v62 = vpack.c.bf16 %v862_v58, %v861_v57  ;;  %v867_v14 = vld [vmem:[%s4665_s25 + $0xb2] sm:$0xff]  ;;  %v868_v15 = vld [vmem:[%s4665_s25 + $0xba] sm:$0xff]  ;;  %v293_v17 = vld [vmem:[%s4665_s25 + $0xe8] sm:$0xff]  ;;  %v1934_v58 = vsel %vm430_vm0, %v4771_v13, 0 }
  0x35   : > { %v292_v16 = vld [vmem:[%s4665_s25 + $0xe0] sm:$0xff]  ;;  %v294_v27 = vld [vmem:[%s4665_s25 + $0xf0] sm:$0xff]  ;;  %v295_v28 = vld [vmem:[%s4665_s25 + $0xf8] sm:$0xff] }
  0x36   : > { %v869_v18 = vld [vmem:[%s4665_s25 + $0xc2] sm:$0xff]  ;;  %v871_v29 = vld [vmem:[%s4665_s25 + $0xd2] sm:$0xff]  ;;  %v872_v30 = vld [vmem:[%s4665_s25 + $0xda] sm:$0xff] }
  0x37   : > { %v296_v31 = vld [vmem:[%s4665_s25 + $0x100] sm:$0xff]  ;;  %v297_v32 = vld [vmem:[%s4665_s25 + $0x108] sm:$0xff]  ;;  %v298_v41 = vld [vmem:[%s4665_s25 + $0x110] sm:$0xff] }
  0x38   : > { %v873_v33 = vld [vmem:[%s4665_s25 + $0xe2] sm:$0xff]  ;;  %v874_v34 = vld [vmem:[%s4665_s25 + $0xea] sm:$0xff]  ;;  %v316_v39 = vpack.c.bf16 %v297_v32, %v296_v31  ;;  %v299_v42 = vld [vmem:[%s4665_s25 + $0x118] sm:$0xff] }
  0x39   : > { %v4902_v40 = vpack.c.bf16 %v874_v34, %v873_v33  ;;  %v875_v43 = vld [vmem:[%s4665_s25 + $0xf2] sm:$0xff]  ;;  %v876_v44 = vld [vmem:[%s4665_s25 + $0xfa] sm:$0xff]  ;;  %v877_v45 = vld [vmem:[%s4665_s25 + $0x102] sm:$0xff] }
  0x3a   : > { %4266 = vmatmul.mubr.msk.bf16.gmra.mxu0 %vm375_vm1, %v364_v7  ;;  %v311_v7 = vpack.c.bf16 %v287_v0, %v286_v63  ;;  %v878_v46 = vld [vmem:[%s4665_s25 + $0x10a] sm:$0xff]  ;;  %v879_v52 = vld [vmem:[%s4665_s25 + $0x112] sm:$0xff]  ;;  %v880_v53 = vld [vmem:[%s4665_s25 + $0x11a] sm:$0xff]  ;;  %v2260_v0 = vsel %vm430_vm0, %v4792_v26, 0 }
  0x3b   : > { %4288 = vmatmul.mubr.msk.bf16.vlgmr.msra.gmra.mxu1 %vm375_vm1, %v301_v8  ;;  %4325 = vmatprep.mubr.msk.bf16.mxu0 %vm375_vm1, %v881_v10  ;;  %v4864_v8 = vpack.c.bf16 %v864_v2, %v863_v1  ;;  %v4866_v10 = vpack.c.bf16 %v866_v6, %v865_v5  ;;  %v4918_v51 = vpack.c.bf16 %v878_v46, %v877_v45  ;;  %v1497_v54 = vld [vmem:[%s4665_s25 + $0x13] sm:$0xff]  ;;  %v1498_v55 = vld [vmem:[%s4665_s25 + $0x1b] sm:$0xff]  ;;  %v1504_v2 = vld [vmem:[%s4665_s25 + $0x4b] sm:$0xff] }
  0x3c   : > { %4291 = vmatprep.mubr.msk.bf16.mxu1 %vm375_vm1, %v302_v9  ;;  %4362 = vmatpush3.bf16.msra.mxu1 %v1282_v11  ;;  %v312_v9 = vpack.c.bf16 %v289_v4, %v288_v3  ;;  %v290_v11 = vld [vmem:[%s4665_s25 + $0xd0] sm:$0xff]  ;;  %v4931_v56 = vpack.c.bf16 %v880_v53, %v879_v52  ;;  %v1533_v57 = vpack.c.bf16 %v1498_v55, %v1497_v54  ;;  %v1502_v63 = vld [vmem:[%s4665_s25 + $0x3b] sm:$0xff]  ;;  %v233_v31 = vld [vmem:[%s5870_s2 + $0x28] sm:$0xff] }
  0x3d   : > { %4597 = vmatprep.subr.msk.bf16.mxu1 %vm430_vm0, %v4771_v13  ;;  %v313_v20 = vpack.c.bf16 %v291_v12, %v290_v11  ;;  %v1500_v13 = vld [vmem:[%s4665_s25 + $0x2b] sm:$0xff]  ;;  %v1505_v3 = vld [vmem:[%s4665_s25 + $0x53] sm:$0xff]  ;;  %v1506_v4 = vld [vmem:[%s4665_s25 + $0x5b] sm:$0xff] }
  0x3e   : > { %v1537_v5 = vpack.c.bf16 %v1506_v4, %v1505_v3  ;;  %v1508_v6 = vld [vmem:[%s4665_s25 + $0x6b] sm:$0xff]  ;;  %v1519_v33 = vld [vmem:[%s4665_s25 + $0xc3] sm:$0xff]  ;;  %v239_v53 = vld [vmem:[%s5870_s2 + $0x58] sm:$0xff] }
  0x3f   : > { %v234_v32 = vld [vmem:[%s5870_s2 + $0x30] sm:$0xff]  ;;  %v1523_v45 = vld [vmem:[%s4665_s25 + $0xe3] sm:$0xff] }
  0x40   : > { %v1520_v34 = vld [vmem:[%s4665_s25 + $0xcb] sm:$0xff]  ;;  %v1205_v55 = vld [vmem:[%s4665_s25 + $0x122] sm:$0xff] }
  0x41   : > { %v1524_v46 = vld [vmem:[%s4665_s25 + $0xeb] sm:$0xff] }
  0x42   : > { %4326 = vmatmul.mubr.msk.bf16.vlgmr.msra.gmra.mxu0 %vm375_vm1, %v4784_v22  ;;  %v1546_v52 = vpack.c.bf16 %v1524_v46, %v1523_v45  ;;  %v1838_v45 = vld [vmem:[%s4665_s25 + $0x8c] sm:$0xff] }
  0x43   : > { %4292 = vmatmul.mubr.msk.bf16.gmra.mxu1 %vm375_vm1, %v303_v21  ;;  %4400 = vmatpush3.bf16.msra.mxu0 %v1608_v24  ;;  %v4882_v21 = vpack.c.bf16 %v868_v15, %v867_v14  ;;  %v4884_v24 = vpack.c.bf16 %v870_v19, %v869_v18  ;;  %v1513_v14 = vld [vmem:[%s4665_s25 + $0x93] sm:$0xff]  ;;  %v1514_v15 = vld [vmem:[%s4665_s25 + $0x9b] sm:$0xff]  ;;  %v229_v19 = vld [vmem:[%s5870_s2 + $0x8] sm:$0xff] }
  0x44   : > { %4295 = vmatprep.mubr.msk.bf16.mxu1 %vm375_vm1, %v304_v23  ;;  %4329 = vmatprep.mubr.msk.bf16.mxu0 %vm375_vm1, %v4787_v25  ;;  %v314_v23 = vpack.c.bf16 %v293_v17, %v292_v16  ;;  %v4623_v17 = vmov 0   ;;  %v1541_v18 = vpack.c.bf16 %v1514_v15, %v1513_v14  ;;  %v247_v14 = vld [vmem:[%s5870_s2 + $0x98] sm:$0xff]  ;;  %v248_v15 = vld [vmem:[%s5870_s2 + $0xa0] sm:$0xff] }
  0x45   : > { %4598 = vmatprep.subr.msk.bf16.mxu0 %vm430_vm0, %v4792_v26  ;;  %v1503_v26 = vld [vmem:[%s4665_s25 + $0x43] sm:$0xff]  ;;  %4612 = vset.pattern.permute.xlu0 %v4623_v17 }
  0x46   : > { %4613 = vset.pattern.permute.xlu1 %v4623_v17 }
  0x4a   : > { %4330 = vmatmul.mubr.msk.bf16.gmra.mxu0 %vm375_vm1, %v4810_v36 }
  0x4b   : > { %4296 = vmatmul.mubr.msk.bf16.gmra.mxu1 %vm375_vm1, %v305_v35  ;;  %4333 = vmatprep.mubr.msk.bf16.mxu0 %vm375_vm1, %v4812_v38  ;;  %v315_v35 = vpack.c.bf16 %v295_v28, %v294_v27  ;;  %v1517_v27 = vld [vmem:[%s4665_s25 + $0xb3] sm:$0xff] }
  0x4c   : > { %4299 = vmatprep.mubr.msk.bf16.mxu1 %vm375_vm1, %v306_v37  ;;  %v4900_v37 = vpack.c.bf16 %v872_v30, %v871_v29  ;;  %v231_v29 = vld [vmem:[%s5870_s2 + $0x18] sm:$0xff] }
  0x52   : > { %4334 = vmatmul.mubr.msk.bf16.gmra.mxu0 %vm375_vm1, %v4828_v48 }
  0x53   : > { %4300 = vmatmul.mubr.msk.bf16.gmra.mxu1 %vm375_vm1, %v307_v47  ;;  %4337 = vmatprep.mubr.msk.bf16.mxu0 %vm375_vm1, %v4830_v50  ;;  %v317_v47 = vpack.c.bf16 %v299_v42, %v298_v41  ;;  %v235_v41 = vld [vmem:[%s5870_s2 + $0x38] sm:$0xff] }
  0x54   : > { %4303 = vmatprep.mubr.msk.bf16.mxu1 %vm375_vm1, %v308_v49  ;;  %v4916_v49 = vpack.c.bf16 %v876_v44, %v875_v43  ;;  %v237_v43 = vld [vmem:[%s5870_s2 + $0x48] sm:$0xff]  ;;  %v238_v44 = vld [vmem:[%s5870_s2 + $0x50] sm:$0xff] }
  0x5a   : > { %4338 = vmatmul.mubr.msk.bf16.gmra.mxu0 %vm375_vm1, %v4846_v60 }
  0x5b   : > { %4304 = vmatmul.mubr.msk.bf16.gmra.mxu1 %vm375_vm1, %v309_v59  ;;  %4341 = vmatprep.mubr.msk.bf16.mxu0 %vm375_vm1, %v4848_v62  ;;  %v1499_v59 = vld [vmem:[%s4665_s25 + $0x23] sm:$0xff] }
  0x5c   : > { %4307 = vmatprep.mubr.msk.bf16.mxu1 %vm375_vm1, %v310_v61  ;;  %v1501_v61 = vld [vmem:[%s4665_s25 + $0x33] sm:$0xff] }
  0x5d   : > { %v1535_v1 = vpack.c.bf16 %v1502_v63, %v1501_v61  ;;  %v1528_v61 = vld [vmem:[%s4665_s25 + $0x10b] sm:$0xff]  ;;  %v1529_v63 = vld [vmem:[%s4665_s25 + $0x113] sm:$0xff] }
  0x62   : > { %4342 = vmatmul.mubr.msk.bf16.gmra.mxu0 %vm375_vm1, %v4864_v8 }
  0x63   : > { %4308 = vmatmul.mubr.msk.bf16.gmra.mxu1 %vm375_vm1, %v311_v7  ;;  %4345 = vmatprep.mubr.msk.bf16.mxu0 %vm375_vm1, %v4866_v10  ;;  %v1509_v7 = vld [vmem:[%s4665_s25 + $0x73] sm:$0xff] }
  0x64   : > { %4311 = vmatprep.mubr.msk.bf16.mxu1 %vm375_vm1, %v312_v9  ;;  %v1510_v9 = vld [vmem:[%s4665_s25 + $0x7b] sm:$0xff] }
  0x65   : > { %v1539_v12 = vpack.c.bf16 %v1510_v9, %v1509_v7  ;;  %v1825_v7 = vld [vmem:[%s4665_s25 + $0x24] sm:$0xff]  ;;  %v1826_v9 = vld [vmem:[%s4665_s25 + $0x2c] sm:$0xff] }
  0x6a   : > { %4346 = vmatmul.mubr.msk.bf16.gmra.mxu0 %vm375_vm1, %v4882_v21 }
  0x6b   : > { %4312 = vmatmul.mubr.msk.bf16.gmra.mxu1 %vm375_vm1, %v313_v20  ;;  %4349 = vmatprep.mubr.msk.bf16.mxu0 %vm375_vm1, %v4884_v24  ;;  %v1515_v20 = vld [vmem:[%s4665_s25 + $0xa3] sm:$0xff] }
  0x6c   : > { %4315 = vmatprep.mubr.msk.bf16.mxu1 %vm375_vm1, %v314_v23  ;;  %v1516_v23 = vld [vmem:[%s4665_s25 + $0xab] sm:$0xff] }
  0x6d   : > { %v1542_v28 = vpack.c.bf16 %v1516_v23, %v1515_v20  ;;  %v1832_v20 = vld [vmem:[%s4665_s25 + $0x5c] sm:$0xff] }
  0x72   : > { %4350 = vmatmul.mubr.msk.bf16.gmra.mxu0 %vm375_vm1, %v4900_v37 }
  0x73   : > { %4316 = vmatmul.mubr.msk.bf16.gmra.mxu1 %vm375_vm1, %v315_v35  ;;  %4353 = vmatprep.mubr.msk.bf16.mxu0 %vm375_vm1, %v4902_v40  ;;  %v1521_v35 = vld [vmem:[%s4665_s25 + $0xd3] sm:$0xff] }
  0x74   : > { %4319 = vmatprep.mubr.msk.bf16.mxu1 %vm375_vm1, %v316_v39  ;;  %v1544_v39 = vpack.c.bf16 %v1520_v34, %v1519_v33  ;;  %v1836_v33 = vld [vmem:[%s4665_s25 + $0x7c] sm:$0xff] }
  0x7a   : > { %4354 = vmatmul.mubr.msk.bf16.gmra.mxu0 %vm375_vm1, %v4916_v49 }
  0x7b   : > { %4320 = vmatmul.mubr.msk.bf16.gmra.mxu1 %vm375_vm1, %v317_v47  ;;  %4357 = vmatprep.mubr.msk.bf16.mxu0 %vm375_vm1, %v4918_v51  ;;  %v1526_v47 = vld [vmem:[%s4665_s25 + $0xfb] sm:$0xff] }
  0x7c   : > { %4363 = vmatprep.mubr.msk.bf16.mxu1 %vm375_vm1, %v4784_v22  ;;  %v4942_v22 = vld [vmem:[%s5869_s1 + $0xe] sm:$0x3] }
  0x7d   : > { %v2586_v17 = vsel %vm430_vm0, %v4942_v22, 0 }
  0x82   : > { %4358 = vmatmul.mubr.msk.bf16.gmra.mxu0 %vm375_vm1, %v4931_v56 }
  0x83   : > { %4364 = vmatmul.mubr.msk.bf16.vlgmr.msra.gmra.mxu1 %vm375_vm1, %v4787_v25  ;;  %4401 = vmatprep.mubr.msk.bf16.mxu0 %vm375_vm1, %v1533_v57  ;;  %v1534_v25 = vpack.c.bf16 %v1500_v13, %v1499_v59  ;;  %v1206_v57 = vld [vmem:[%s4665_s25 + $0x12a] sm:$0xff] }
  0x84   : > { %4367 = vmatprep.mubr.msk.bf16.mxu1 %vm375_vm1, %v4810_v36  ;;  %4438 = vmatpush3.bf16.msra.mxu1 %v1934_v58  ;;  %v4958_v36 = vld [vmem:[%s5869_s1 + $0x10] sm:$0x3]  ;;  %v241_v58 = vld [vmem:[%s5870_s2 + $0x68] sm:$0xff] }
  0x85   : > { %4599 = vmatprep.subr.msk.bf16.mxu1 %vm430_vm0, %v4942_v22  ;;  %v242_v59 = vld [vmem:[%s5870_s2 + $0x70] sm:$0xff]  ;;  %v1527_v13 = vld [vmem:[%s4665_s25 + $0x103] sm:$0xff] }
  0x86   : > { %v1831_v22 = vld [vmem:[%s4665_s25 + $0x54] sm:$0xff] }
  0x8a   : > { %4402 = vmatmul.mubr.msk.bf16.vlgmr.msra.gmra.mxu0 %vm375_vm1, %v1534_v25  ;;  %v1823_v25 = vld [vmem:[%s4665_s25 + $0x14] sm:$0xff] }
  0x8b   : > { %4368 = vmatmul.mubr.msk.bf16.gmra.mxu1 %vm375_vm1, %v4812_v38  ;;  %4476 = vmatpush3.bf16.msra.mxu0 %v2260_v0  ;;  %v1536_v38 = vpack.c.bf16 %v1504_v2, %v1503_v26  ;;  %v1824_v0 = vld [vmem:[%s4665_s25 + $0x1c] sm:$0xff]  ;;  %v1548_v26 = vpack.c.bf16 %v1528_v61, %v1527_v13 }
  0x8c   : > { %4371 = vmatprep.mubr.msk.bf16.mxu1 %vm375_vm1, %v4828_v48  ;;  %4405 = vmatprep.mubr.msk.bf16.mxu0 %vm375_vm1, %v1535_v1  ;;  %v1507_v48 = vld [vmem:[%s4665_s25 + $0x63] sm:$0xff]  ;;  %v1224_v1 = vpack.c.bf16 %v1206_v57, %v1205_v55  ;;  %v1859_v4 = vpack.c.bf16 %v1824_v0, %v1823_v25  ;;  %v259_v55 = vld [vmem:[%s5870_s2 + $0xf8] sm:$0xff]  ;;  %v262_v25 = vld [vmem:[%s5870_s2 + $0x110] sm:$0xff] }
  0x8d   : > { %4600 = vmatprep.subr.msk.bf16.mxu0 %vm430_vm0, %v4958_v36  ;;  %v1538_v11 = vpack.c.bf16 %v1508_v6, %v1507_v48  ;;  %v244_v2 = vld [vmem:[%s5870_s2 + $0x80] sm:$0xff]  ;;  %v246_v48 = vld [vmem:[%s5870_s2 + $0x90] sm:$0xff] }
  0x8e   : > { %v1532_v6 = vld [vmem:[%s4665_s25 + $0x12b] sm:$0xff]  ;;  %v260_v57 = vld [vmem:[%s5870_s2 + $0x100] sm:$0xff] }
  0x8f   : > { %v1841_v0 = vld [vmem:[%s4665_s25 + $0xa4] sm:$0xff] }
  0x92   : > { %4406 = vmatmul.mubr.msk.bf16.gmra.mxu0 %vm375_vm1, %v1536_v38  ;;  %v1531_v38 = vld [vmem:[%s4665_s25 + $0x123] sm:$0xff] }
  0x93   : > { %4372 = vmatmul.mubr.msk.bf16.gmra.mxu1 %vm375_vm1, %v4830_v50  ;;  %4409 = vmatprep.mubr.msk.bf16.mxu0 %vm375_vm1, %v1537_v5  ;;  %v1511_v50 = vld [vmem:[%s4665_s25 + $0x83] sm:$0xff] }
  0x94   : > { %4375 = vmatprep.mubr.msk.bf16.mxu1 %vm375_vm1, %v4846_v60  ;;  %v1512_v60 = vld [vmem:[%s4665_s25 + $0x8b] sm:$0xff] }
  0x95   : > { %v1540_v16 = vpack.c.bf16 %v1512_v60, %v1511_v50  ;;  %v245_v5 = vld [vmem:[%s5870_s2 + $0x88] sm:$0xff]  ;;  %v1550_v50 = vpack.c.bf16 %v1532_v6, %v1531_v38  ;;  %v1860_v60 = vpack.c.bf16 %v1826_v9, %v1825_v7 }
  0x9a   : > { %4410 = vmatmul.mubr.msk.bf16.gmra.mxu0 %vm375_vm1, %v1538_v11  ;;  %v1827_v11 = vld [vmem:[%s4665_s25 + $0x34] sm:$0xff] }
  0x9b   : > { %4376 = vmatmul.mubr.msk.bf16.gmra.mxu1 %vm375_vm1, %v4848_v62  ;;  %4413 = vmatprep.mubr.msk.bf16.mxu0 %vm375_vm1, %v1539_v12  ;;  %v228_v62 = vld [vmem:[%s5870_s2] sm:$0xff] }
  0x9c   : > { %4379 = vmatprep.mubr.msk.bf16.mxu1 %vm375_vm1, %v4864_v8  ;;  %3309 = vperm.xlu0 %4612, %v228_v62   ;;  %v230_v8 = vld [vmem:[%s5870_s2 + $0x10] sm:$0xff]  ;;  %v1828_v12 = vld [vmem:[%s4665_s25 + $0x3c] sm:$0xff]  ;;  %v249_v62 = vld [vmem:[%s5870_s2 + $0xa8] sm:$0xff] }
  0x9d   : > { %3319 = vperm.xlu1 %4613, %v230_v8   ;;  %v1829_v8 = vld [vmem:[%s4665_s25 + $0x44] sm:$0xff] }
  0xa0   : > { %3314 = vperm.xlu0 %4612, %v229_v19   ;;  %v1830_v19 = vld [vmem:[%s4665_s25 + $0x4c] sm:$0xff] }
  0xa1   : > { %3324 = vperm.xlu1 %4613, %v231_v29   ;;  %v1862_v23 = vpack.c.bf16 %v1830_v19, %v1829_v8  ;;  %v2912_v29 = vsel %vm430_vm0, %v4958_v36, 0  ;;  %v1835_v36 = vld [vmem:[%s4665_s25 + $0x74] sm:$0xff] }
  0xa2   : > { %4414 = vmatmul.mubr.msk.bf16.gmra.mxu0 %vm375_vm1, %v1540_v16  ;;  %v1861_v16 = vpack.c.bf16 %v1828_v12, %v1827_v11 }
  0xa3   : > { %4380 = vmatmul.mubr.msk.bf16.gmra.mxu1 %vm375_vm1, %v4866_v10  ;;  %4417 = vmatprep.mubr.msk.bf16.mxu0 %vm375_vm1, %v1541_v18  ;;  %v1518_v10 = vld [vmem:[%s4665_s25 + $0xbb] sm:$0xff]  ;;  %v250_v18 = vld [vmem:[%s5870_s2 + $0xb0] sm:$0xff] }
  0xa4   : > { %4383 = vmatprep.mubr.msk.bf16.mxu1 %vm375_vm1, %v4882_v21  ;;  %v232_v21 = vld [vmem:[%s5870_s2 + $0x20] sm:$0xff]  ;;  %v1543_v30 = vpack.c.bf16 %v1518_v10, %v1517_v27  ;;  %v251_v27 = vld [vmem:[%s5870_s2 + $0xb8] sm:$0xff] }
  0xa5   : > { %3329 = vperm.xlu0 %4612, %v232_v21   ;;  %3334 = vperm.xlu1 %4613, %v233_v31   ;;  %v252_v10 = vld [vmem:[%s5870_s2 + $0xc0] sm:$0xff]  ;;  %v253_v21 = vld [vmem:[%s5870_s2 + $0xc8] sm:$0xff] }
  0xa6   : > { %v1833_v31 = vld [vmem:[%s4665_s25 + $0x64] sm:$0xff] }
  0xa9   : > { %3339 = vperm.xlu0 %4612, %v234_v32   ;;  %3344 = vperm.xlu1 %4613, %v235_v41   ;;  %v1834_v32 = vld [vmem:[%s4665_s25 + $0x6c] sm:$0xff] }
  0xaa   : > { %4418 = vmatmul.mubr.msk.bf16.gmra.mxu0 %vm375_vm1, %v1542_v28  ;;  %v1863_v28 = vpack.c.bf16 %v1832_v20, %v1831_v22  ;;  %v1864_v34 = vpack.c.bf16 %v1834_v32, %v1833_v31  ;;  %v1852_v31 = vld [vmem:[%s4665_s25 + $0xfc] sm:$0xff] }
  0xab   : > { %4384 = vmatmul.mubr.msk.bf16.gmra.mxu1 %vm375_vm1, %v4884_v24  ;;  %4421 = vmatprep.mubr.msk.bf16.mxu0 %vm375_vm1, %v1543_v30  ;;  %v1522_v24 = vld [vmem:[%s4665_s25 + $0xdb] sm:$0xff]  ;;  %v254_v30 = vld [vmem:[%s5870_s2 + $0xd0] sm:$0xff] }
  0xac   : > { %4387 = vmatprep.mubr.msk.bf16.mxu1 %vm375_vm1, %v4900_v37  ;;  %v236_v37 = vld [vmem:[%s5870_s2 + $0x40] sm:$0xff]  ;;  %v1545_v42 = vpack.c.bf16 %v1522_v24, %v1521_v35  ;;  %v255_v35 = vld [vmem:[%s5870_s2 + $0xd8] sm:$0xff] }
  0xad   : > { %3349 = vperm.xlu0 %4612, %v236_v37   ;;  %3354 = vperm.xlu1 %4613, %v237_v43   ;;  %v256_v24 = vld [vmem:[%s5870_s2 + $0xe0] sm:$0xff]  ;;  %v258_v43 = vld [vmem:[%s5870_s2 + $0xf0] sm:$0xff] }
  0xb1   : > { %3359 = vperm.xlu0 %4612, %v238_v44   ;;  %3364 = vperm.xlu1 %4613, %v239_v53   ;;  %v1837_v44 = vld [vmem:[%s4665_s25 + $0x84] sm:$0xff] }
  0xb2   : > { %4422 = vmatmul.mubr.msk.bf16.gmra.mxu0 %vm375_vm1, %v1544_v39  ;;  %v1865_v39 = vpack.c.bf16 %v1836_v33, %v1835_v36 }
  0xb3   : > { %4388 = vmatmul.mubr.msk.bf16.gmra.mxu1 %vm375_vm1, %v4902_v40  ;;  %4425 = vmatprep.mubr.msk.bf16.mxu0 %vm375_vm1, %v1545_v42  ;;  %v1525_v40 = vld [vmem:[%s4665_s25 + $0xf3] sm:$0xff]  ;;  %v257_v42 = vld [vmem:[%s5870_s2 + $0xe8] sm:$0xff] }
  0xb4   : > { %4391 = vmatprep.mubr.msk.bf16.mxu1 %vm375_vm1, %v4916_v49  ;;  %v240_v49 = vld [vmem:[%s5870_s2 + $0x60] sm:$0xff]  ;;  %v1547_v54 = vpack.c.bf16 %v1526_v47, %v1525_v40  ;;  %v1839_v47 = vld [vmem:[%s4665_s25 + $0x94] sm:$0xff] }
  0xb5   : > { %3369 = vperm.xlu0 %4612, %v240_v49   ;;  %3374 = vperm.xlu1 %4613, %v241_v58  }
  0xb9   : > { %3379 = vperm.xlu0 %4612, %v242_v59  }
  0xba   : > { %4426 = vmatmul.mubr.msk.bf16.gmra.mxu0 %vm375_vm1, %v1546_v52  ;;  %v1840_v52 = vld [vmem:[%s4665_s25 + $0x9c] sm:$0xff] }
  0xbb   : > { %4392 = vmatmul.mubr.msk.bf16.gmra.mxu1 %vm375_vm1, %v4918_v51  ;;  %4429 = vmatprep.mubr.msk.bf16.mxu0 %vm375_vm1, %v1547_v54  ;;  %v1530_v51 = vld [vmem:[%s4665_s25 + $0x11b] sm:$0xff]  ;;  %v1866_v54 = vpack.c.bf16 %v1838_v45, %v1837_v44  ;;  %v1867_v58 = vpack.c.bf16 %v1840_v52, %v1839_v47  ;;  %v1853_v44 = vld [vmem:[%s4665_s25 + $0x104] sm:$0xff]  ;;  %v1854_v45 = vld [vmem:[%s4665_s25 + $0x10c] sm:$0xff] }
  0xbc   : > { %4395 = vmatprep.mubr.msk.bf16.mxu1 %vm375_vm1, %v4931_v56  ;;  %v243_v56 = vld [vmem:[%s5870_s2 + $0x78] sm:$0xff]  ;;  %v1549_v3 = vpack.c.bf16 %v1530_v51, %v1529_v63  ;;  %v261_v51 = vld [vmem:[%s5870_s2 + $0x108] sm:$0xff] }
  0xbd   : > { %3384 = vperm.xlu1 %4613, %v243_v56   ;;  %3389 = vperm.xlu0 %4612, %v244_v2   ;;  %v1843_v2 = vld [vmem:[%s4665_s25 + $0xb4] sm:$0xff] }
  0xc1   : > { %3394 = vperm.xlu1 %4613, %v245_v5   ;;  %3399 = vperm.xlu0 %4612, %v246_v48   ;;  %v263_v48 = vld [vmem:[%s5870_s2 + $0x118] sm:$0xff] }
  0xc2   : > { %4430 = vmatmul.mubr.msk.bf16.gmra.mxu0 %vm375_vm1, %v1548_v26 }
  0xc3   : > { %4396 = vmatmul.mubr.msk.bf16.gmra.mxu1 %vm375_vm1, %v1224_v1  ;;  %4433 = vmatprep.mubr.msk.bf16.mxu0 %vm375_vm1, %v1549_v3  ;;  %v1842_v1 = vld [vmem:[%s4665_s25 + $0xac] sm:$0xff]  ;;  %v1844_v3 = vld [vmem:[%s4665_s25 + $0xbc] sm:$0xff] }
  0xc4   : > { %4439 = vmatprep.mubr.msk.bf16.mxu1 %vm375_vm1, %v1859_v4  ;;  %v1868_v5 = vpack.c.bf16 %v1842_v1, %v1841_v0  ;;  %v1869_v6 = vpack.c.bf16 %v1844_v3, %v1843_v2 }
  0xc5   : > { %3404 = vperm.xlu1 %4613, %v247_v14   ;;  %3409 = vperm.xlu0 %4612, %v248_v15  }
  0xc9   : > { %3414 = vperm.xlu1 %4613, %v249_v62   ;;  %3419 = vperm.xlu0 %4612, %v250_v18  }
  0xca   : > { %4434 = vmatmul.mubr.msk.bf16.gmra.mxu0 %vm375_vm1, %v1550_v50  ;;  %v1845_v50 = vld [vmem:[%s4665_s25 + $0xc4] sm:$0xff] }
  0xcb   : > { %4440 = vmatmul.mubr.msk.bf16.vlgmr.msra.gmra.mxu1 %vm375_vm1, %v1860_v60  ;;  %4477 = vmatprep.mubr.msk.bf16.mxu0 %vm375_vm1, %v1860_v60  ;;  %v1846_v60 = vld [vmem:[%s4665_s25 + $0xcc] sm:$0xff] }
  0xcc   : > { %4443 = vmatprep.mubr.msk.bf16.mxu1 %vm375_vm1, %v1861_v16  ;;  %4514 = vmatpush3.bf16.msra.mxu1 %v2586_v17  ;;  %v1848_v17 = vld [vmem:[%s4665_s25 + $0xdc] sm:$0xff]  ;;  %v1870_v8 = vpack.c.bf16 %v1846_v60, %v1845_v50  ;;  %v1858_v50 = vld [vmem:[%s4665_s25 + $0x12c] sm:$0xff] }
  0xcd   : > { %3424 = vperm.xlu1 %4613, %v251_v27   ;;  %3429 = vperm.xlu0 %4612, %v252_v10   ;;  %v1849_v10 = vld [vmem:[%s4665_s25 + $0xe4] sm:$0xff] }
  0xd1   : > { %3434 = vperm.xlu1 %4613, %v253_v21   ;;  %3439 = vperm.xlu0 %4612, %v254_v30   ;;  %v1851_v30 = vld [vmem:[%s4665_s25 + $0xf4] sm:$0xff] }
  0xd2   : > { %4478 = vmatmul.mubr.msk.bf16.vlgmr.msra.gmra.mxu0 %vm375_vm1, %v1861_v16  ;;  %v1847_v16 = vld [vmem:[%s4665_s25 + $0xd4] sm:$0xff] }
  0xd3   : > { %4444 = vmatmul.mubr.msk.bf16.gmra.mxu1 %vm375_vm1, %v1862_v23  ;;  %4552 = vmatpush3.bf16.msra.mxu0 %v2912_v29  ;;  %v1871_v19 = vpack.c.bf16 %v1848_v17, %v1847_v16  ;;  %v2475_v17 = vld [vmem:[%s4665_s25 + $0x25] sm:$0xff] }
  0xd4   : > { %4447 = vmatprep.mubr.msk.bf16.mxu1 %vm375_vm1, %v1863_v28  ;;  %4481 = vmatprep.mubr.msk.bf16.mxu0 %vm375_vm1, %v1862_v23 }
  0xd5   : > { %3444 = vperm.xlu1 %4613, %v255_v35   ;;  %3449 = vperm.xlu0 %4612, %v256_v24  }
  0xd9   : > { %3454 = vperm.xlu1 %4613, %v257_v42   ;;  %3459 = vperm.xlu0 %4612, %v258_v43  }
  0xda   : > { %v5153_v41 = vpop.f32.mrf.mxu0  ;;  %4482 = vmatmul.mubr.msk.bf16.gmra.mxu0 %vm375_vm1, %v1863_v28  ;;  %v1850_v28 = vld [vmem:[%s4665_s25 + $0xec] sm:$0xff] }
  0xdb   : > { %v5155_v37 = vpop.f32.mrf.mxu1  ;;  %4448 = vmatmul.mubr.msk.bf16.gmra.mxu1 %vm375_vm1, %v1864_v34  ;;  %4485 = vmatprep.mubr.msk.bf16.mxu0 %vm375_vm1, %v1864_v34  ;;  %v1872_v33 = vpack.c.bf16 %v1850_v28, %v1849_v10  ;;  %v1873_v34 = vpack.c.bf16 %v1852_v31, %v1851_v30 }
  0xdc   : > { %4451 = vmatprep.mubr.msk.bf16.mxu1 %vm375_vm1, %v1865_v39  ;;  %v5169_v46 = vpop.f32.mrf.mxu0 }
  0xdd   : > { %v5171_v40 = vpop.f32.mrf.mxu1  ;;  %3464 = vperm.xlu1 %4613, %v259_v55   ;;  %3469 = vperm.xlu0 %4612, %v260_v57   ;;  %v1856_v55 = vld [vmem:[%s4665_s25 + $0x11c] sm:$0xff] }
  0xde   : > { %v5175_v53 = vpop.f32.mrf.mxu0 }
  0xdf   : > { %v5177_v49 = vpop.f32.mrf.mxu1 }
  0xe0   : > { %v5185_v59 = vpop.f32.mrf.mxu0 }
  0xe1   : > { %v5187_v13 = vpop.f32.mrf.mxu1  ;;  %3474 = vperm.xlu1 %4613, %v261_v51   ;;  %3479 = vperm.xlu0 %4612, %v262_v25   ;;  %v1874_v25 = vpack.c.bf16 %v1854_v45, %v1853_v44 }
  0xe2   : > { %v5189_v61 = vpop.f32.mrf.mxu0  ;;  %4486 = vmatmul.mubr.msk.bf16.gmra.mxu0 %vm375_vm1, %v1865_v39 }
  0xe3   : > { %v5191_v63 = vpop.f32.mrf.mxu1  ;;  %4452 = vmatmul.mubr.msk.bf16.gmra.mxu1 %vm375_vm1, %v1866_v54  ;;  %4489 = vmatprep.mubr.msk.bf16.mxu0 %vm375_vm1, %v1866_v54  ;;  %v1855_v54 = vld [vmem:[%s4665_s25 + $0x114] sm:$0xff] }
  0xe4   : > { %4455 = vmatprep.mubr.msk.bf16.mxu1 %vm375_vm1, %v1867_v58  ;;  %v5205_v26 = vpop.f32.mrf.mxu0  ;;  %v1875_v0 = vpack.c.bf16 %v1856_v55, %v1855_v54 }
  0xe5   : > { %v5207_v56 = vpop.f32.mrf.mxu1  ;;  %3484 = vperm.xlu1 %4613, %v263_v48  }
  0xe6   : > { %v5211_v4 = vpop.f32.mrf.mxu0 }
  0xe7   : > { %v5213_v38 = vpop.f32.mrf.mxu1 }
  0xe8   : > { %v5218_v7 = vpop.f32.mrf.mxu0 }
  0xe9   : > { %v5220_v9 = vpop.f32.mrf.mxu1 }
  0xea   : > { %v5222_v11 = vpop.f32.mrf.mxu0  ;;  %4490 = vmatmul.mubr.msk.bf16.gmra.mxu0 %vm375_vm1, %v1867_v58 }
  0xeb   : > { %v5224_v12 = vpop.f32.mrf.mxu1  ;;  %4456 = vmatmul.mubr.msk.bf16.gmra.mxu1 %vm375_vm1, %v1868_v5  ;;  %4493 = vmatprep.mubr.msk.bf16.mxu0 %vm375_vm1, %v1868_v5 }
  0xec   : > { %4459 = vmatprep.mubr.msk.bf16.mxu1 %vm375_vm1, %v1869_v6  ;;  %v5232_v14 = vpop.f32.mrf.mxu0 }
  0xed   : > { %v5234_v15 = vpop.f32.mrf.mxu1 }
  0xee   : > { %v5238_v62 = vpop.f32.mrf.mxu0 }
  0xef   : > { %v5240_v18 = vpop.f32.mrf.mxu1 }
  0xf0   : > { %v5242_v22 = vpop.f32.mrf.mxu0 }
  0xf1   : > { %v5244_v20 = vpop.f32.mrf.mxu1 }
  0xf2   : > { %v5246_v23 = vpop.f32.mrf.mxu0  ;;  %4494 = vmatmul.mubr.msk.bf16.gmra.mxu0 %vm375_vm1, %v1869_v6 }
  0xf3   : > { %v5248_v27 = vpop.f32.mrf.mxu1  ;;  %4460 = vmatmul.mubr.msk.bf16.gmra.mxu1 %vm375_vm1, %v1870_v8  ;;  %4497 = vmatprep.mubr.msk.bf16.mxu0 %vm375_vm1, %v1870_v8 }
  0xf4   : > { %4463 = vmatprep.mubr.msk.bf16.mxu1 %vm375_vm1, %v1871_v19  ;;  %v5256_v29 = vpop.f32.mrf.mxu0 }
  0xf5   : > { %v5258_v21 = vpop.f32.mrf.mxu1 }
  0xf6   : > { %v5262_v32 = vpop.f32.mrf.mxu0 }
  0xf7   : > { %v5264_v36 = vpop.f32.mrf.mxu1 }
  0xf8   : > { %v5266_v35 = vpop.f32.mrf.mxu0 }
  0xf9   : > { %v5268_v24 = vpop.f32.mrf.mxu1 }
  0xfa   : > { %v5270_v39 = vpop.f32.mrf.mxu0  ;;  %4498 = vmatmul.mubr.msk.bf16.gmra.mxu0 %vm375_vm1, %v1871_v19 }
  0xfb   : > { %v4289_v42 = vpop.f32.mrf.mxu1  ;;  %4464 = vmatmul.mubr.msk.bf16.gmra.mxu1 %vm375_vm1, %v1872_v33  ;;  %4501 = vmatprep.mubr.msk.bf16.mxu0 %vm375_vm1, %v1872_v33 }
  0xfc   : > { %v711_v43 = vadd.f32 %v4289_v42, %v5153_v41  ;;  %4467 = vmatprep.mubr.msk.bf16.mxu1 %vm375_vm1, %v1873_v34  ;;  %v5279_v47 = vpop.f32.mrf.mxu0 }
  0xfd   : > { %v702_v52 = vpop.f32.mrf.mxu1 }
  0xfe   : > { %v703_v57 = vadd.f32 %v702_v52, %v5169_v46  ;;  %v5284_v58 = vpop.f32.mrf.mxu0  ;;  %v2184_v52 = vld [vmem:[%s4665_s25 + $0x13c] sm:$0xff] }
  0xff   : > { %v4290_v51 = vpop.f32.mrf.mxu1 }
 0x100   : > { %v714_v41 = vadd.f32 %v4290_v51, %v5175_v53  ;;  %v5287_v1 = vpop.f32.mrf.mxu0  ;;  %v1857_v53 = vld [vmem:[%s4665_s25 + $0x124] sm:$0xff] }
 0x101   : > { %v705_v2 = vpop.f32.mrf.mxu1  ;;  %v1876_v28 = vpack.c.bf16 %v1858_v50, %v1857_v53  ;;  %v2479_v51 = vld [vmem:[%s4665_s25 + $0x45] sm:$0xff] }
 0x102   : > { %v706_v3 = vadd.f32 %v705_v2, %v5185_v59  ;;  %v4327_v48 = vpop.f32.mrf.mxu0  ;;  %4502 = vmatmul.mubr.msk.bf16.gmra.mxu0 %vm375_vm1, %v1873_v34  ;;  %v2476_v59 = vld [vmem:[%s4665_s25 + $0x2d] sm:$0xff] }
 0x103   : > { %v4293_v5 = vpop.f32.mrf.mxu1  ;;  %4468 = vmatmul.mubr.msk.bf16.gmra.mxu1 %vm375_vm1, %v1874_v25  ;;  %v5293_v6 = vadd.f32 %v4327_v48, %v711_v43  ;;  %4505 = vmatprep.mubr.msk.bf16.mxu0 %vm375_vm1, %v1874_v25  ;;  %v2511_v33 = vpack.c.bf16 %v2476_v59, %v2475_v17  ;;  %v2480_v2 = vld [vmem:[%s4665_s25 + $0x4d] sm:$0xff] }
 0x104   : > { %v727_v46 = vadd.f32 %v4293_v5, %v5189_v61  ;;  %4471 = vmatprep.mubr.msk.bf16.mxu1 %vm375_vm1, %v1875_v0  ;;  %v992_v16 = vpop.f32.mrf.mxu0  ;;  %v2802_v5 = vld [vmem:[%s4665_s25 + $0x2e] sm:$0xff]  ;;  %v2513_v17 = vpack.c.bf16 %v2480_v2, %v2479_v51 }
 0x105   : > { %v718_v60 = vpop.f32.mrf.mxu1  ;;  %v5302_v19 = vadd.f32 %v992_v16, %v703_v57  ;;  %v2478_v57 = vld [vmem:[%s4665_s25 + $0x3d] sm:$0xff] }
 0x106   : > { %v719_v8 = vadd.f32 %v718_v60, %v5205_v26  ;;  %v4328_v61 = vpop.f32.mrf.mxu0 }
 0x107   : > { %v4294_v10 = vpop.f32.mrf.mxu1  ;;  %v5305_v31 = vadd.f32 %v4328_v61, %v714_v41 }
 0x108   : > { %v730_v30 = vadd.f32 %v4294_v10, %v5211_v4  ;;  %v995_v42 = vpop.f32.mrf.mxu0  ;;  %v2183_v4 = vld [vmem:[%s4665_s25 + $0x134] sm:$0xff] }
 0x109   : > { %v721_v34 = vpop.f32.mrf.mxu1  ;;  %v5308_v26 = vadd.f32 %v995_v42, %v706_v3  ;;  %v2801_v3 = vld [vmem:[%s4665_s25 + $0x26] sm:$0xff] }
 0x10a   : > { %v722_v43 = vadd.f32 %v721_v34, %v5218_v7  ;;  %v4331_v45 = vpop.f32.mrf.mxu0  ;;  %4506 = vmatmul.mubr.msk.bf16.gmra.mxu0 %vm375_vm1, %v1875_v0  ;;  %v2477_v7 = vld [vmem:[%s4665_s25 + $0x35] sm:$0xff]  ;;  %v2837_v59 = vpack.c.bf16 %v2802_v5, %v2801_v3 }
 0x10b   : > { %v4297_v44 = vpop.f32.mrf.mxu1  ;;  %4472 = vmatmul.mubr.msk.bf16.gmra.mxu1 %vm375_vm1, %v1876_v28  ;;  %v5315_v55 = vadd.f32 %v4331_v45, %v727_v46  ;;  %4509 = vmatprep.mubr.msk.bf16.mxu0 %vm375_vm1, %v1876_v28  ;;  %v2202_v46 = vpack.c.bf16 %v2184_v52, %v2183_v4  ;;  %v2512_v50 = vpack.c.bf16 %v2478_v57, %v2477_v7  ;;  %v2484_v52 = vld [vmem:[%s4665_s25 + $0x6d] sm:$0xff] }
 0x10c   : > { %v743_v54 = vadd.f32 %v4297_v44, %v5222_v11  ;;  %4515 = vmatprep.mubr.msk.bf16.mxu1 %vm375_vm1, %v2511_v33  ;;  %v1008_v41 = vpop.f32.mrf.mxu0  ;;  %v2483_v44 = vld [vmem:[%s4665_s25 + $0x65] sm:$0xff]  ;;  %v2806_v57 = vld [vmem:[%s4665_s25 + $0x4e] sm:$0xff] }
 0x10d   : > { %v734_v25 = vpop.f32.mrf.mxu1  ;;  %v5326_v48 = vadd.f32 %v1008_v41, %v719_v8  ;;  %v2805_v7 = vld [vmem:[%s4665_s25 + $0x46] sm:$0xff] }
 0x10e   : > { %v735_v0 = vadd.f32 %v734_v25, %v5232_v14  ;;  %v4332_v11 = vpop.f32.mrf.mxu0 }
 0x10f   : > { %v4298_v53 = vpop.f32.mrf.mxu1  ;;  %v5329_v16 = vadd.f32 %v4332_v11, %v730_v30  ;;  %v2482_v30 = vld [vmem:[%s4665_s25 + $0x5d] sm:$0xff]  ;;  %v2839_v11 = vpack.c.bf16 %v2806_v57, %v2805_v7 }
 0x110   : > { %v746_v60 = vadd.f32 %v4298_v53, %v5238_v62  ;;  %v1011_v61 = vpop.f32.mrf.mxu0  ;;  %v2481_v62 = vld [vmem:[%s4665_s25 + $0x55] sm:$0xff]  ;;  %v2515_v53 = vpack.c.bf16 %v2484_v52, %v2483_v44 }
 0x111   : > { %v737_v10 = vpop.f32.mrf.mxu1  ;;  %v5332_v8 = vadd.f32 %v1011_v61, %v722_v43  ;;  %v2804_v43 = vld [vmem:[%s4665_s25 + $0x3e] sm:$0xff] }
 0x112   : > { %v738_v14 = vadd.f32 %v737_v10, %v5242_v22  ;;  %v4335_v33 = vpop.f32.mrf.mxu0  ;;  %4510 = vmatmul.mubr.msk.bf16.gmra.mxu0 %vm375_vm1, %v2202_v46  ;;  %v2803_v22 = vld [vmem:[%s4665_s25 + $0x36] sm:$0xff] }
 0x113   : > { %v4301_v28 = vpop.f32.mrf.mxu1  ;;  %4516 = vmatmul.mubr.msk.bf16.vlgmr.msra.gmra.mxu1 %vm375_vm1, %v2512_v50  ;;  %v5339_v42 = vadd.f32 %v4335_v33, %v743_v54  ;;  %4553 = vmatprep.mubr.msk.bf16.mxu0 %vm375_vm1, %v2837_v59  ;;  %v2514_v54 = vpack.c.bf16 %v2482_v30, %v2481_v62  ;;  %v2838_v2 = vpack.c.bf16 %v2804_v43, %v2803_v22  ;;  %v2488_v30 = vld [vmem:[%s4665_s25 + $0x8d] sm:$0xff] }
 0x114   : > { %v759_v34 = vadd.f32 %v4301_v28, %v5246_v23  ;;  %4519 = vmatprep.mubr.msk.bf16.mxu1 %vm375_vm1, %v2513_v17  ;;  %v1024_v4 = vpop.f32.mrf.mxu0  ;;  %v2487_v28 = vld [vmem:[%s4665_s25 + $0x85] sm:$0xff]  ;;  %v2810_v43 = vld [vmem:[%s4665_s25 + $0x6e] sm:$0xff] }
 0x115   : > { %v750_v45 = vpop.f32.mrf.mxu1  ;;  %v5350_v25 = vadd.f32 %v1024_v4, %v735_v0  ;;  %v2809_v22 = vld [vmem:[%s4665_s25 + $0x66] sm:$0xff] }
 0x116   : > { %v751_v51 = vadd.f32 %v750_v45, %v5256_v29  ;;  %v4336_v23 = vpop.f32.mrf.mxu0 }
 0x117   : > { %v4302_v41 = vpop.f32.mrf.mxu1  ;;  %v5353_v5 = vadd.f32 %v4336_v23, %v746_v60  ;;  %v2486_v60 = vld [vmem:[%s4665_s25 + $0x7d] sm:$0xff]  ;;  %v2841_v23 = vpack.c.bf16 %v2810_v43, %v2809_v22 }
 0x118   : > { %v762_v3 = vadd.f32 %v4302_v41, %v5262_v32  ;;  %v1027_v50 = vpop.f32.mrf.mxu0  ;;  %v2485_v32 = vld [vmem:[%s4665_s25 + $0x75] sm:$0xff]  ;;  %v2517_v41 = vpack.c.bf16 %v2488_v30, %v2487_v28 }
 0x119   : > { %v753_v46 = vpop.f32.mrf.mxu1  ;;  %v5356_v0 = vadd.f32 %v1027_v50, %v738_v14  ;;  %v2808_v14 = vld [vmem:[%s4665_s25 + $0x5e] sm:$0xff] }
 0x11a   : > { %v754_v29 = vadd.f32 %v753_v46, %v5266_v35  ;;  %v4339_v59 = vpop.f32.mrf.mxu0  ;;  %4554 = vmatmul.mubr.msk.bf16.vlgmr.msra.gmra.mxu0 %vm375_vm1, %v2838_v2  ;;  %v2807_v35 = vld [vmem:[%s4665_s25 + $0x56] sm:$0xff]  ;;  %v2812_v50 = vld [vmem:[%s4665_s25 + $0x7e] sm:$0xff] }
 0x11b   : > { %v4305_v17 = vpop.f32.mrf.mxu1  ;;  %4520 = vmatmul.mubr.msk.bf16.gmra.mxu1 %vm375_vm1, %v2514_v54  ;;  %v5363_v61 = vadd.f32 %v4339_v59, %v759_v34  ;;  %4557 = vmatprep.mubr.msk.bf16.mxu0 %vm375_vm1, %v2839_v11  ;;  %v2516_v34 = vpack.c.bf16 %v2486_v60, %v2485_v32  ;;  %v2840_v52 = vpack.c.bf16 %v2808_v14, %v2807_v35  ;;  %v2492_v32 = vld [vmem:[%s4665_s25 + $0xad] sm:$0xff] }
 0x11c   : > { %v775_v10 = vadd.f32 %v4305_v17, %v5270_v39  ;;  %4523 = vmatprep.mubr.msk.bf16.mxu1 %vm375_vm1, %v2515_v53  ;;  %v1040_v62 = vpop.f32.mrf.mxu0  ;;  %v2813_v60 = vld [vmem:[%s4665_s25 + $0x86] sm:$0xff]  ;;  %v2814_v35 = vld [vmem:[%s4665_s25 + $0x8e] sm:$0xff] }
 0x11d   : > { %v766_v33 = vpop.f32.mrf.mxu1  ;;  %v5374_v45 = vadd.f32 %v1040_v62, %v751_v51  ;;  %v2843_v43 = vpack.c.bf16 %v2814_v35, %v2813_v60 }
 0x11e   : > { %v767_v44 = vadd.f32 %v766_v33, %v5279_v47  ;;  %v4340_v39 = vpop.f32.mrf.mxu0 }
 0x11f   : > { %v4306_v4 = vpop.f32.mrf.mxu1  ;;  %v5377_v57 = vadd.f32 %v4340_v39, %v762_v3  ;;  %v2490_v3 = vld [vmem:[%s4665_s25 + $0x9d] sm:$0xff] }
 0x120   : > { %v778_v7 = vadd.f32 %v4306_v4, %v5284_v58  ;;  %v1043_v2 = vpop.f32.mrf.mxu0  ;;  %v2489_v58 = vld [vmem:[%s4665_s25 + $0x95] sm:$0xff] }
 0x121   : > { %v769_v54 = vpop.f32.mrf.mxu1  ;;  %v5380_v51 = vadd.f32 %v1043_v2, %v754_v29  ;;  %v2491_v29 = vld [vmem:[%s4665_s25 + $0xa5] sm:$0xff] }
 0x122   : > { %v770_v47 = vadd.f32 %v769_v54, %v5287_v1  ;;  %v4343_v11 = vpop.f32.mrf.mxu0  ;;  %4558 = vmatmul.mubr.msk.bf16.gmra.mxu0 %vm375_vm1, %v2840_v52  ;;  %v2811_v1 = vld [vmem:[%s4665_s25 + $0x76] sm:$0xff]  ;;  %v2519_v22 = vpack.c.bf16 %v2492_v32, %v2491_v29 }
 0x123   : > { %v4309_v53 = vpop.f32.mrf.mxu1  ;;  %4524 = vmatmul.mubr.msk.bf16.gmra.mxu1 %vm375_vm1, %v2516_v34  ;;  %v5386_v46 = vadd.f32 %v4343_v11, %v775_v10  ;;  %4561 = vmatprep.mubr.msk.bf16.mxu0 %vm375_vm1, %v2841_v23  ;;  %v2518_v10 = vpack.c.bf16 %v2490_v3, %v2489_v58  ;;  %v2842_v62 = vpack.c.bf16 %v2812_v50, %v2811_v1  ;;  %v2494_v23 = vld [vmem:[%s4665_s25 + $0xbd] sm:$0xff]  ;;  %v2496_v3 = vld [vmem:[%s4665_s25 + $0xcd] sm:$0xff] }
 0x124   : > { %4527 = vmatprep.mubr.msk.bf16.mxu1 %vm375_vm1, %v2517_v41  ;;  %v1056_v59 = vpop.f32.mrf.mxu0  ;;  %v791_v34 = vadd.f32 %v4309_v53, %v5155_v37  ;;  %v2815_v37 = vld [vmem:[%s4665_s25 + $0x96] sm:$0xff]  ;;  %v2495_v53 = vld [vmem:[%s4665_s25 + $0xc5] sm:$0xff]  ;;  %v2818_v50 = vld [vmem:[%s4665_s25 + $0xae] sm:$0xff] }
 0x125   : > { %v782_v17 = vpop.f32.mrf.mxu1  ;;  %v5396_v14 = vadd.f32 %v1056_v59, %v767_v44  ;;  %v2817_v1 = vld [vmem:[%s4665_s25 + $0xa6] sm:$0xff] }
 0x126   : > { %v4344_v33 = vpop.f32.mrf.mxu0  ;;  %v783_v54 = vadd.f32 %v782_v17, %v5171_v40 }
 0x127   : > { %v4310_v28 = vpop.f32.mrf.mxu1  ;;  %v5398_v30 = vadd.f32 %v4344_v33, %v778_v7  ;;  %v2493_v7 = vld [vmem:[%s4665_s25 + $0xb5] sm:$0xff] }
 0x128   : > { %v1059_v39 = vpop.f32.mrf.mxu0  ;;  %v794_v29 = vadd.f32 %v4310_v28, %v5177_v49  ;;  %v2520_v17 = vpack.c.bf16 %v2494_v23, %v2493_v7  ;;  %v2499_v23 = vld [vmem:[%s4665_s25 + $0xe5] sm:$0xff] }
 0x129   : > { %v785_v4 = vpop.f32.mrf.mxu1  ;;  %v5401_v52 = vadd.f32 %v1059_v39, %v770_v47  ;;  %v2816_v47 = vld [vmem:[%s4665_s25 + $0x9e] sm:$0xff] }
 0x12a   : > { %v4347_v41 = vpop.f32.mrf.mxu0  ;;  %4562 = vmatmul.mubr.msk.bf16.gmra.mxu0 %vm375_vm1, %v2842_v62  ;;  %v2844_v60 = vpack.c.bf16 %v2816_v47, %v2815_v37  ;;  %v786_v35 = vadd.f32 %v785_v4, %v5187_v13  ;;  %v2845_v62 = vpack.c.bf16 %v2818_v50, %v2817_v1  ;;  %v2497_v13 = vld [vmem:[%s4665_s25 + $0xd5] sm:$0xff]  ;;  %v2498_v4 = vld [vmem:[%s4665_s25 + $0xdd] sm:$0xff]  ;;  %v2500_v47 = vld [vmem:[%s4665_s25 + $0xed] sm:$0xff] }
 0x12b   : > { %v4313_v44 = vpop.f32.mrf.mxu1  ;;  %4528 = vmatmul.mubr.msk.bf16.gmra.mxu1 %vm375_vm1, %v2518_v10  ;;  %v5408_v2 = vadd.f32 %v4347_v41, %v791_v34  ;;  %4565 = vmatprep.mubr.msk.bf16.mxu0 %vm375_vm1, %v2843_v43  ;;  %v2521_v10 = vpack.c.bf16 %v2496_v3, %v2495_v53  ;;  %v2821_v53 = vld [vmem:[%s4665_s25 + $0xc6] sm:$0xff] }
 0x12c   : > { %4531 = vmatprep.mubr.msk.bf16.mxu1 %vm375_vm1, %v2519_v22  ;;  %v1072_v58 = vpop.f32.mrf.mxu0  ;;  %v807_v49 = vadd.f32 %v4313_v44, %v5191_v63  ;;  %v2819_v63 = vld [vmem:[%s4665_s25 + $0xb6] sm:$0xff]  ;;  %v2820_v44 = vld [vmem:[%s4665_s25 + $0xbe] sm:$0xff] }
 0x12d   : > { %v798_v11 = vpop.f32.mrf.mxu1  ;;  %v5419_v59 = vadd.f32 %v1072_v58, %v783_v54  ;;  %v2822_v58 = vld [vmem:[%s4665_s25 + $0xce] sm:$0xff] }
 0x12e   : > { %v4348_v40 = vpop.f32.mrf.mxu0  ;;  %v799_v41 = vadd.f32 %v798_v11, %v5207_v56  ;;  %v2522_v11 = vpack.c.bf16 %v2498_v4, %v2497_v13  ;;  %v2503_v4 = vld [vmem:[%s4665_s25 + $0x105] sm:$0xff] }
 0x12f   : > { %v4314_v32 = vpop.f32.mrf.mxu1  ;;  %v5422_v33 = vadd.f32 %v4348_v40, %v794_v29  ;;  %v2846_v29 = vpack.c.bf16 %v2820_v44, %v2819_v63  ;;  %v2504_v44 = vld [vmem:[%s4665_s25 + $0x10d] sm:$0xff] }
 0x130   : > { %v1075_v43 = vpop.f32.mrf.mxu0  ;;  %v810_v3 = vadd.f32 %v4314_v32, %v5213_v38 }
 0x131   : > { %v801_v22 = vpop.f32.mrf.mxu1  ;;  %v5425_v28 = vadd.f32 %v1075_v43, %v786_v35  ;;  %v2847_v35 = vpack.c.bf16 %v2822_v58, %v2821_v53 }
 0x132   : > { %v4351_v34 = vpop.f32.mrf.mxu0  ;;  %4566 = vmatmul.mubr.msk.bf16.gmra.mxu0 %vm375_vm1, %v2844_v60  ;;  %v802_v40 = vadd.f32 %v801_v22, %v5220_v9  ;;  %v2523_v60 = vpack.c.bf16 %v2500_v47, %v2499_v23  ;;  %v2501_v9 = vld [vmem:[%s4665_s25 + $0xf5] sm:$0xff]  ;;  %v2502_v22 = vld [vmem:[%s4665_s25 + $0xfd] sm:$0xff]  ;;  %v2825_v23 = vld [vmem:[%s4665_s25 + $0xe6] sm:$0xff] }
 0x133   : > { %v4317_v39 = vpop.f32.mrf.mxu1  ;;  %4532 = vmatmul.mubr.msk.bf16.gmra.mxu1 %vm375_vm1, %v2520_v17  ;;  %v5432_v7 = vadd.f32 %v4351_v34, %v807_v49  ;;  %4569 = vmatprep.mubr.msk.bf16.mxu0 %vm375_vm1, %v2845_v62 }
 0x134   : > { %4535 = vmatprep.mubr.msk.bf16.mxu1 %vm375_vm1, %v2521_v10  ;;  %v1088_v37 = vpop.f32.mrf.mxu0  ;;  %v823_v38 = vadd.f32 %v4317_v39, %v5224_v12  ;;  %v2823_v12 = vld [vmem:[%s4665_s25 + $0xd6] sm:$0xff]  ;;  %v2824_v39 = vld [vmem:[%s4665_s25 + $0xde] sm:$0xff] }
 0x135   : > { %v814_v54 = vpop.f32.mrf.mxu1  ;;  %v5443_v1 = vadd.f32 %v1088_v37, %v799_v41  ;;  %v2826_v37 = vld [vmem:[%s4665_s25 + $0xee] sm:$0xff] }
 0x136   : > { %v4352_v56 = vpop.f32.mrf.mxu0  ;;  %v815_v34 = vadd.f32 %v814_v54, %v5234_v15  ;;  %v2524_v54 = vpack.c.bf16 %v2502_v22, %v2501_v9 }
 0x137   : > { %v4318_v50 = vpop.f32.mrf.mxu1  ;;  %v5446_v17 = vadd.f32 %v4352_v56, %v810_v3  ;;  %v2848_v3 = vpack.c.bf16 %v2824_v39, %v2823_v12  ;;  %v2508_v12 = vld [vmem:[%s4665_s25 + $0x12d] sm:$0xff] }
 0x138   : > { %v1091_v62 = vpop.f32.mrf.mxu0  ;;  %v826_v47 = vadd.f32 %v4318_v50, %v5240_v18 }
 0x139   : > { %v817_v10 = vpop.f32.mrf.mxu1  ;;  %v5449_v32 = vadd.f32 %v1091_v62, %v802_v40  ;;  %v2849_v40 = vpack.c.bf16 %v2826_v37, %v2825_v23 }
 0x13a   : > { %v4355_v49 = vpop.f32.mrf.mxu0  ;;  %4570 = vmatmul.mubr.msk.bf16.gmra.mxu0 %vm375_vm1, %v2846_v29  ;;  %v818_v56 = vadd.f32 %v817_v10, %v5244_v20  ;;  %v2525_v29 = vpack.c.bf16 %v2504_v44, %v2503_v4  ;;  %v2505_v20 = vld [vmem:[%s4665_s25 + $0x115] sm:$0xff]  ;;  %v2506_v10 = vld [vmem:[%s4665_s25 + $0x11d] sm:$0xff] }
 0x13b   : > { %v4321_v43 = vpop.f32.mrf.mxu1  ;;  %4536 = vmatmul.mubr.msk.bf16.gmra.mxu1 %vm375_vm1, %v2522_v11  ;;  %v5456_v13 = vadd.f32 %v4355_v49, %v823_v38  ;;  %4573 = vmatprep.mubr.msk.bf16.mxu0 %vm375_vm1, %v2847_v35  ;;  %v2827_v49 = vld [vmem:[%s4665_s25 + $0xf6] sm:$0xff]  ;;  %v2830_v44 = vld [vmem:[%s4665_s25 + $0x10e] sm:$0xff] }
 0x13c   : > { %4539 = vmatprep.mubr.msk.bf16.mxu1 %vm375_vm1, %v2523_v60  ;;  %v1104_v63 = vpop.f32.mrf.mxu0  ;;  %v839_v18 = vadd.f32 %v4321_v43, %v5248_v27  ;;  %v2828_v43 = vld [vmem:[%s4665_s25 + $0xfe] sm:$0xff] }
 0x13d   : > { %v830_v41 = vpop.f32.mrf.mxu1  ;;  %v5467_v53 = vadd.f32 %v1104_v63, %v815_v34  ;;  %v2507_v34 = vld [vmem:[%s4665_s25 + $0x125] sm:$0xff] }
 0x13e   : > { %v4356_v15 = vpop.f32.mrf.mxu0  ;;  %v831_v9 = vadd.f32 %v830_v41, %v5258_v21  ;;  %v2829_v63 = vld [vmem:[%s4665_s25 + $0x106] sm:$0xff] }
 0x13f   : > { %v4322_v58 = vpop.f32.mrf.mxu1  ;;  %v5470_v11 = vadd.f32 %v4356_v15, %v826_v47  ;;  %v2850_v15 = vpack.c.bf16 %v2828_v43, %v2827_v49  ;;  %v2834_v43 = vld [vmem:[%s4665_s25 + $0x12e] sm:$0xff] }
 0x140   : > { %v1107_v35 = vpop.f32.mrf.mxu0  ;;  %v842_v23 = vadd.f32 %v4322_v58, %v5264_v36 }
 0x141   : > { %v833_v60 = vpop.f32.mrf.mxu1  ;;  %v5473_v50 = vadd.f32 %v1107_v35, %v818_v56 }
 0x142   : > { %v4359_v62 = vpop.f32.mrf.mxu0  ;;  %4574 = vmatmul.mubr.msk.bf16.gmra.mxu0 %vm375_vm1, %v2848_v3  ;;  %v834_v3 = vadd.f32 %v833_v60, %v5268_v24  ;;  %v2509_v24 = vld [vmem:[%s4665_s25 + $0x135] sm:$0xff] }
 0x143   : > { %v4365_v38 = vpop.f32.mrf.mxu1  ;;  %4540 = vmatmul.mubr.msk.bf16.gmra.mxu1 %vm375_vm1, %v2524_v54  ;;  %v5481_v22 = vadd.f32 %v4359_v62, %v839_v18  ;;  %4577 = vmatprep.mubr.msk.bf16.mxu0 %vm375_vm1, %v2849_v40  ;;  %v2527_v54 = vpack.c.bf16 %v2508_v12, %v2507_v34  ;;  %v2851_v40 = vpack.c.bf16 %v2830_v44, %v2829_v63 }
 0x144   : > { %v1463_v27 = vadd.f32 %v4365_v38, %v5293_v6  ;;  %4543 = vmatprep.mubr.msk.bf16.mxu1 %vm375_vm1, %v2525_v29  ;;  %v1120_v39 = vpop.f32.mrf.mxu0  ;;  %v2526_v6 = vpack.c.bf16 %v2506_v10, %v2505_v20  ;;  %v2510_v38 = vld [vmem:[%s4665_s25 + $0x13d] sm:$0xff] }
 0x145   : > { %v1318_v4 = vpop.f32.mrf.mxu1  ;;  %v5492_v37 = vadd.f32 %v1120_v39, %v831_v9  ;;  %v2831_v20 = vld [vmem:[%s4665_s25 + $0x116] sm:$0xff]  ;;  %v2832_v10 = vld [vmem:[%s4665_s25 + $0x11e] sm:$0xff]  ;;  %v2833_v9 = vld [vmem:[%s4665_s25 + $0x126] sm:$0xff] }
 0x146   : > { %v1461_v21 = vadd.f32 %v1318_v4, %v5302_v19  ;;  %v4360_v41 = vpop.f32.mrf.mxu0 }
 0x147   : > { %v4366_v47 = vpop.f32.mrf.mxu1  ;;  %v5496_v56 = vadd.f32 %v4360_v41, %v842_v23  ;;  %v2853_v23 = vpack.c.bf16 %v2834_v43, %v2833_v9 }
 0x148   : > { %v1464_v29 = vadd.f32 %v4366_v47, %v5305_v31  ;;  %v1123_v36 = vpop.f32.mrf.mxu0 }
 0x149   : > { %v1321_v58 = vpop.f32.mrf.mxu1  ;;  %v5499_v35 = vadd.f32 %v1123_v36, %v834_v3 }
 0x14a   : > { %v1462_v19 = vadd.f32 %v1321_v58, %v5308_v26  ;;  %v4403_v62 = vpop.f32.mrf.mxu0  ;;  %4578 = vmatmul.mubr.msk.bf16.gmra.mxu0 %vm375_vm1, %v2850_v15 }
 0x14b   : > { %v4369_v18 = vpop.f32.mrf.mxu1  ;;  %4544 = vmatmul.mubr.msk.bf16.gmra.mxu1 %vm375_vm1, %v2526_v6  ;;  %v5506_v60 = vadd.f32 %v4403_v62, %v1463_v27  ;;  %4581 = vmatprep.mubr.msk.bf16.mxu0 %vm375_vm1, %v2851_v40  ;;  %v2852_v27 = vpack.c.bf16 %v2832_v10, %v2831_v20 }
 0x14c   : > { %v1467_v31 = vadd.f32 %v4369_v18, %v5315_v55  ;;  %4547 = vmatprep.mubr.msk.bf16.mxu1 %vm375_vm1, %v2527_v54  ;;  %v1644_v49 = vpop.f32.mrf.mxu0  ;;  %v2528_v55 = vpack.c.bf16 %v2510_v38, %v2509_v24 }
 0x14d   : > { %v1334_v26 = vpop.f32.mrf.mxu1  ;;  %v5516_v12 = vadd.f32 %v1644_v49, %v1461_v21 }
 0x14e   : > { %v1465_v34 = vadd.f32 %v1334_v26, %v5326_v48  ;;  %v4404_v4 = vpop.f32.mrf.mxu0 }
 0x14f   : > { %v4370_v39 = vpop.f32.mrf.mxu1  ;;  %v5519_v44 = vadd.f32 %v4404_v4, %v1464_v29  ;;  %v2836_v29 = vld [vmem:[%s4665_s25 + $0x13e] sm:$0xff] }
 0x150   : > { %v1468_v63 = vadd.f32 %v4370_v39, %v5329_v16  ;;  %v1647_v47 = vpop.f32.mrf.mxu0  ;;  %v2835_v16 = vld [vmem:[%s4665_s25 + $0x136] sm:$0xff] }
 0x151   : > { %v1337_v41 = vpop.f32.mrf.mxu1  ;;  %v5522_v15 = vadd.f32 %v1647_v47, %v1462_v19  ;;  %v2854_v62 = vpack.c.bf16 %v2836_v29, %v2835_v16 }
 0x152   : > { %v1466_v6 = vadd.f32 %v1337_v41, %v5332_v8  ;;  %v4407_v21 = vpop.f32.mrf.mxu0  ;;  %4582 = vmatmul.mubr.msk.bf16.gmra.mxu0 %vm375_vm1, %v2852_v27 }
 0x153   : > { %v4373_v48 = vpop.f32.mrf.mxu1  ;;  %4548 = vmatmul.mubr.msk.bf16.gmra.mxu1 %vm375_vm1, %v2528_v55  ;;  %v5527_v3 = vadd.f32 %v4407_v21, %v1467_v31  ;;  %4585 = vmatprep.mubr.msk.bf16.mxu0 %vm375_vm1, %v2853_v23 }
 0x154   : > { %v1471_v54 = vadd.f32 %v4373_v48, %v5339_v42  ;;  %v1660_v36 = vpop.f32.mrf.mxu0 }
 0x155   : > { %v1350_v40 = vpop.f32.mrf.mxu1  ;;  %v5533_v58 = vadd.f32 %v1660_v36, %v1465_v34 }
 0x156   : > { %v1469_v8 = vadd.f32 %v1350_v40, %v5350_v25  ;;  %v4408_v18 = vpop.f32.mrf.mxu0 }
 0x157   : > { %v4374_v19 = vpop.f32.mrf.mxu1  ;;  %v5536_v38 = vadd.f32 %v4408_v18, %v1468_v63 }
 0x158   : > { %v1472_v24 = vadd.f32 %v4374_v19, %v5353_v5  ;;  %v1663_v31 = vpop.f32.mrf.mxu0 }
 0x159   : > { %v1353_v42 = vpop.f32.mrf.mxu1  ;;  %v5539_v10 = vadd.f32 %v1663_v31, %v1466_v6 }
 0x15a   : > { %v1470_v20 = vadd.f32 %v1353_v42, %v5356_v0  ;;  %v4411_v49 = vpop.f32.mrf.mxu0  ;;  %4586 = vmatmul.mubr.msk.bf16.gmra.mxu0 %vm375_vm1, %v2854_v62 }
 0x15b   : > { %v4377_v26 = vpop.f32.mrf.mxu1  ;;  %v5543_v9 = vadd.f32 %v4411_v49, %v1471_v54 }
 0x15c   : > { %v1475_v25 = vadd.f32 %v4377_v26, %v5363_v61  ;;  %v1676_v34 = vpop.f32.mrf.mxu0 }
 0x15d   : > { %v1366_v43 = vpop.f32.mrf.mxu1  ;;  %v5546_v39 = vadd.f32 %v1676_v34, %v1469_v8 }
 0x15e   : > { %v1473_v5 = vadd.f32 %v1366_v43, %v5374_v45  ;;  %v4412_v55 = vpop.f32.mrf.mxu0 }
 0x15f   : > { %v4378_v4 = vpop.f32.mrf.mxu1  ;;  %v5549_v27 = vadd.f32 %v4412_v55, %v1472_v24 }
 0x160   : > { %v1476_v0 = vadd.f32 %v4378_v4, %v5377_v57  ;;  %v1679_v23 = vpop.f32.mrf.mxu0 }
 0x161   : > { %v1369_v63 = vpop.f32.mrf.mxu1  ;;  %v5552_v47 = vadd.f32 %v1679_v23, %v1470_v20 }
 0x162   : > { %v1474_v41 = vadd.f32 %v1369_v63, %v5380_v51  ;;  %v4415_v6 = vpop.f32.mrf.mxu0 }
 0x163   : > { %v4381_v61 = vpop.f32.mrf.mxu1  ;;  %v5555_v21 = vadd.f32 %v4415_v6, %v1475_v25 }
 0x164   : > { %v1479_v48 = vadd.f32 %v4381_v61, %v5386_v46  ;;  %v1692_v54 = vpop.f32.mrf.mxu0 }
 0x165   : > { %v1382_v45 = vpop.f32.mrf.mxu1  ;;  %v5558_v29 = vadd.f32 %v1692_v54, %v1473_v5 }
 0x166   : > { %v1477_v16 = vadd.f32 %v1382_v45, %v5396_v14  ;;  %v4416_v40 = vpop.f32.mrf.mxu0 }
 0x167   : > { %v4382_v57 = vpop.f32.mrf.mxu1  ;;  %v5561_v8 = vadd.f32 %v4416_v40, %v1476_v0 }
 0x168   : > { %v1480_v36 = vadd.f32 %v4382_v57, %v5398_v30  ;;  %v1695_v19 = vpop.f32.mrf.mxu0 }
 0x169   : > { %v1385_v51 = vpop.f32.mrf.mxu1  ;;  %v5564_v62 = vadd.f32 %v1695_v19, %v1474_v41 }
 0x16a   : > { %v1478_v18 = vadd.f32 %v1385_v51, %v5401_v52  ;;  %v4419_v24 = vpop.f32.mrf.mxu0 }
 0x16b   : > { %v4385_v46 = vpop.f32.mrf.mxu1  ;;  %v5567_v31 = vadd.f32 %v4419_v24, %v1479_v48 }
 0x16c   : > { %v1483_v42 = vadd.f32 %v4385_v46, %v5408_v2  ;;  %v1708_v20 = vpop.f32.mrf.mxu0 }
 0x16d   : > { %v1398_v14 = vpop.f32.mrf.mxu1  ;;  %v5570_v49 = vadd.f32 %v1708_v20, %v1477_v16 }
 0x16e   : > { %v1481_v26 = vadd.f32 %v1398_v14, %v5419_v59  ;;  %v4420_v25 = vpop.f32.mrf.mxu0 }
 0x16f   : > { %v4386_v30 = vpop.f32.mrf.mxu1  ;;  %v5573_v34 = vadd.f32 %v4420_v25, %v1480_v36 }
 0x170   : > { %v1484_v43 = vadd.f32 %v4386_v30, %v5422_v33  ;;  %v1711_v5 = vpop.f32.mrf.mxu0 }
 0x171   : > { %v1401_v52 = vpop.f32.mrf.mxu1  ;;  %v5576_v55 = vadd.f32 %v1711_v5, %v1478_v18 }
 0x172   : > { %v1482_v4 = vadd.f32 %v1401_v52, %v5425_v28  ;;  %v4423_v0 = vpop.f32.mrf.mxu0 }
 0x173   : > { %v4389_v2 = vpop.f32.mrf.mxu1  ;;  %v5579_v23 = vadd.f32 %v4423_v0, %v1483_v42 }
 0x174   : > { %v1487_v63 = vadd.f32 %v4389_v2, %v5432_v7  ;;  %v1724_v41 = vpop.f32.mrf.mxu0 }
 0x175   : > { %v1414_v59 = vpop.f32.mrf.mxu1  ;;  %v5582_v6 = vadd.f32 %v1724_v41, %v1481_v26 }
 0x176   : > { %v1485_v61 = vadd.f32 %v1414_v59, %v5443_v1  ;;  %v4424_v48 = vpop.f32.mrf.mxu0 }
 0x177   : > { %v4390_v33 = vpop.f32.mrf.mxu1  ;;  %v5585_v54 = vadd.f32 %v4424_v48, %v1484_v43 }
 0x178   : > { %v1488_v45 = vadd.f32 %v4390_v33, %v5446_v17  ;;  %v1727_v16 = vpop.f32.mrf.mxu0 }
 0x179   : > { %v1417_v28 = vpop.f32.mrf.mxu1  ;;  %v5588_v40 = vadd.f32 %v1727_v16, %v1482_v4 }
 0x17a   : > { %v1486_v57 = vadd.f32 %v1417_v28, %v5449_v32  ;;  %v4427_v36 = vpop.f32.mrf.mxu0 }
 0x17b   : > { %v4393_v7 = vpop.f32.mrf.mxu1  ;;  %v5591_v19 = vadd.f32 %v4427_v36, %v1487_v63 }
 0x17c   : > { %v1491_v51 = vadd.f32 %v4393_v7, %v5456_v13  ;;  %v1740_v18 = vpop.f32.mrf.mxu0 }
 0x17d   : > { %v1430_v1 = vpop.f32.mrf.mxu1  ;;  %v5594_v24 = vadd.f32 %v1740_v18, %v1485_v61 }
 0x17e   : > { %v1489_v46 = vadd.f32 %v1430_v1, %v5467_v53  ;;  %v4428_v42 = vpop.f32.mrf.mxu0 }
 0x17f   : > { %v4394_v17 = vpop.f32.mrf.mxu1  ;;  %v5597_v20 = vadd.f32 %v4428_v42, %v1488_v45 }
 0x180   : > { %v1492_v14 = vadd.f32 %v4394_v17, %v5470_v11  ;;  %v1743_v26 = vpop.f32.mrf.mxu0 }
 0x181   : > { %v1433_v32 = vpop.f32.mrf.mxu1  ;;  %v5600_v25 = vadd.f32 %v1743_v26, %v1486_v57 }
 0x182   : > { %v1490_v30 = vadd.f32 %v1433_v32, %v5473_v50  ;;  %v4431_v43 = vpop.f32.mrf.mxu0 }
 0x183   : > { %v4397_v13 = vpop.f32.mrf.mxu1  ;;  %v5603_v5 = vadd.f32 %v4431_v43, %v1491_v51 }
 0x184   : > { %v1495_v52 = vadd.f32 %v4397_v13, %v5481_v22  ;;  %v1756_v4 = vpop.f32.mrf.mxu0 }
 0x185   : > { %v1446_v53 = vpop.f32.mrf.mxu1  ;;  %v5606_v0 = vadd.f32 %v1756_v4, %v1489_v46 }
 0x186   : > { %v1493_v2 = vadd.f32 %v1446_v53, %v5492_v37  ;;  %v4432_v63 = vpop.f32.mrf.mxu0 }
 0x187   : > { %v4398_v11 = vpop.f32.mrf.mxu1  ;;  %v5609_v41 = vadd.f32 %v4432_v63, %v1492_v14 }
 0x188   : > { %v1496_v59 = vadd.f32 %v4398_v11, %v5496_v56  ;;  %v1759_v61 = vpop.f32.mrf.mxu0 }
 0x189   : > { %v1449_v50 = vpop.f32.mrf.mxu1  ;;  %v5612_v48 = vadd.f32 %v1759_v61, %v1490_v30 }
 0x18a   : > { %v1494_v33 = vadd.f32 %v1449_v50, %v5499_v35  ;;  %v4435_v22 = vpop.f32.mrf.mxu0 }
 0x18b   : > { %v4441_v45 = vpop.f32.mrf.mxu1  ;;  %v5614_v28 = vadd.f32 %v4435_v22, %v1495_v52 }
 0x18c   : > { %v2115_v37 = vadd.f32 %v4441_v45, %v5506_v60  ;;  %v1772_v16 = vpop.f32.mrf.mxu0 }
 0x18d   : > { %v1970_v57 = vpop.f32.mrf.mxu1  ;;  %v5617_v7 = vadd.f32 %v1772_v16, %v1493_v2 }
 0x18e   : > { %v2113_v56 = vadd.f32 %v1970_v57, %v5516_v12  ;;  %v4436_v36 = vpop.f32.mrf.mxu0 }
 0x18f   : > { %v4442_v51 = vpop.f32.mrf.mxu1  ;;  %v5620_v1 = vadd.f32 %v4436_v36, %v1496_v59 }
 0x190   : > { %v2116_v35 = vadd.f32 %v4442_v51, %v5519_v44  ;;  %v1775_v18 = vpop.f32.mrf.mxu0 }
 0x191   : > { %v1973_v46 = vpop.f32.mrf.mxu1  ;;  %v5623_v17 = vadd.f32 %v1775_v18, %v1494_v33 }
 0x192   : > { %v2114_v42 = vadd.f32 %v1973_v46, %v5522_v15  ;;  %v4479_v60 = vpop.f32.mrf.mxu0 }
 0x193   : > { %v4445_v14 = vpop.f32.mrf.mxu1  ;;  %v5627_v26 = vadd.f32 %v4479_v60, %v2115_v37 }
 0x194   : > { %v2119_v32 = vadd.f32 %v4445_v14, %v5527_v3  ;;  %v2296_v12 = vpop.f32.mrf.mxu0 }
 0x195   : > { %v1986_v30 = vpop.f32.mrf.mxu1  ;;  %v5630_v43 = vadd.f32 %v2296_v12, %v2113_v56 }
 0x196   : > { %v2117_v13 = vadd.f32 %v1986_v30, %v5533_v58  ;;  %v4480_v44 = vpop.f32.mrf.mxu0 }
 0x197   : > { %v4446_v52 = vpop.f32.mrf.mxu1  ;;  %v5633_v4 = vadd.f32 %v4480_v44, %v2116_v35 }
 0x198   : > { %v2120_v53 = vadd.f32 %v4446_v52, %v5536_v38  ;;  %v2299_v15 = vpop.f32.mrf.mxu0 }
 0x199   : > { %v1989_v2 = vpop.f32.mrf.mxu1  ;;  %v5636_v63 = vadd.f32 %v2299_v15, %v2114_v42 }
 0x19a   : > { %v2118_v11 = vadd.f32 %v1989_v2, %v5539_v10  ;;  %v4483_v59 = vpop.f32.mrf.mxu0 }
 0x19b   : > { %v4449_v3 = vpop.f32.mrf.mxu1  ;;  %v5639_v61 = vadd.f32 %v4483_v59, %v2119_v32 }
 0x19c   : > { %v2123_v50 = vadd.f32 %v4449_v3, %v5543_v9  ;;  %v2312_v33 = vpop.f32.mrf.mxu0 }
 0x19d   : > { %v2002_v58 = vpop.f32.mrf.mxu1  ;;  %v5642_v45 = vadd.f32 %v2312_v33, %v2117_v13 }
 0x19e   : > { %v2121_v22 = vadd.f32 %v2002_v58, %v5546_v39  ;;  %v4484_v37 = vpop.f32.mrf.mxu0 }
 0x19f   : > { %v4450_v38 = vpop.f32.mrf.mxu1  ;;  %v5645_v57 = vadd.f32 %v4484_v37, %v2120_v53 }
 0x1a0   : > { %v2124_v16 = vadd.f32 %v4450_v38, %v5549_v27  ;;  %v2315_v56 = vpop.f32.mrf.mxu0 }
 0x1a1   : > { %v2005_v10 = vpop.f32.mrf.mxu1  ;;  %v5648_v51 = vadd.f32 %v2315_v56, %v2118_v11 }
 0x1a2   : > { %v2122_v36 = vadd.f32 %v2005_v10, %v5552_v47  ;;  %v4487_v35 = vpop.f32.mrf.mxu0 }
 0x1a3   : > { %v4453_v9 = vpop.f32.mrf.mxu1  ;;  %v5651_v46 = vadd.f32 %v4487_v35, %v2123_v50 }
 0x1a4   : > { %v2127_v18 = vadd.f32 %v4453_v9, %v5555_v21  ;;  %v2328_v42 = vpop.f32.mrf.mxu0 }
 0x1a5   : > { %v2018_v39 = vpop.f32.mrf.mxu1  ;;  %v5654_v60 = vadd.f32 %v2328_v42, %v2121_v22 }
 0x1a6   : > { %v2125_v14 = vadd.f32 %v2018_v39, %v5558_v29  ;;  %v4488_v32 = vpop.f32.mrf.mxu0 }
 0x1a7   : > { %v4454_v27 = vpop.f32.mrf.mxu1  ;;  %v5657_v12 = vadd.f32 %v4488_v32, %v2124_v16 }
 0x1a8   : > { %v2128_v30 = vadd.f32 %v4454_v27, %v5561_v8  ;;  %v2331_v13 = vpop.f32.mrf.mxu0 }
 0x1a9   : > { %v2021_v47 = vpop.f32.mrf.mxu1  ;;  %v5660_v44 = vadd.f32 %v2331_v13, %v2122_v36 }
 0x1aa   : > { %v2126_v52 = vadd.f32 %v2021_v47, %v5564_v62  ;;  %v4491_v53 = vpop.f32.mrf.mxu0 }
 0x1ab   : > { %v4457_v21 = vpop.f32.mrf.mxu1  ;;  %v5663_v15 = vadd.f32 %v4491_v53, %v2127_v18 }
 0x1ac   : > { %v2131_v2 = vadd.f32 %v4457_v21, %v5567_v31  ;;  %v2344_v11 = vpop.f32.mrf.mxu0  ;;  %v5689_v21 = vpop.permute.xlu0 %3309 }
 0x1ad   : > { %v2034_v29 = vpop.f32.mrf.mxu1  ;;  %v5666_v59 = vadd.f32 %v2344_v11, %v2125_v14  ;;  %v5694_v11 = vpop.permute.xlu1 %3319 }
 0x1ae   : > { %v2129_v3 = vadd.f32 %v2034_v29, %v5570_v49  ;;  %v4492_v50 = vpop.f32.mrf.mxu0 }
 0x1af   : > { %v4458_v8 = vpop.f32.mrf.mxu1  ;;  %v5669_v33 = vadd.f32 %v4492_v50, %v2128_v30 }
 0x1b0   : > { %v2132_v58 = vadd.f32 %v4458_v8, %v5573_v34  ;;  %v2347_v22 = vpop.f32.mrf.mxu0 }
 0x1b1   : > { %v2037_v62 = vpop.f32.mrf.mxu1  ;;  %v5672_v37 = vadd.f32 %v2347_v22, %v2126_v52 }
 0x1b2   : > { %v2130_v38 = vadd.f32 %v2037_v62, %v5576_v55  ;;  %v4495_v16 = vpop.f32.mrf.mxu0 }
 0x1b3   : > { %v4461_v31 = vpop.f32.mrf.mxu1  ;;  %v5675_v56 = vadd.f32 %v4495_v16, %v2131_v2 }
 0x1b4   : > { %v2135_v10 = vadd.f32 %v4461_v31, %v5579_v23  ;;  %v2360_v36 = vpop.f32.mrf.mxu0 }
 0x1b5   : > { %v2050_v49 = vpop.f32.mrf.mxu1  ;;  %v5678_v35 = vadd.f32 %v2360_v36, %v2129_v3 }
 0x1b6   : > { %v2133_v9 = vadd.f32 %v2050_v49, %v5582_v6  ;;  %v4496_v18 = vpop.f32.mrf.mxu0  ;;  %v5707_v49 = vpop.permute.xlu1 %3324 }
 0x1b7   : > { %v4462_v34 = vpop.f32.mrf.mxu1  ;;  %v5681_v42 = vadd.f32 %v4496_v18, %v2132_v58 }
 0x1b8   : > { %v2136_v39 = vadd.f32 %v4462_v34, %v5585_v54  ;;  %v2363_v14 = vpop.f32.mrf.mxu0 }
 0x1b9   : > { %v2053_v55 = vpop.f32.mrf.mxu1  ;;  %v5684_v32 = vadd.f32 %v2363_v14, %v2130_v38  ;;  %v5702_v38 = vpop.permute.xlu0 %3314 }
 0x1ba   : > { %v2134_v27 = vadd.f32 %v2053_v55, %v5588_v40  ;;  %v4499_v30 = vpop.f32.mrf.mxu0 }
 0x1bb   : > { %v4465_v23 = vpop.f32.mrf.mxu1  ;;  %v5687_v13 = vadd.f32 %v4499_v30, %v2135_v10 }
 0x1bc   : > { %v2139_v47 = vadd.f32 %v4465_v23, %v5591_v19  ;;  %v2376_v52 = vpop.f32.mrf.mxu0 }
 0x1bd   : > { %v2066_v6 = vpop.f32.mrf.mxu1  ;;  %v5692_v53 = vadd.f32 %v2376_v52, %v2133_v9  ;;  %v5715_v14 = vpop.permute.xlu0 %3329 }
 0x1be   : > { %v2137_v54 = vadd.f32 %v2066_v6, %v5594_v24  ;;  %v4500_v29 = vpop.f32.mrf.mxu0 }
 0x1bf   : > { %v4466_v2 = vpop.f32.mrf.mxu1  ;;  %v5697_v3 = vadd.f32 %v4500_v29, %v2136_v39 }
 0x1c0   : > { %v2140_v40 = vadd.f32 %v4466_v2, %v5597_v20  ;;  %v2379_v19 = vpop.f32.mrf.mxu0 }
 0x1c1   : > { %v2069_v8 = vpop.f32.mrf.mxu1  ;;  %v5700_v58 = vadd.f32 %v2379_v19, %v2134_v27 }
 0x1c2   : > { %v2138_v50 = vadd.f32 %v2069_v8, %v5600_v25  ;;  %v4503_v22 = vpop.f32.mrf.mxu0  ;;  %v5728_v8 = vpop.permute.xlu0 %3339 }
 0x1c3   : > { %v4469_v62 = vpop.f32.mrf.mxu1  ;;  %v5705_v31 = vadd.f32 %v4503_v22, %v2139_v47  ;;  %v5720_v47 = vpop.permute.xlu1 %3334 }
 0x1c4   : > { %v2143_v24 = vadd.f32 %v4469_v62, %v5603_v5  ;;  %v2392_v10 = vpop.f32.mrf.mxu0 }
 0x1c5   : > { %v2082_v16 = vpop.f32.mrf.mxu1  ;;  %v5710_v36 = vadd.f32 %v2392_v10, %v2137_v54 }
 0x1c6   : > { %v2141_v20 = vadd.f32 %v2082_v16, %v5606_v0  ;;  %v4504_v25 = vpop.f32.mrf.mxu0 }
 0x1c7   : > { %v4470_v9 = vpop.f32.mrf.mxu1  ;;  %v5713_v18 = vadd.f32 %v4504_v25, %v2140_v40  ;;  %v5733_v22 = vpop.permute.xlu1 %3344 }
 0x1c8   : > { %v2144_v34 = vadd.f32 %v4470_v9, %v5609_v41  ;;  %v2395_v55 = vpop.f32.mrf.mxu0  ;;  %v5740_v25 = vpop.permute.xlu0 %3349 }
 0x1c9   : > { %v2085_v39 = vpop.f32.mrf.mxu1  ;;  %v5718_v27 = vadd.f32 %v2395_v55, %v2138_v50 }
 0x1ca   : > { %v2142_v5 = vadd.f32 %v2085_v39, %v5612_v48  ;;  %v4507_v30 = vpop.f32.mrf.mxu0 }
 0x1cb   : > { %v4473_v23 = vpop.f32.mrf.mxu1  ;;  %v5723_v6 = vadd.f32 %v4507_v30, %v2143_v24  ;;  %v5744_v55 = vpop.permute.xlu1 %3354 }
 0x1cc   : > { %v2147_v0 = vadd.f32 %v4473_v23, %v5614_v28  ;;  %v2408_v41 = vpop.f32.mrf.mxu0 }
 0x1cd   : > { %5874 = vst [vmem:[#allocation2_spill] sm:$0xff] %v5723_v6  ;;  %v2098_v52 = vpop.f32.mrf.mxu1  ;;  %v5726_v2 = vadd.f32 %v2408_v41, %v2141_v20 }
 0x1ce   : > { %v2145_v54 = vadd.f32 %v2098_v52, %v5617_v7  ;;  %v4508_v40 = vpop.f32.mrf.mxu0 }
 0x1cf   : > { %5875 = vst [vmem:[#allocation3_spill] sm:$0xff] %v5726_v2  ;;  %v4474_v29 = vpop.f32.mrf.mxu1  ;;  %v5731_v19 = vadd.f32 %v4508_v40, %v2144_v34 }
 0x1d0   : > { %v2148_v48 = vadd.f32 %v4474_v29, %v5620_v1  ;;  %v2411_v62 = vpop.f32.mrf.mxu0 }
 0x1d1   : > { %5876 = vst [vmem:[#allocation4_spill] sm:$0xff] %v5731_v19  ;;  %v2101_v50 = vpop.f32.mrf.mxu1  ;;  %v5736_v24 = vadd.f32 %v2411_v62, %v2142_v5 }
 0x1d2   : > { %v2146_v28 = vadd.f32 %v2101_v50, %v5623_v17  ;;  %v4511_v16 = vpop.f32.mrf.mxu0 }
 0x1d3   : > { %5877 = vst [vmem:[#allocation5_spill] sm:$0xff] %v5736_v24  ;;  %v4517_v7 = vpop.f32.mrf.mxu1  ;;  %v5738_v10 = vadd.f32 %v4511_v16, %v2147_v0  ;;  %v5750_v0 = vpop.permute.xlu0 %3359 }
 0x1d4   : > { %v2424_v20 = vpop.f32.mrf.mxu0  ;;  %v2767_v62 = vadd.f32 %v4517_v7, %v5627_v26 }
 0x1d5   : > { %5878 = vst [vmem:[#allocation6_spill] sm:$0xff] %v5738_v10  ;;  %v2622_v9 = vpop.f32.mrf.mxu1  ;;  %v5742_v39 = vadd.f32 %v2424_v20, %v2145_v54  ;;  %v5753_v54 = vpop.permute.xlu1 %3364 }
 0x1d6   : > { %v4512_v1 = vpop.f32.mrf.mxu0  ;;  %v2765_v29 = vadd.f32 %v2622_v9, %v5630_v43 }
 0x1d7   : > { %5879 = vst [vmem:[#allocation7_spill] sm:$0xff] %v5742_v39  ;;  %v4518_v34 = vpop.f32.mrf.mxu1  ;;  %v5746_v23 = vadd.f32 %v4512_v1, %v2148_v48  ;;  %v5758_v39 = vpop.permute.xlu0 %3369 }
 0x1d8   : > { %v2427_v30 = vpop.f32.mrf.mxu0  ;;  %v2768_v16 = vadd.f32 %v4518_v34, %v5633_v4 }
 0x1d9   : > { %5880 = vst [vmem:[#allocation8_spill] sm:$0xff] %v5746_v23  ;;  %v2625_v17 = vpop.f32.mrf.mxu1  ;;  %v5748_v5 = vadd.f32 %v2427_v30, %v2146_v28  ;;  %v5761_v4 = vpop.permute.xlu1 %3374 }
 0x1da   : > { %v4555_v41 = vpop.f32.mrf.mxu0 }
 0x1db   : > { %5881 = vst [vmem:[#allocation9_spill] sm:$0xff] %v5748_v5  ;;  %v4521_v52 = vpop.f32.mrf.mxu1  ;;  %v3093_v28 = vadd.f32 %v4555_v41, %v2767_v62  ;;  %v2766_v5 = vadd.f32 %v2625_v17, %v5636_v63 }
 0x1dc   : > { %v2948_v50 = vpop.f32.mrf.mxu0  ;;  %v2771_v62 = vadd.f32 %v4521_v52, %v5639_v61 }
 0x1dd   : > { %v2638_v40 = vpop.f32.mrf.mxu1  ;;  %v3091_v48 = vadd.f32 %v2948_v50, %v2765_v29  ;;  %v3489_v41 = vmul.f32 %v5694_v11, %v3093_v28 }
 0x1de   : > { %v4556_v1 = vpop.f32.mrf.mxu0  ;;  %v2769_v34 = vadd.f32 %v2638_v40, %v5642_v45 }
 0x1df   : > { %v4522_v20 = vpop.f32.mrf.mxu1  ;;  %v3094_v30 = vadd.f32 %v4556_v1, %v2768_v16  ;;  %v3487_v9 = vmul.f32 %v5689_v21, %v3091_v48  ;;  %v3567_v2 = vmul.f32 %v3489_v41, %v3093_v28 }
 0x1e0   : > { %v2951_v10 = vpop.f32.mrf.mxu0  ;;  %v2772_v21 = vadd.f32 %v4522_v20, %v5645_v57 }
 0x1e1   : > { %v2641_v23 = vpop.f32.mrf.mxu1  ;;  %v3977_v43 = vpack.c.bf16 %v3094_v30, %v3093_v28  ;;  %v3092_v24 = vadd.f32 %v2951_v10, %v2766_v5  ;;  %v3565_v5 = vmul.f32 %v3487_v9, %v3091_v48  ;;  %v3490_v16 = vmul.f32 %v5707_v49, %v3094_v30  ;;  %v5775_v49 = vpop.permute.xlu1 %3384 }
 0x1e2   : > { %v4559_v7 = vpop.f32.mrf.mxu0  ;;  %v2770_v61 = vadd.f32 %v2641_v23, %v5648_v51 }
 0x1e3   : > { %v4525_v26 = vpop.f32.mrf.mxu1  ;;  %4059 = vst [vmem:[%s4670_s29 + $0x8] sm:$0xff] %v3977_v43   ;;  %v3972_v29 = vpack.c.bf16 %v3092_v24, %v3091_v48  ;;  %v3488_v63 = vmul.f32 %v5702_v38, %v3092_v24  ;;  %v5771_v43 = vpop.permute.xlu0 %3379  ;;  %v3097_v11 = vadd.f32 %v4559_v7, %v2771_v62 }
 0x1e4   : > { %v2964_v50 = vpop.f32.mrf.mxu0 }
 0x1e5   : > { %v2654_v17 = vpop.f32.mrf.mxu1  ;;  %v3095_v10 = vadd.f32 %v2964_v50, %v2769_v34  ;;  %3973 = vst [vmem:[%s4670_s29] sm:$0xff] %v3972_v29   ;;  %v3523_v1 = vadd.f32 %v3488_v63, %v3487_v9  ;;  %v3566_v19 = vmul.f32 %v3488_v63, %v3092_v24  ;;  %v3568_v24 = vmul.f32 %v3490_v16, %v3094_v30 }
 0x1e6   : > { %v4560_v40 = vpop.f32.mrf.mxu0  ;;  %v2773_v28 = vadd.f32 %v2654_v17, %v5654_v60 }
 0x1e7   : > { %v4526_v45 = vpop.f32.mrf.mxu1  ;;  %v3491_v38 = vmul.f32 %v5715_v14, %v3095_v10  ;;  %v3098_v6 = vadd.f32 %v4560_v40, %v2772_v21  ;;  %v3524_v57 = vadd.f32 %v3523_v1, %v3489_v41  ;;  %v3601_v52 = vadd.f32 %v3566_v19, %v3565_v5  ;;  %v5781_v30 = vpop.permute.xlu0 %3389 }
 0x1e8   : > { %v2967_v20 = vpop.f32.mrf.mxu0  ;;  %v3493_v14 = vmul.f32 %v5728_v8, %v3097_v11 }
 0x1e9   : > { %v2657_v48 = vpop.f32.mrf.mxu1  ;;  %v3987_v9 = vpack.c.bf16 %v3098_v6, %v3097_v11  ;;  %v3602_v34 = vadd.f32 %v3601_v52, %v3567_v2  ;;  %v3525_v29 = vadd.f32 %v3524_v57, %v3490_v16  ;;  %v3096_v63 = vadd.f32 %v2967_v20, %v2770_v61 }
 0x1ea   : > { %v4563_v7 = vpop.f32.mrf.mxu0  ;;  %v3569_v51 = vmul.f32 %v3491_v38, %v3095_v10  ;;  %v2775_v2 = vadd.f32 %v4525_v26, %v5651_v46  ;;  %v2776_v16 = vadd.f32 %v4526_v45, %v5657_v12  ;;  %v3494_v40 = vmul.f32 %v5733_v22, %v3098_v6 }
 0x1eb   : > { %v4529_v50 = vpop.f32.mrf.mxu1  ;;  %4061 = vst [vmem:[%s4670_s29 + $0x18] sm:$0xff] %v3987_v9   ;;  %v3526_v23 = vadd.f32 %v3525_v29, %v3491_v38  ;;  %v3603_v19 = vadd.f32 %v3602_v34, %v3568_v24  ;;  %v3982_v41 = vpack.c.bf16 %v3096_v63, %v3095_v10  ;;  %v3492_v62 = vmul.f32 %v5720_v47, %v3096_v63  ;;  %v5787_v10 = vpop.permute.xlu1 %3394 }
 0x1ec   : > { %v2980_v5 = vpop.f32.mrf.mxu0  ;;  %v3101_v47 = vadd.f32 %v4563_v7, %v2775_v2  ;;  %v3571_v20 = vmul.f32 %v3493_v14, %v3097_v11  ;;  %v2774_v46 = vadd.f32 %v2657_v48, %v5660_v44  ;;  %v3572_v24 = vmul.f32 %v3494_v40, %v3098_v6 }
 0x1ed   : > { %v2670_v21 = vpop.f32.mrf.mxu1  ;;  %v3099_v1 = vadd.f32 %v2980_v5, %v2773_v28  ;;  %v3604_v8 = vadd.f32 %v3603_v19, %v3569_v51  ;;  %4060 = vst [vmem:[%s4670_s29 + $0x10] sm:$0xff] %v3982_v41   ;;  %v3527_v60 = vadd.f32 %v3526_v23, %v3492_v62  ;;  %v3570_v17 = vmul.f32 %v3492_v62, %v3096_v63  ;;  %v5791_v23 = vpop.permute.xlu0 %3399 }
 0x1ee   : > { %v4564_v61 = vpop.f32.mrf.mxu0  ;;  %v2777_v11 = vadd.f32 %v2670_v21, %v5666_v59  ;;  %v2779_v5 = vadd.f32 %v4529_v50, %v5663_v15 }
 0x1ef   : > { %v4530_v38 = vpop.f32.mrf.mxu1  ;;  %v3495_v57 = vmul.f32 %v5740_v25, %v3099_v1  ;;  %v3102_v52 = vadd.f32 %v4564_v61, %v2776_v16  ;;  %v3528_v12 = vadd.f32 %v3527_v60, %v3493_v14  ;;  %v3605_v26 = vadd.f32 %v3604_v8, %v3570_v17  ;;  %v5797_v62 = vpop.permute.xlu1 %3404 }
 0x1f0   : > { %v2983_v9 = vpop.f32.mrf.mxu0  ;;  %v3497_v25 = vmul.f32 %v5750_v0, %v3101_v47  ;;  %v2780_v2 = vadd.f32 %v4530_v38, %v5669_v33 }
 0x1f1   : > { %v2673_v45 = vpop.f32.mrf.mxu1  ;;  %v3997_v22 = vpack.c.bf16 %v3102_v52, %v3101_v47  ;;  %v3606_v34 = vadd.f32 %v3605_v26, %v3571_v20  ;;  %v3529_v29 = vadd.f32 %v3528_v12, %v3494_v40  ;;  %v3100_v63 = vadd.f32 %v2983_v9, %v2774_v46  ;;  %v5805_v38 = vpop.permute.xlu0 %3409 }
 0x1f2   : > { %v4567_v51 = vpop.f32.mrf.mxu0  ;;  %v3573_v44 = vmul.f32 %v3495_v57, %v3099_v1  ;;  %v3498_v8 = vmul.f32 %v5753_v54, %v3102_v52  ;;  %v3575_v61 = vmul.f32 %v3497_v25, %v3101_v47 }
 0x1f3   : > { %v4533_v28 = vpop.f32.mrf.mxu1  ;;  %4063 = vst [vmem:[%s4670_s29 + $0x28] sm:$0xff] %v3997_v22   ;;  %v3530_v48 = vadd.f32 %v3529_v29, %v3495_v57  ;;  %v3607_v7 = vadd.f32 %v3606_v34, %v3572_v24  ;;  %v3992_v14 = vpack.c.bf16 %v3100_v63, %v3099_v1  ;;  %v3496_v19 = vmul.f32 %v5744_v55, %v3100_v63  ;;  %v5807_v34 = vpop.permute.xlu1 %3414 }
 0x1f4   : > { %v2996_v41 = vpop.f32.mrf.mxu0  ;;  %v3105_v1 = vadd.f32 %v4567_v51, %v2779_v5  ;;  %v2778_v57 = vadd.f32 %v2673_v45, %v5672_v37  ;;  %v3576_v46 = vmul.f32 %v3498_v8, %v3102_v52 }
 0x1f5   : > { %v2686_v6 = vpop.f32.mrf.mxu1  ;;  %v3103_v16 = vadd.f32 %v2996_v41, %v2777_v11  ;;  %v3608_v0 = vadd.f32 %v3607_v7, %v3573_v44  ;;  %4062 = vst [vmem:[%s4670_s29 + $0x20] sm:$0xff] %v3992_v14   ;;  %v3531_v59 = vadd.f32 %v3530_v48, %v3496_v19  ;;  %v3574_v21 = vmul.f32 %v3496_v19, %v3100_v63  ;;  %v3420_v41 = vpop.permute.xlu0 %3419 }
 0x1f6   : > { %v4568_v60 = vpop.f32.mrf.mxu0  ;;  %v2781_v37 = vadd.f32 %v2686_v6, %v5678_v35  ;;  %v2783_v11 = vadd.f32 %v4533_v28, %v5675_v56 }
 0x1f7   : > { %v4534_v40 = vpop.f32.mrf.mxu1  ;;  %v3499_v55 = vmul.f32 %v5758_v39, %v3103_v16  ;;  %v3106_v17 = vadd.f32 %v4568_v60, %v2780_v2  ;;  %v3532_v20 = vadd.f32 %v3531_v59, %v3497_v25  ;;  %v3609_v15 = vadd.f32 %v3608_v0, %v3574_v21  ;;  %v3425_v59 = vpop.permute.xlu1 %3424 }
 0x1f8   : > { %v2999_v50 = vpop.f32.mrf.mxu0  ;;  %v3501_v39 = vmul.f32 %v5771_v43, %v3105_v1  ;;  %v2784_v44 = vadd.f32 %v4534_v40, %v5681_v42 }
 0x1f9   : > { %v2689_v33 = vpop.f32.mrf.mxu1  ;;  %v4007_v54 = vpack.c.bf16 %v3106_v17, %v3105_v1  ;;  %v3610_v12 = vadd.f32 %v3609_v15, %v3575_v61  ;;  %v3533_v26 = vadd.f32 %v3532_v20, %v3498_v8  ;;  %v3104_v9 = vadd.f32 %v2999_v50, %v2778_v57 }
 0x1fa   : > { %v4571_v24 = vpop.f32.mrf.mxu0  ;;  %v3577_v47 = vmul.f32 %v3499_v55, %v3103_v16  ;;  %v3502_v14 = vmul.f32 %v5775_v49, %v3106_v17  ;;  %v2782_v0 = vadd.f32 %v2689_v33, %v5684_v32 }
 0x1fb   : > { %v4537_v22 = vpop.f32.mrf.mxu1  ;;  %4065 = vst [vmem:[%s4670_s29 + $0x38] sm:$0xff] %v4007_v54   ;;  %v3534_v45 = vadd.f32 %v3533_v26, %v3499_v55  ;;  %v3611_v29 = vadd.f32 %v3610_v12, %v3576_v46  ;;  %v4002_v63 = vpack.c.bf16 %v3104_v9, %v3103_v16  ;;  %v3500_v51 = vmul.f32 %v5761_v4, %v3104_v9 }
 0x1fc   : > { %v3012_v25 = vpop.f32.mrf.mxu0  ;;  %v3109_v5 = vadd.f32 %v4571_v24, %v2783_v11  ;;  %v3579_v16 = vmul.f32 %v3501_v39, %v3105_v1  ;;  %v3580_v21 = vmul.f32 %v3502_v14, %v3106_v17  ;;  %v3430_v17 = vpop.permute.xlu0 %3429  ;;  %v2787_v12 = vadd.f32 %v4537_v22, %v5687_v13 }
 0x1fd   : > { %v2702_v52 = vpop.f32.mrf.mxu1  ;;  %v3107_v48 = vadd.f32 %v3012_v25, %v2781_v37  ;;  %v3612_v7 = vadd.f32 %v3611_v29, %v3577_v47  ;;  %4064 = vst [vmem:[%s4670_s29 + $0x30] sm:$0xff] %v4002_v63   ;;  %v3535_v43 = vadd.f32 %v3534_v45, %v3500_v51  ;;  %v3578_v35 = vmul.f32 %v3500_v51, %v3104_v9  ;;  %v5827_v45 = vpop.permute.xlu1 %3434 }
 0x1fe   : > { %v4572_v6 = vpop.f32.mrf.mxu0  ;;  %v3505_v20 = vmul.f32 %v5791_v23, %v3109_v5 }
 0x1ff   : > { %v4538_v19 = vpop.f32.mrf.mxu1  ;;  %v3503_v2 = vmul.f32 %v5781_v30, %v3107_v48  ;;  %v3110_v4 = vadd.f32 %v4572_v6, %v2784_v44  ;;  %v3536_v56 = vadd.f32 %v3535_v43, %v3501_v39  ;;  %v3613_v42 = vadd.f32 %v3612_v7, %v3578_v35 }
 0x200   : > { %v3015_v8 = vpop.f32.mrf.mxu0  ;;  %v2785_v30 = vadd.f32 %v2702_v52, %v5692_v53  ;;  %v2788_v26 = vadd.f32 %v4538_v19, %v5697_v3  ;;  %v3583_v51 = vmul.f32 %v3505_v20, %v3109_v5  ;;  %v3440_v35 = vpop.permute.xlu0 %3439 }
 0x201   : > { %v2705_v28 = vpop.f32.mrf.mxu1  ;;  %v4017_v49 = vpack.c.bf16 %v3110_v4, %v3109_v5  ;;  %v3614_v40 = vadd.f32 %v3613_v42, %v3579_v16  ;;  %v3537_v60 = vadd.f32 %v3536_v56, %v3502_v14  ;;  %v3108_v55 = vadd.f32 %v3015_v8, %v2782_v0 }
 0x202   : > { %v4575_v57 = vpop.f32.mrf.mxu0  ;;  %v3581_v1 = vmul.f32 %v3503_v2, %v3107_v48  ;;  %v3506_v23 = vmul.f32 %v5797_v62, %v3110_v4  ;;  %v2786_v13 = vadd.f32 %v2705_v28, %v5700_v58 }
 0x203   : > { %v4541_v61 = vpop.f32.mrf.mxu1  ;;  %4067 = vst [vmem:[%s4670_s29 + $0x48] sm:$0xff] %v4017_v49   ;;  %v3538_v32 = vadd.f32 %v3537_v60, %v3503_v2  ;;  %v3615_v15 = vadd.f32 %v3614_v40, %v3580_v21  ;;  %v4012_v33 = vpack.c.bf16 %v3108_v55, %v3107_v48  ;;  %v3504_v50 = vmul.f32 %v5787_v10, %v3108_v55 }
 0x204   : > { %v3028_v46 = vpop.f32.mrf.mxu0  ;;  %v3113_v29 = vadd.f32 %v4575_v57, %v2787_v12  ;;  %v3584_v11 = vmul.f32 %v3506_v23, %v3110_v4  ;;  %v3445_v4 = vpop.permute.xlu1 %3444  ;;  %v2791_v42 = vadd.f32 %v4541_v61, %v5705_v31 }
 0x205   : > { %v2718_v54 = vpop.f32.mrf.mxu1  ;;  %v3111_v9 = vadd.f32 %v3028_v46, %v2785_v30  ;;  %v3616_v24 = vadd.f32 %v3615_v15, %v3581_v1  ;;  %4066 = vst [vmem:[%s4670_s29 + $0x40] sm:$0xff] %v4012_v33   ;;  %v3539_v53 = vadd.f32 %v3538_v32, %v3504_v50  ;;  %v3582_v39 = vmul.f32 %v3504_v50, %v3108_v55 }
 0x206   : > { %v4576_v47 = vpop.f32.mrf.mxu0  ;;  %v3509_v19 = vmul.f32 %v3420_v41, %v3113_v29 }
 0x207   : > { %v4542_v37 = vpop.f32.mrf.mxu1  ;;  %v3507_v10 = vmul.f32 %v5805_v38, %v3111_v9  ;;  %v3114_v63 = vadd.f32 %v4576_v47, %v2788_v26  ;;  %v3540_v3 = vadd.f32 %v3539_v53, %v3505_v20  ;;  %v3617_v22 = vadd.f32 %v3616_v24, %v3582_v39 }
 0x208   : > { %v3031_v25 = vpop.f32.mrf.mxu0  ;;  %v2789_v38 = vadd.f32 %v2718_v54, %v5710_v36  ;;  %v2792_v28 = vadd.f32 %v4542_v37, %v5713_v18  ;;  %v3587_v30 = vmul.f32 %v3509_v19, %v3113_v29  ;;  %v3450_v18 = vpop.permute.xlu0 %3449 }
 0x209   : > { %v2721_v52 = vpop.f32.mrf.mxu1  ;;  %v4027_v62 = vpack.c.bf16 %v3114_v63, %v3113_v29  ;;  %v3618_v44 = vadd.f32 %v3617_v22, %v3583_v51  ;;  %v3541_v48 = vadd.f32 %v3540_v3, %v3506_v23  ;;  %v3112_v7 = vadd.f32 %v3031_v25, %v2786_v13  ;;  %v3455_v26 = vpop.permute.xlu1 %3454  ;;  %v5884_v51 = vld [vmem:[#allocation4_spill] sm:$0xff] }
 0x20a   : > { %v4579_v43 = vpop.f32.mrf.mxu0  ;;  %v3585_v6 = vmul.f32 %v3507_v10, %v3111_v9  ;;  %v3510_v41 = vmul.f32 %v3425_v59, %v3114_v63 }
 0x20b   : > { %v4545_v14 = vpop.f32.mrf.mxu1  ;;  %4069 = vst [vmem:[%s4670_s29 + $0x58] sm:$0xff] %v4027_v62   ;;  %v3542_v58 = vadd.f32 %v3541_v48, %v3507_v10  ;;  %v3619_v5 = vadd.f32 %v3618_v44, %v3584_v11  ;;  %v4022_v2 = vpack.c.bf16 %v3112_v7, %v3111_v9  ;;  %v3508_v16 = vmul.f32 %v5807_v34, %v3112_v7  ;;  %v5882_v9 = vld [vmem:[#allocation3_spill] sm:$0xff]  ;;  %v5883_v10 = vld [vmem:[#allocation2_spill] sm:$0xff] }
 0x20c   : > { %v3044_v56 = vpop.f32.mrf.mxu0  ;;  %v3117_v55 = vadd.f32 %v4579_v43, %v2791_v42  ;;  %v2790_v34 = vadd.f32 %v2721_v52, %v5718_v27  ;;  %v3588_v33 = vmul.f32 %v3510_v41, %v3114_v63  ;;  %v2795_v63 = vadd.f32 %v4545_v14, %v5883_v10  ;;  %v3460_v44 = vpop.permute.xlu0 %3459 }
 0x20d   : > { %v2734_v0 = vpop.f32.mrf.mxu1  ;;  %v3115_v8 = vadd.f32 %v3044_v56, %v2789_v38  ;;  %v3620_v49 = vadd.f32 %v3619_v5, %v3585_v6  ;;  %4068 = vst [vmem:[%s4670_s29 + $0x50] sm:$0xff] %v4022_v2   ;;  %v3543_v21 = vadd.f32 %v3542_v58, %v3508_v16  ;;  %v3586_v36 = vmul.f32 %v3508_v16, %v3112_v7  ;;  %v3465_v5 = vpop.permute.xlu1 %3464 }
 0x20e   : > { %v4580_v60 = vpop.f32.mrf.mxu0  ;;  %v2793_v24 = vadd.f32 %v2734_v0, %v5882_v9 }
 0x20f   : > { %v4546_v40 = vpop.f32.mrf.mxu1  ;;  %v3511_v57 = vmul.f32 %v3430_v17, %v3115_v8  ;;  %v3118_v20 = vadd.f32 %v4580_v60, %v2792_v28  ;;  %v3544_v1 = vadd.f32 %v3543_v21, %v3509_v19  ;;  %v3621_v32 = vadd.f32 %v3620_v49, %v3586_v36  ;;  %v5885_v19 = vld [vmem:[#allocation5_spill] sm:$0xff] }
 0x210   : > { %v3047_v61 = vpop.f32.mrf.mxu0  ;;  %v3513_v17 = vmul.f32 %v3440_v35, %v3117_v55  ;;  %v2796_v13 = vadd.f32 %v4546_v40, %v5884_v51 }
 0x211   : > { %v2737_v31 = vpop.f32.mrf.mxu1  ;;  %v4037_v15 = vpack.c.bf16 %v3118_v20, %v3117_v55  ;;  %v3622_v59 = vadd.f32 %v3621_v32, %v3587_v30  ;;  %v3545_v50 = vadd.f32 %v3544_v1, %v3510_v41  ;;  %v3116_v54 = vadd.f32 %v3047_v61, %v2790_v34  ;;  %v3470_v30 = vpop.permute.xlu0 %3469  ;;  %v5887_v34 = vld [vmem:[#allocation6_spill] sm:$0xff] }
 0x212   : > { %v4583_v12 = vpop.f32.mrf.mxu0  ;;  %v3589_v23 = vmul.f32 %v3511_v57, %v3115_v8  ;;  %v3514_v52 = vmul.f32 %v3445_v4, %v3118_v20  ;;  %v3591_v35 = vmul.f32 %v3513_v17, %v3117_v55 }
 0x213   : > { %v4549_v46 = vpop.f32.mrf.mxu1  ;;  %4071 = vst [vmem:[%s4670_s29 + $0x68] sm:$0xff] %v4037_v15   ;;  %v3546_v27 = vadd.f32 %v3545_v50, %v3511_v57  ;;  %v3623_v53 = vadd.f32 %v3622_v59, %v3588_v33  ;;  %v4032_v39 = vpack.c.bf16 %v3116_v54, %v3115_v8  ;;  %v3512_v37 = vmul.f32 %v5827_v45, %v3116_v54  ;;  %v5886_v8 = vld [vmem:[#allocation7_spill] sm:$0xff]  ;;  %v3475_v50 = vpop.permute.xlu1 %3474 }
 0x214   : > { %v3060_v29 = vpop.f32.mrf.mxu0  ;;  %v3121_v48 = vadd.f32 %v4583_v12, %v2795_v63  ;;  %v2794_v45 = vadd.f32 %v2737_v31, %v5885_v19  ;;  %v3592_v16 = vmul.f32 %v3514_v52, %v3118_v20  ;;  %v2799_v1 = vadd.f32 %v4549_v46, %v5887_v34  ;;  %v5888_v20 = vld [vmem:[#allocation8_spill] sm:$0xff] }
 0x215   : > { %v2750_v47 = vpop.f32.mrf.mxu1  ;;  %v3119_v3 = vadd.f32 %v3060_v29, %v2793_v24  ;;  %v3624_v22 = vadd.f32 %v3623_v53, %v3589_v23  ;;  %4070 = vst [vmem:[%s4670_s29 + $0x60] sm:$0xff] %v4032_v39   ;;  %v3547_v25 = vadd.f32 %v3546_v27, %v3512_v37  ;;  %v3590_v62 = vmul.f32 %v3512_v37, %v3116_v54  ;;  %v5889_v54 = vld [vmem:[#allocation9_spill] sm:$0xff]  ;;  %v3480_v10 = vpop.permute.xlu0 %3479 }
 0x216   : > { %v4584_v11 = vpop.f32.mrf.mxu0  ;;  %v3517_v28 = vmul.f32 %v3460_v44, %v3121_v48  ;;  %v2797_v49 = vadd.f32 %v2750_v47, %v5886_v8 }
 0x217   : > { %v3515_v7 = vmul.f32 %v3450_v18, %v3119_v3  ;;  %v3122_v43 = vadd.f32 %v4584_v11, %v2796_v13  ;;  %v3548_v38 = vadd.f32 %v3547_v25, %v3513_v17  ;;  %v3625_v6 = vadd.f32 %v3624_v22, %v3590_v62  ;;  %v4550_v14 = vpop.f32.mrf.mxu1  ;;  %v3485_v25 = vpop.permute.xlu1 %3484 }
 0x218   : > { %v3063_v58 = vpop.f32.mrf.mxu0  ;;  %v2800_v32 = vadd.f32 %v4550_v14, %v5888_v20 }
 0x219   : > { %v4047_v2 = vpack.c.bf16 %v3122_v43, %v3121_v48  ;;  %v3626_v0 = vadd.f32 %v3625_v6, %v3591_v35  ;;  %v3549_v56 = vadd.f32 %v3548_v38, %v3514_v52  ;;  %v3120_v4 = vadd.f32 %v3063_v58, %v2794_v45  ;;  %v2753_v40 = vpop.f32.mrf.mxu1 }
 0x21a   : > { %v4587_v42 = vpop.f32.mrf.mxu0  ;;  %v3593_v41 = vmul.f32 %v3515_v7, %v3119_v3  ;;  %v3518_v18 = vmul.f32 %v3465_v5, %v3122_v43  ;;  %v2798_v12 = vadd.f32 %v2753_v40, %v5889_v54 }
 0x21b   : > { %4073 = vst [vmem:[%s4670_s29 + $0x78] sm:$0xff] %v4047_v2   ;;  %v3550_v21 = vadd.f32 %v3549_v56, %v3515_v7  ;;  %v3627_v36 = vadd.f32 %v3626_v0, %v3592_v16  ;;  %v4042_v60 = vpack.c.bf16 %v3120_v4, %v3119_v3  ;;  %v3516_v55 = vmul.f32 %v3455_v26, %v3120_v4 }
 0x21c   : > { %v3076_v57 = vpop.f32.mrf.mxu0  ;;  %v3125_v17 = vadd.f32 %v4587_v42, %v2799_v1  ;;  %v3595_v26 = vmul.f32 %v3517_v28, %v3121_v48  ;;  %v3596_v37 = vmul.f32 %v3518_v18, %v3122_v43 }
 0x21d   : > { %v3123_v31 = vadd.f32 %v3076_v57, %v2797_v49  ;;  %v3628_v61 = vadd.f32 %v3627_v36, %v3593_v41  ;;  %4072 = vst [vmem:[%s4670_s29 + $0x70] sm:$0xff] %v4042_v60   ;;  %v3551_v15 = vadd.f32 %v3550_v21, %v3516_v55  ;;  %v3594_v33 = vmul.f32 %v3516_v55, %v3120_v4  ;;  %v3646_v41 = vld [vmem:[%s5873_s5] sm:$0x1] }
 0x21e   : > { %v4588_v59 = vpop.f32.mrf.mxu0  ;;  %v3521_v13 = vmul.f32 %v3480_v10, %v3125_v17 }
 0x21f   : > { %v3126_v9 = vadd.f32 %v4588_v59, %v2800_v32  ;;  %v3552_v24 = vadd.f32 %v3551_v15, %v3517_v28  ;;  %v3629_v23 = vadd.f32 %v3628_v61, %v3594_v33  ;;  %v3519_v27 = vmul.f32 %v3470_v30, %v3123_v31  ;;  %v3643_v28 = vld [vmem:[%s5872_s4] sm:$0x1] }
 0x220   : > { %v3079_v46 = vpop.f32.mrf.mxu0  ;;  %v3599_v7 = vmul.f32 %v3521_v13, %v3125_v17 }
 0x221   : > { %v4057_v53 = vpack.c.bf16 %v3126_v9, %v3125_v17  ;;  %v3124_v39 = vadd.f32 %v3079_v46, %v2798_v12  ;;  %v3630_v47 = vadd.f32 %v3629_v23, %v3595_v26  ;;  %v3553_v29 = vadd.f32 %v3552_v24, %v3518_v18 }
 0x222   : > { %v3597_v22 = vmul.f32 %v3519_v27, %v3123_v31  ;;  %v3522_v44 = vmul.f32 %v3485_v25, %v3126_v9 }
 0x223   : > { %4075 = vst [vmem:[%s4670_s29 + $0x88] sm:$0xff] %v4057_v53   ;;  %v4052_v63 = vpack.c.bf16 %v3124_v39, %v3123_v31  ;;  %v3520_v51 = vmul.f32 %v3475_v50, %v3124_v39  ;;  %v3554_v3 = vadd.f32 %v3553_v29, %v3519_v27  ;;  %v3631_v52 = vadd.f32 %v3630_v47, %v3596_v37 }
 0x224   : > { %v3600_v43 = vmul.f32 %v3522_v44, %v3126_v9 }
 0x225   : > { %4074 = vst [vmem:[%s4670_s29 + $0x80] sm:$0xff] %v4052_v63   ;;  %v3598_v62 = vmul.f32 %v3520_v51, %v3124_v39  ;;  %v3632_v11 = vadd.f32 %v3631_v52, %v3597_v22  ;;  %v3555_v48 = vadd.f32 %v3554_v3, %v3520_v51 }
 0x227   : > { %v3556_v35 = vadd.f32 %v3555_v48, %v3521_v13  ;;  %v3633_v19 = vadd.f32 %v3632_v11, %v3598_v62 }
 0x229   : > { %v3557_v45 = vadd.f32 %v3556_v35, %v3522_v44  ;;  %v3634_v38 = vadd.f32 %v3633_v19, %v3599_v7 }
 0x22b   : > { %v3558_v6 = vrot.slane %v3557_v45, 4  ;;  %v3635_v14 = vadd.f32 %v3634_v38, %v3600_v43 }
 0x22d   : > { %v3559_v58 = vadd.f32 %v3558_v6, %v3557_v45  ;;  %v3636_v5 = vrot.slane %v3635_v14, 4 }
 0x22f   : > { %v3560_v2 = vrot.slane %v3559_v58, 2  ;;  %v3637_v16 = vadd.f32 %v3636_v5, %v3635_v14 }
 0x231   : > { %v3561_v0 = vadd.f32 %v3560_v2, %v3559_v58  ;;  %v3638_v56 = vrot.slane %v3637_v16, 2 }
 0x233   : > { %v3562_v4 = vrot.slane %v3561_v0, 1  ;;  %v3639_v42 = vadd.f32 %v3638_v56, %v3637_v16 }
 0x235   : > { %v3563_v8 = vadd.f32 %v3562_v4, %v3561_v0  ;;  %v3640_v49 = vrot.slane %v3639_v42, 1 }
 0x237   : > { %v3641_v21 = vadd.f32 %v3640_v49, %v3639_v42  ;;  %v3644_v36 = vadd.f32 %v3643_v28, %v3563_v8 }
 0x239   : > { %3645 = vst [vmem:[%s5872_s4] sm:$0x1] %v3644_v36  ;;  %v3647_v40 = vadd.f32 %v3646_v41, %v3641_v21 }
 0x23b   : > { %3648 = vst [vmem:[%s5873_s5] sm:$0x1] %v3647_v40 }
 0x23c PF: > { %s16_s18 = sadd.s32 1, %s4620_s18  }
 0x23d   : > { %p13_p6 = scmp.ge.s32.totalorder %s16_s18, 4  }
 0x23f   :  { %15 = sbr.rel (!%p13_p6) target bundleno = 1 (0x1), region = 90 }

</bundles_post_ra>
